<compile_context>
chip_gen: v7x
topology: tpu7x:2x2x1
jax: 0.10.0
libtpu: 0.0.40
codegen_flags: <defaults>
</compile_context>

<pallas_src>
import math

import jax
import jax.numpy as jnp
import numpy as np
from jax import lax
from jax.experimental import pallas as pl
from jax.experimental.pallas import tpu as pltpu

# ---- "utils" constants (small, consistent with the module) -----------------
IMG_SIZE = 16
PATCH_SIZE = 4
IMG_CHANNELS = 4
EMBED_DIM = 32
NUM_HEADS = 4
NUM_ENCODERS = 2
NUM_CLASSES = 10
LN_EPS = 1e-5

HEAD_DIM = EMBED_DIM // NUM_HEADS                    # 8
NUM_PATCHES = (IMG_SIZE // PATCH_SIZE) ** 2          # 16
SEQ = NUM_PATCHES + 1                                # 17 (patches + cls token)
PATCH_DIM = PATCH_SIZE * PATCH_SIZE * IMG_CHANNELS   # 64
SEQ_PAD = ((SEQ + 7) // 8) * 8                       # 24 (8-aligned rows / image)
HID = 4 * EMBED_DIM                                  # 128 (MLP hidden)
OUT_PAD = 128                                        # lane-dense logits width
NEG_INF = -1e30                                      # finite! (see notes)

# ---- static slab layouts (row offsets are Python ints, 8/32-aligned) -------
# W32 slab: all matmul weights with output width E (lane dim = 32).
W32_WQ, W32_WK, W32_WV, W32_WO = 0, EMBED_DIM, 2 * EMBED_DIM, 3 * EMBED_DIM
W32_W2 = 4 * EMBED_DIM                               # fc2 weight (HID rows)
W32_PER_LAYER = 4 * EMBED_DIM + HID                  # 256 rows / layer
W32_HW1 = NUM_ENCODERS * W32_PER_LAYER               # head linear-1 weight
W32_ROWS = W32_HW1 + EMBED_DIM                       # 544

# W128 slab: matmul weights/biases with lane dim 128.
W128_B1 = 0                                          # fc1 bias, row = layer
W128_HB2 = NUM_ENCODERS                              # head linear-2 bias (padded)
W128_W1 = 8                                          # fc1 weight, layer l at 8+l*E
W128_HW2 = 8 + NUM_ENCODERS * EMBED_DIM              # head linear-2 weight (padded)
W128_ROWS = W128_HW2 + EMBED_DIM                     # 104

# V slab: all (1, E) vectors (LN params, biases) + cls+pos[0] row.
V_CLS = 0
V_PER_LAYER = 9   # ln1w, ln1b, bq(scaled), bk, bv, bo, ln2w, ln2b, b2
V_L = 1
V_HEAD = 1 + NUM_ENCODERS * V_PER_LAYER              # hlnw, hlnb, hb1
V_ROWS = V_HEAD + 3                                  # 22


# ---- elementwise helpers (usable both in-kernel and in the reference) ------
def _erf(x, recip=lambda v: 1.0 / v):
    # Abramowitz & Stegun 7.1.26 rational approx, |err| < 1.5e-7.
    a1, a2, a3, a4, a5 = 0.254829592, -0.284496736, 1.421413741, -1.453152027, 1.061405429
    p = 0.3275911
    sgn = jnp.where(x >= 0.0, 1.0, -1.0)
    ax = jnp.abs(x)
    t = recip(1.0 + p * ax)
    poly = ((((a5 * t + a4) * t + a3) * t + a2) * t + a1) * t
    return sgn * (1.0 - poly * jnp.exp(-ax * ax))


def _gelu(x, recip=lambda v: 1.0 / v):
    # PyTorch nn.GELU() (exact, erf-based)
    return 0.5 * x * (1.0 + _erf(x * (1.0 / math.sqrt(2.0)), recip))


def _layernorm(x, w, b):
    mean = jnp.mean(x, axis=-1, keepdims=True)
    var = jnp.mean((x - mean) * (x - mean), axis=-1, keepdims=True)
    return (x - mean) * lax.rsqrt(var + LN_EPS) * w + b


# ---- the single fused Pallas kernel -----------------------------------------
def vit_kernel(patches_ref, wp_ref, posadd_ref, w32_ref, w128_ref, vslab_ref,
               mask32_ref, abias_ref, out_ref, act_ref):
    f32 = jnp.float32
    E, H = EMBED_DIM, NUM_HEADS
    B = patches_ref.shape[0] // NUM_PATCHES          # static at trace time
    SP = SEQ_PAD
    BSP = B * SP
    recip = lambda t: pl.reciprocal(t, approx=True)

    vall = vslab_ref[...]                            # (22, E) vector slab

    def vrow(i):                                     # (1, E) row, broadcasts
        return vall[i:i + 1, :]

    bias128 = w128_ref[0:8, :]                       # fc1 biases + padded head bias

    # ---- patch embedding: one matmul; linear bias + pos emb pre-folded ------
    proj = jnp.dot(patches_ref[...], wp_ref[...],
                   preferred_element_type=f32) + posadd_ref[...]    # (B*Np, E)

    # Single-pass (B*SEQ_PAD, E) token-slab assembly.  Per image: rows
    # [0,16) = patch tokens, row 16 = cls token (+pos[0]), rows [17,24) = zero
    # padding.  Pad-row zeroing is load-bearing (pad keys must stay finite).
    # Internally tokens are [patches, cls, pad]; attention is permutation
    # equivariant and positions travel with their pos-embeddings, so results
    # match the cls-first ordering of the PyTorch module.
    for b in range(B):
        base = b * SP
        act_ref[base:base + NUM_PATCHES, :] = \
            proj[b * NUM_PATCHES:(b + 1) * NUM_PATCHES, :]
        act_ref[base + NUM_PATCHES:base + SP, :] = \
            jnp.zeros((SP - NUM_PATCHES, E), f32)                   # aligned 8-row store
        act_ref[base + NUM_PATCHES:base + NUM_PATCHES + 1, :] = vrow(V_CLS)
    x = act_ref[...]                                                # (B*SP, E)

    hmask = mask32_ref[0:H * BSP, :]                 # (H*BSP, E) head lane mask
    lblock = mask32_ref[H * BSP:H * BSP + H, :]      # (H, E) head recombination
    abias = abias_ref[...]                           # (H*BSP, BSP) additive mask

    # ---- encoder blocks ------------------------------------------------------
    for l in range(NUM_ENCODERS):
        vb = V_L + l * V_PER_LAYER
        wb = l * W32_PER_LAYER

        y = _layernorm(x, vrow(vb + 0), vrow(vb + 1))               # (B*SP, E)
        # 1/sqrt(HEAD_DIM) is baked into wq / bq at prepare_params time.
        q = jnp.dot(y, w32_ref[wb + W32_WQ:wb + W32_WQ + E, :],
                    preferred_element_type=f32) + vrow(vb + 2)
        k = jnp.dot(y, w32_ref[wb + W32_WK:wb + W32_WK + E, :],
                    preferred_element_type=f32) + vrow(vb + 3)
        v = jnp.dot(y, w32_ref[wb + W32_WV:wb + W32_WV + E, :],
                    preferred_element_type=f32) + vrow(vb + 4)

        # Batched attention over all images & heads: heads stacked on sublanes,
        # so ONE QK^T and ONE P@V matmul per layer.  Cross-image and pad keys
        # are removed by the additive block-diagonal bias; after the row-max
        # subtraction their exp underflows to exactly 0 in f32 (NEG_INF is
        # finite on purpose — never "improve" it to -inf).
        q_st = jnp.concatenate([q] * H, axis=0) * hmask             # (H*BSP, E)
        s = lax.dot_general(q_st, k, (((1,), (1,)), ((), ())),
                            preferred_element_type=f32) + abias     # (H*BSP, BSP)
        s = s - jnp.max(s, axis=-1, keepdims=True)
        e = jnp.exp(s)
        p_attn = e * recip(jnp.sum(e, axis=-1, keepdims=True))
        o_full = jnp.dot(p_attn, v, preferred_element_type=f32)     # (H*BSP, E)

        # Recombine heads: pick head h's lane block from its row block.
        attn = o_full[0:BSP, :] * lblock[0:1, :]
        for h in range(1, H):
            attn = attn + o_full[h * BSP:(h + 1) * BSP, :] * lblock[h:h + 1, :]

        mha = jnp.dot(attn, w32_ref[wb + W32_WO:wb + W32_WO + E, :],
                      preferred_element_type=f32) + vrow(vb + 5)

        r1 = x + mha
        z = _layernorm(r1, vrow(vb + 6), vrow(vb + 7))
        h1 = _gelu(jnp.dot(z, w128_ref[W128_W1 + l * E:W128_W1 + (l + 1) * E, :],
                           preferred_element_type=f32) + bias128[W128_B1 + l:W128_B1 + l + 1, :],
                   recip=recip)
        h2 = jnp.dot(h1, w32_ref[wb + W32_W2:wb + W32_W2 + HID, :],
                     preferred_element_type=f32) + vrow(vb + 8)
        x = r1 + h2

    # ---- MLP head: run on the full slab, store only the cls rows ------------
    hy = _layernorm(x, vrow(V_HEAD + 0), vrow(V_HEAD + 1))
    h1 = jnp.dot(hy, w32_ref[W32_HW1:W32_HW1 + E, :],
                 preferred_element_type=f32) + vrow(V_HEAD + 2)
    logits = jnp.dot(h1, w128_ref[W128_HW2:W128_HW2 + E, :],
                     preferred_element_type=f32) + bias128[W128_HB2:W128_HB2 + 1, :]
    for b in range(B):
        out_ref[b:b + 1, :] = \
            logits[b * SP + NUM_PATCHES:b * SP + NUM_PATCHES + 1, :]


# ---- wrappers ---------------------------------------------------------------
def img_to_patches(x):
    # 'b c (h p1) (w p2) -> b (h w) (p1 p2 c)'
    B, C, H, W = x.shape
    h, w = H // PATCH_SIZE, W // PATCH_SIZE
    x = x.reshape(B, C, h, PATCH_SIZE, w, PATCH_SIZE)
    x = x.transpose(0, 2, 4, 3, 5, 1)                 # b h w p1 p2 c
    return x.reshape(B, h * w, PATCH_SIZE * PATCH_SIZE * C)


def prepare_params(params, batch_size):
    """One-time host-side prep: pack all weights into a few slabs + masks."""
    E, H, HD, NC = EMBED_DIM, NUM_HEADS, HEAD_DIM, NUM_CLASSES
    B, SP = batch_size, SEQ_PAD
    scale = 1.0 / math.sqrt(HD)
    emb, enc, head = params["embed"], params["encoders"], params["head"]

    w32_rows, v_rows, w1_rows, b1_rows = [], [], [], []
    v_rows.append((emb["cls"] + emb["pos"][0:1]).reshape(1, E))      # cls + pos[0]
    for p in enc:
        w32_rows += [p["qkv_w"][0:E, :].T * scale,                   # wq (scaled)
                     p["qkv_w"][E:2 * E, :].T,                       # wk
                     p["qkv_w"][2 * E:3 * E, :].T,                   # wv
                     p["out_w"].T,                                   # wo
                     p["fc2_w"].T]                                   # w2 (HID, E)
        v_rows += [p["ln1_w"].reshape(1, E), p["ln1_b"].reshape(1, E),
                   p["qkv_b"][:, 0:E].reshape(1, E) * scale,
                   p["qkv_b"][:, E:2 * E].reshape(1, E),
                   p["qkv_b"][:, 2 * E:3 * E].reshape(1, E),
                   p["out_b"].reshape(1, E),
                   p["ln2_w"].reshape(1, E), p["ln2_b"].reshape(1, E),
                   p["fc2_b"].reshape(1, E)]
        w1_rows.append(p["fc1_w"].T)                                 # (E, HID)
        b1_rows.append(p["fc1_b"].reshape(1, HID))
    w32_rows.append(head["w1"].T)                                    # hw1
    v_rows += [head["ln_w"].reshape(1, E), head["ln_b"].reshape(1, E),
               head["b1"].reshape(1, E)]

    hw2_pad = jnp.zeros((E, OUT_PAD), jnp.float32).at[:, :NC].set(head["w2"].T)
    hb2_pad = jnp.zeros((1, OUT_PAD), jnp.float32).at[:, :NC].set(
        head["b2"].reshape(1, NC))
    bias_block = jnp.concatenate(
        b1_rows + [hb2_pad,
                   jnp.zeros((8 - NUM_ENCODERS - 1, OUT_PAD), jnp.float32)],
        axis=0)                                                      # rows 0..8
    w128 = jnp.concatenate([bias_block] + w1_rows + [hw2_pad], axis=0)
    w32 = jnp.concatenate(w32_rows, axis=0)
    vslab = jnp.concatenate(v_rows, axis=0)
    assert w32.shape == (W32_ROWS, E)
    assert w128.shape == (W128_ROWS, OUT_PAD)
    assert vslab.shape == (V_ROWS, E)

    # Patch-embedding bias + positional embeddings folded into one add.
    posadd = jnp.tile(emb["pos"][1:SEQ] + emb["b"].reshape(1, E), (B, 1))

    # Constant masks (host-built; no in-kernel iota / integer div needed).
    BSP = B * SP
    r = np.arange(H * BSP)[:, None]
    c = np.arange(E)[None, :]
    hmask = ((r // BSP) == (c // HD)).astype(np.float32)             # (H*BSP, E)
    lmask = np.zeros((H, E), np.float32)
    for h in range(H):
        lmask[h, h * HD:(h + 1) * HD] = 1.0
    mask32 = jnp.asarray(np.concatenate([hmask, lmask], axis=0))     # (H*BSP+H, E)

    q_img = (np.arange(H * BSP)[:, None] % BSP) // SP                # query image
    kcol = np.arange(BSP)[None, :]
    k_img, k_pos = kcol // SP, kcol % SP
    valid = (q_img == k_img) & (k_pos < SEQ)                         # block-diag + pad
    abias = jnp.asarray(np.where(valid, 0.0, NEG_INF).astype(np.float32))

    return dict(wp=emb["w"].T, posadd=posadd, w32=w32, w128=w128,
                vslab=vslab, mask32=mask32, abias=abias)


def vit_forward(x, prep):
    B = x.shape[0]
    assert prep["posadd"].shape[0] == B * NUM_PATCHES, "prep built for a different batch"
    patches = img_to_patches(x).reshape(B * NUM_PATCHES, PATCH_DIM)
    inputs = [patches, prep["wp"], prep["posadd"], prep["w32"], prep["w128"],
              prep["vslab"], prep["mask32"], prep["abias"]]
    vmem = pl.BlockSpec(memory_space=pltpu.MemorySpace.VMEM)
    out = pl.pallas_call(
        vit_kernel,
        out_shape=jax.ShapeDtypeStruct((B, OUT_PAD), jnp.float32),
        in_specs=[vmem] * len(inputs),
        out_specs=vmem,
        scratch_shapes=[pltpu.VMEM((B * SEQ_PAD, EMBED_DIM), jnp.float32)],
    )(*inputs)
    return out[:, :NUM_CLASSES]


# ---- deterministic parameter init (PyTorch weight conventions) ---------------
def init_params(key):
    ks = iter(jax.random.split(key, 64))

    def nrm(shape, scale=0.02):
        return scale * jax.random.normal(next(ks), shape, jnp.float32)

    embed = dict(
        w=nrm((EMBED_DIM, PATCH_DIM)),
        b=nrm((1, EMBED_DIM)),
        cls=jax.random.normal(next(ks), (1, EMBED_DIM), jnp.float32),
        pos=jax.random.normal(next(ks), (SEQ, EMBED_DIM), jnp.float32),
    )
    encoders = []
    for _ in range(NUM_ENCODERS):
        encoders.append(dict(
            ln1_w=jnp.ones((1, EMBED_DIM), jnp.float32) + nrm((1, EMBED_DIM)),
            ln1_b=nrm((1, EMBED_DIM)),
            qkv_w=nrm((3 * EMBED_DIM, EMBED_DIM)),
            qkv_b=nrm((1, 3 * EMBED_DIM)),
            out_w=nrm((EMBED_DIM, EMBED_DIM)),
            out_b=nrm((1, EMBED_DIM)),
            ln2_w=jnp.ones((1, EMBED_DIM), jnp.float32) + nrm((1, EMBED_DIM)),
            ln2_b=nrm((1, EMBED_DIM)),
            fc1_w=nrm((4 * EMBED_DIM, EMBED_DIM)),
            fc1_b=nrm((1, 4 * EMBED_DIM)),
            fc2_w=nrm((EMBED_DIM, 4 * EMBED_DIM)),
            fc2_b=nrm((1, EMBED_DIM)),
        ))
    head = dict(
        ln_w=jnp.ones((1, EMBED_DIM), jnp.float32) + nrm((1, EMBED_DIM)),
        ln_b=nrm((1, EMBED_DIM)),
        w1=nrm((EMBED_DIM, EMBED_DIM)),
        b1=nrm((1, EMBED_DIM)),
        w2=nrm((NUM_CLASSES, EMBED_DIM)),
        b2=nrm((1, NUM_CLASSES)),
    )
    return dict(embed=embed, encoders=encoders, head=head)


# ---- pure-JAX reference (mirrors the PyTorch forward, cls-first ordering) ----
def ref_encoder(x, p):
    B, S, _ = x.shape
    y = _layernorm(x, p["ln1_w"], p["ln1_b"])
    qkv = y @ p["qkv_w"].T + p["qkv_b"]
    q, k, v = jnp.split(qkv, 3, axis=-1)
    qh = q.reshape(B, S, NUM_HEADS, HEAD_DIM).transpose(0, 2, 1, 3)
    kh = k.reshape(B, S, NUM_HEADS, HEAD_DIM).transpose(0, 2, 1, 3)
    vh = v.reshape(B, S, NUM_HEADS, HEAD_DIM).transpose(0, 2, 1, 3)
    s = jnp.einsum("bhqd,bhkd->bhqk", qh, kh) / math.sqrt(HEAD_DIM)
    a = jax.nn.softmax(s, axis=-1)
    o = jnp.einsum("bhqk,bhkd->bhqd", a, vh).transpose(0, 2, 1, 3).reshape(B, S, EMBED_DIM)
    mha = o @ p["out_w"].T + p["out_b"]
    r1 = x + mha
    z = _layernorm(r1, p["ln2_w"], p["ln2_b"])
    h = _gelu(z @ p["fc1_w"].T + p["fc1_b"])
    h = h @ p["fc2_w"].T + p["fc2_b"]
    return r1 + h


def reference_forward(x, params):
    B = x.shape[0]
    patches = img_to_patches(x)
    y = patches @ params["embed"]["w"].T + params["embed"]["b"]
    cls = jnp.broadcast_to(params["embed"]["cls"][None], (B, 1, EMBED_DIM))
    y = jnp.concatenate([cls, y], axis=1) + params["embed"]["pos"][None]
    for p in params["encoders"]:
        y = ref_encoder(y, p)
    cls_tok = y[:, 0]
    h = _layernorm(cls_tok, params["head"]["ln_w"], params["head"]["ln_b"])
    h = h @ params["head"]["w1"].T + params["head"]["b1"]
    return h @ params["head"]["w2"].T + params["head"]["b2"]


# ---- main --------------------------------------------------------------------
if __name__ == "__main__":
    key = jax.random.PRNGKey(0)
    kx, kp = jax.random.split(key)
    x = jax.random.normal(kx, (2, IMG_CHANNELS, IMG_SIZE, IMG_SIZE), jnp.float32)
    params = init_params(kp)
    prep = prepare_params(params, batch_size=x.shape[0])   # one-time slab packing

    out = vit_forward(x, prep)
    out = jax.block_until_ready(out)
    assert out.shape == (2, NUM_CLASSES) and out.dtype == jnp.float32

    ref = reference_forward(x, params)
    np.testing.assert_allclose(np.asarray(out), np.asarray(ref), rtol=5e-2, atol=5e-2)

    print("KERNEL_OK")
</pallas_src>

<mosaic_0001>
module attributes {stable_mosaic.version = 11 : i64} {
  func.func @vit_kernel(%arg0: memref<32x64xf32, #tpu.memory_space<vmem>>, %arg1: memref<64x32xf32, #tpu.memory_space<vmem>>, %arg2: memref<32x32xf32, #tpu.memory_space<vmem>>, %arg3: memref<544x32xf32, #tpu.memory_space<vmem>>, %arg4: memref<104x128xf32, #tpu.memory_space<vmem>>, %arg5: memref<22x32xf32, #tpu.memory_space<vmem>>, %arg6: memref<196x32xf32, #tpu.memory_space<vmem>>, %arg7: memref<192x48xf32, #tpu.memory_space<vmem>>, %arg8: memref<2x128xf32, #tpu.memory_space<vmem>>, %arg9: memref<48x32xf32, #tpu.memory_space<vmem>>) attributes {dimension_semantics = [], scalar_prefetch = 0 : i64, scratch_operands = 1 : i64, tpu.core_type = #tpu.core_type<tc>} {
    %c0 = arith.constant 0 : index
    %c0_0 = arith.constant 0 : index
    %0 = vector.load %arg5[%c0, %c0_0] : memref<22x32xf32, #tpu.memory_space<vmem>>, vector<22x32xf32>
    %c0_1 = arith.constant 0 : index
    %c0_2 = arith.constant 0 : index
    %1 = vector.load %arg4[%c0_1, %c0_2] : memref<104x128xf32, #tpu.memory_space<vmem>>, vector<8x128xf32>
    %c0_3 = arith.constant 0 : index
    %c0_4 = arith.constant 0 : index
    %2 = vector.load %arg0[%c0_3, %c0_4] : memref<32x64xf32, #tpu.memory_space<vmem>>, vector<32x64xf32>
    %c0_5 = arith.constant 0 : index
    %c0_6 = arith.constant 0 : index
    %3 = vector.load %arg1[%c0_5, %c0_6] : memref<64x32xf32, #tpu.memory_space<vmem>>, vector<64x32xf32>
    %cst = arith.constant dense<0.000000e+00> : vector<32x32xf32>
    %4 = tpu.matmul %2, %3, %cst {dimension_numbers = #tpu.dot_dimension_numbers<[1], [0], [0], [1], [0, 0, 1, 1], [], []>} : vector<32x64xf32>, vector<64x32xf32>, vector<32x32xf32> -> vector<32x32xf32>
    %c0_7 = arith.constant 0 : index
    %c0_8 = arith.constant 0 : index
    %5 = vector.load %arg2[%c0_7, %c0_8] : memref<32x32xf32, #tpu.memory_space<vmem>>, vector<32x32xf32>
    %6 = arith.addf %4, %5 : vector<32x32xf32>
    %7 = vector.extract_strided_slice %6 {offsets = [0, 0], sizes = [16, 32], strides = [1, 1]} : vector<32x32xf32> to vector<16x32xf32>
    %c0_9 = arith.constant 0 : index
    %c0_10 = arith.constant 0 : index
    %8 = vector.load %arg9[%c0_9, %c0_10] : memref<48x32xf32, #tpu.memory_space<vmem>>, vector<16x32xf32>
    tpu.vector_store %arg9[%c0_9, %c0_10], %7 {strides = array<i32>} : memref<48x32xf32, #tpu.memory_space<vmem>>, vector<16x32xf32>,
    %cst_11 = arith.constant 0.000000e+00 : f32
    %9 = vector.broadcast %cst_11 : f32 to vector<8x32xf32>
    %c16 = arith.constant 16 : index
    %c0_12 = arith.constant 0 : index
    %10 = vector.load %arg9[%c16, %c0_12] : memref<48x32xf32, #tpu.memory_space<vmem>>, vector<8x32xf32>
    tpu.vector_store %arg9[%c16, %c0_12], %9 {strides = array<i32>} : memref<48x32xf32, #tpu.memory_space<vmem>>, vector<8x32xf32>,
    %11 = vector.extract_strided_slice %0 {offsets = [0, 0], sizes = [1, 32], strides = [1, 1]} : vector<22x32xf32> to vector<1x32xf32>
    %c16_13 = arith.constant 16 : index
    %c0_14 = arith.constant 0 : index
    %12 = vector.load %arg9[%c16_13, %c0_14] : memref<48x32xf32, #tpu.memory_space<vmem>>, vector<1x32xf32>
    tpu.vector_store %arg9[%c16_13, %c0_14], %11 {strides = array<i32>} : memref<48x32xf32, #tpu.memory_space<vmem>>, vector<1x32xf32>,
    %13 = vector.extract_strided_slice %6 {offsets = [16, 0], sizes = [16, 32], strides = [1, 1]} : vector<32x32xf32> to vector<16x32xf32>
    %c24 = arith.constant 24 : index
    %c0_15 = arith.constant 0 : index
    %14 = vector.load %arg9[%c24, %c0_15] : memref<48x32xf32, #tpu.memory_space<vmem>>, vector<16x32xf32>
    tpu.vector_store %arg9[%c24, %c0_15], %13 {strides = array<i32>} : memref<48x32xf32, #tpu.memory_space<vmem>>, vector<16x32xf32>,
    %cst_16 = arith.constant 0.000000e+00 : f32
    %15 = vector.broadcast %cst_16 : f32 to vector<8x32xf32>
    %c40 = arith.constant 40 : index
    %c0_17 = arith.constant 0 : index
    %16 = vector.load %arg9[%c40, %c0_17] : memref<48x32xf32, #tpu.memory_space<vmem>>, vector<8x32xf32>
    tpu.vector_store %arg9[%c40, %c0_17], %15 {strides = array<i32>} : memref<48x32xf32, #tpu.memory_space<vmem>>, vector<8x32xf32>,
    %17 = vector.extract_strided_slice %0 {offsets = [0, 0], sizes = [1, 32], strides = [1, 1]} : vector<22x32xf32> to vector<1x32xf32>
    %c40_18 = arith.constant 40 : index
    %c0_19 = arith.constant 0 : index
    %18 = vector.load %arg9[%c40_18, %c0_19] : memref<48x32xf32, #tpu.memory_space<vmem>>, vector<1x32xf32>
    tpu.vector_store %arg9[%c40_18, %c0_19], %17 {strides = array<i32>} : memref<48x32xf32, #tpu.memory_space<vmem>>, vector<1x32xf32>,
    %c0_20 = arith.constant 0 : index
    %c0_21 = arith.constant 0 : index
    %19 = vector.load %arg9[%c0_20, %c0_21] : memref<48x32xf32, #tpu.memory_space<vmem>>, vector<48x32xf32>
    %c0_22 = arith.constant 0 : index
    %c0_23 = arith.constant 0 : index
    %20 = vector.load %arg6[%c0_22, %c0_23] : memref<196x32xf32, #tpu.memory_space<vmem>>, vector<192x32xf32>
    %c192 = arith.constant 192 : index
    %c0_24 = arith.constant 0 : index
    %21 = vector.load %arg6[%c192, %c0_24] : memref<196x32xf32, #tpu.memory_space<vmem>>, vector<4x32xf32>
    %c0_25 = arith.constant 0 : index
    %c0_26 = arith.constant 0 : index
    %22 = vector.load %arg7[%c0_25, %c0_26] : memref<192x48xf32, #tpu.memory_space<vmem>>, vector<192x48xf32>
    %23 = vector.extract_strided_slice %0 {offsets = [1, 0], sizes = [1, 32], strides = [1, 1]} : vector<22x32xf32> to vector<1x32xf32>
    %24 = vector.extract_strided_slice %0 {offsets = [2, 0], sizes = [1, 32], strides = [1, 1]} : vector<22x32xf32> to vector<1x32xf32>
    %cst_27 = arith.constant dense<0.000000e+00> : vector<48xf32>
    %25 = vector.multi_reduction <add>, %19, %cst_27 [1] : vector<48x32xf32> to vector<48xf32>
    %26 = vector.shape_cast %25 : vector<48xf32> to vector<48x1xf32>
    %cst_28 = arith.constant 3.200000e+01 : f32
    %27 = vector.broadcast %cst_28 : f32 to vector<48x1xf32>
    %28 = arith.divf %26, %27 : vector<48x1xf32>
    %29 = vector.broadcast %28 : vector<48x1xf32> to vector<48x32xf32>
    %30 = arith.subf %19, %29 : vector<48x32xf32>
    %31 = vector.broadcast %28 : vector<48x1xf32> to vector<48x32xf32>
    %32 = arith.subf %19, %31 : vector<48x32xf32>
    %33 = arith.mulf %30, %32 : vector<48x32xf32>
    %cst_29 = arith.constant dense<0.000000e+00> : vector<48xf32>
    %34 = vector.multi_reduction <add>, %33, %cst_29 [1] : vector<48x32xf32> to vector<48xf32>
    %35 = vector.shape_cast %34 : vector<48xf32> to vector<48x1xf32>
    %cst_30 = arith.constant 3.200000e+01 : f32
    %36 = vector.broadcast %cst_30 : f32 to vector<48x1xf32>
    %37 = arith.divf %35, %36 : vector<48x1xf32>
    %38 = vector.broadcast %28 : vector<48x1xf32> to vector<48x32xf32>
    %39 = arith.subf %19, %38 : vector<48x32xf32>
    %cst_31 = arith.constant 9.99999974E-6 : f32
    %40 = vector.broadcast %cst_31 : f32 to vector<48x1xf32>
    %41 = arith.addf %37, %40 : vector<48x1xf32>
    %42 = math.rsqrt %41 : vector<48x1xf32>
    %43 = vector.broadcast %42 : vector<48x1xf32> to vector<48x32xf32>
    %44 = arith.mulf %39, %43 : vector<48x32xf32>
    %45 = vector.broadcast %23 : vector<1x32xf32> to vector<48x32xf32>
    %46 = arith.mulf %44, %45 : vector<48x32xf32>
    %47 = vector.broadcast %24 : vector<1x32xf32> to vector<48x32xf32>
    %48 = arith.addf %46, %47 : vector<48x32xf32>
    %c0_32 = arith.constant 0 : index
    %c0_33 = arith.constant 0 : index
    %49 = vector.load %arg3[%c0_32, %c0_33] : memref<544x32xf32, #tpu.memory_space<vmem>>, vector<32x32xf32>
    %cst_34 = arith.constant dense<0.000000e+00> : vector<48x32xf32>
    %50 = tpu.matmul %48, %49, %cst_34 {dimension_numbers = #tpu.dot_dimension_numbers<[1], [0], [0], [1], [0, 0, 1, 1], [], []>} : vector<48x32xf32>, vector<32x32xf32>, vector<48x32xf32> -> vector<48x32xf32>
    %51 = vector.extract_strided_slice %0 {offsets = [3, 0], sizes = [1, 32], strides = [1, 1]} : vector<22x32xf32> to vector<1x32xf32>
    %52 = vector.broadcast %51 : vector<1x32xf32> to vector<48x32xf32>
    %53 = arith.addf %50, %52 : vector<48x32xf32>
    %c32 = arith.constant 32 : index
    %c0_35 = arith.constant 0 : index
    %54 = vector.load %arg3[%c32, %c0_35] : memref<544x32xf32, #tpu.memory_space<vmem>>, vector<32x32xf32>
    %cst_36 = arith.constant dense<0.000000e+00> : vector<48x32xf32>
    %55 = tpu.matmul %48, %54, %cst_36 {dimension_numbers = #tpu.dot_dimension_numbers<[1], [0], [0], [1], [0, 0, 1, 1], [], []>} : vector<48x32xf32>, vector<32x32xf32>, vector<48x32xf32> -> vector<48x32xf32>
    %56 = vector.extract_strided_slice %0 {offsets = [4, 0], sizes = [1, 32], strides = [1, 1]} : vector<22x32xf32> to vector<1x32xf32>
    %57 = vector.broadcast %56 : vector<1x32xf32> to vector<48x32xf32>
    %58 = arith.addf %55, %57 : vector<48x32xf32>
    %c64 = arith.constant 64 : index
    %c0_37 = arith.constant 0 : index
    %59 = vector.load %arg3[%c64, %c0_37] : memref<544x32xf32, #tpu.memory_space<vmem>>, vector<32x32xf32>
    %cst_38 = arith.constant dense<0.000000e+00> : vector<48x32xf32>
    %60 = tpu.matmul %48, %59, %cst_38 {dimension_numbers = #tpu.dot_dimension_numbers<[1], [0], [0], [1], [0, 0, 1, 1], [], []>} : vector<48x32xf32>, vector<32x32xf32>, vector<48x32xf32> -> vector<48x32xf32>
    %61 = vector.extract_strided_slice %0 {offsets = [5, 0], sizes = [1, 32], strides = [1, 1]} : vector<22x32xf32> to vector<1x32xf32>
    %62 = vector.broadcast %61 : vector<1x32xf32> to vector<48x32xf32>
    %63 = arith.addf %60, %62 : vector<48x32xf32>
    %64 = tpu.concatenate %53, %53, %53, %53 in 0 : vector<48x32xf32>, vector<48x32xf32>, vector<48x32xf32>, vector<48x32xf32> -> vector<192x32xf32>
    %65 = arith.mulf %64, %20 : vector<192x32xf32>
    %cst_39 = arith.constant dense<0.000000e+00> : vector<192x48xf32>
    %66 = tpu.matmul %65, %58, %cst_39 {dimension_numbers = #tpu.dot_dimension_numbers<[1], [1], [0], [0], [0, 0, 1, 0], [], []>} : vector<192x32xf32>, vector<48x32xf32>, vector<192x48xf32> -> vector<192x48xf32>
    %67 = arith.addf %66, %22 : vector<192x48xf32>
    %cst_40 = arith.constant dense<0xFF800000> : vector<192xf32>
    %68 = vector.multi_reduction <maximumf>, %67, %cst_40 [1] : vector<192x48xf32> to vector<192xf32>
    %69 = vector.shape_cast %68 : vector<192xf32> to vector<192x1xf32>
    %70 = vector.broadcast %69 : vector<192x1xf32> to vector<192x48xf32>
    %71 = arith.subf %67, %70 : vector<192x48xf32>
    %72 = math.exp %71 : vector<192x48xf32>
    %cst_41 = arith.constant dense<0.000000e+00> : vector<192xf32>
    %73 = vector.multi_reduction <add>, %72, %cst_41 [1] : vector<192x48xf32> to vector<192xf32>
    %74 = vector.shape_cast %73 : vector<192xf32> to vector<192x1xf32>
    %75 = tpu.reciprocal %74 {approx = true} : vector<192x1xf32> -> vector<192x1xf32>
    %76 = vector.broadcast %75 : vector<192x1xf32> to vector<192x48xf32>
    %77 = arith.mulf %72, %76 : vector<192x48xf32>
    %cst_42 = arith.constant dense<0.000000e+00> : vector<192x32xf32>
    %78 = tpu.matmul %77, %63, %cst_42 {dimension_numbers = #tpu.dot_dimension_numbers<[1], [0], [0], [1], [0, 0, 1, 1], [], []>} : vector<192x48xf32>, vector<48x32xf32>, vector<192x32xf32> -> vector<192x32xf32>
    %79 = vector.extract_strided_slice %78 {offsets = [0, 0], sizes = [48, 32], strides = [1, 1]} : vector<192x32xf32> to vector<48x32xf32>
    %80 = vector.extract_strided_slice %21 {offsets = [0, 0], sizes = [1, 32], strides = [1, 1]} : vector<4x32xf32> to vector<1x32xf32>
    %81 = vector.broadcast %80 : vector<1x32xf32> to vector<48x32xf32>
    %82 = arith.mulf %79, %81 : vector<48x32xf32>
    %83 = vector.extract_strided_slice %78 {offsets = [48, 0], sizes = [48, 32], strides = [1, 1]} : vector<192x32xf32> to vector<48x32xf32>
    %84 = vector.extract_strided_slice %21 {offsets = [1, 0], sizes = [1, 32], strides = [1, 1]} : vector<4x32xf32> to vector<1x32xf32>
    %85 = vector.broadcast %84 : vector<1x32xf32> to vector<48x32xf32>
    %86 = arith.mulf %83, %85 : vector<48x32xf32>
    %87 = arith.addf %82, %86 : vector<48x32xf32>
    %88 = vector.extract_strided_slice %78 {offsets = [96, 0], sizes = [48, 32], strides = [1, 1]} : vector<192x32xf32> to vector<48x32xf32>
    %89 = vector.extract_strided_slice %21 {offsets = [2, 0], sizes = [1, 32], strides = [1, 1]} : vector<4x32xf32> to vector<1x32xf32>
    %90 = vector.broadcast %89 : vector<1x32xf32> to vector<48x32xf32>
    %91 = arith.mulf %88, %90 : vector<48x32xf32>
    %92 = arith.addf %87, %91 : vector<48x32xf32>
    %93 = vector.extract_strided_slice %78 {offsets = [144, 0], sizes = [48, 32], strides = [1, 1]} : vector<192x32xf32> to vector<48x32xf32>
    %94 = vector.extract_strided_slice %21 {offsets = [3, 0], sizes = [1, 32], strides = [1, 1]} : vector<4x32xf32> to vector<1x32xf32>
    %95 = vector.broadcast %94 : vector<1x32xf32> to vector<48x32xf32>
    %96 = arith.mulf %93, %95 : vector<48x32xf32>
    %97 = arith.addf %92, %96 : vector<48x32xf32>
    %c96 = arith.constant 96 : index
    %c0_43 = arith.constant 0 : index
    %98 = vector.load %arg3[%c96, %c0_43] : memref<544x32xf32, #tpu.memory_space<vmem>>, vector<32x32xf32>
    %cst_44 = arith.constant dense<0.000000e+00> : vector<48x32xf32>
    %99 = tpu.matmul %97, %98, %cst_44 {dimension_numbers = #tpu.dot_dimension_numbers<[1], [0], [0], [1], [0, 0, 1, 1], [], []>} : vector<48x32xf32>, vector<32x32xf32>, vector<48x32xf32> -> vector<48x32xf32>
    %100 = vector.extract_strided_slice %0 {offsets = [6, 0], sizes = [1, 32], strides = [1, 1]} : vector<22x32xf32> to vector<1x32xf32>
    %101 = vector.broadcast %100 : vector<1x32xf32> to vector<48x32xf32>
    %102 = arith.addf %99, %101 : vector<48x32xf32>
    %103 = arith.addf %19, %102 : vector<48x32xf32>
    %104 = vector.extract_strided_slice %0 {offsets = [7, 0], sizes = [1, 32], strides = [1, 1]} : vector<22x32xf32> to vector<1x32xf32>
    %105 = vector.extract_strided_slice %0 {offsets = [8, 0], sizes = [1, 32], strides = [1, 1]} : vector<22x32xf32> to vector<1x32xf32>
    %cst_45 = arith.constant dense<0.000000e+00> : vector<48xf32>
    %106 = vector.multi_reduction <add>, %103, %cst_45 [1] : vector<48x32xf32> to vector<48xf32>
    %107 = vector.shape_cast %106 : vector<48xf32> to vector<48x1xf32>
    %cst_46 = arith.constant 3.200000e+01 : f32
    %108 = vector.broadcast %cst_46 : f32 to vector<48x1xf32>
    %109 = arith.divf %107, %108 : vector<48x1xf32>
    %110 = vector.broadcast %109 : vector<48x1xf32> to vector<48x32xf32>
    %111 = arith.subf %103, %110 : vector<48x32xf32>
    %112 = vector.broadcast %109 : vector<48x1xf32> to vector<48x32xf32>
    %113 = arith.subf %103, %112 : vector<48x32xf32>
    %114 = arith.mulf %111, %113 : vector<48x32xf32>
    %cst_47 = arith.constant dense<0.000000e+00> : vector<48xf32>
    %115 = vector.multi_reduction <add>, %114, %cst_47 [1] : vector<48x32xf32> to vector<48xf32>
    %116 = vector.shape_cast %115 : vector<48xf32> to vector<48x1xf32>
    %cst_48 = arith.constant 3.200000e+01 : f32
    %117 = vector.broadcast %cst_48 : f32 to vector<48x1xf32>
    %118 = arith.divf %116, %117 : vector<48x1xf32>
    %119 = vector.broadcast %109 : vector<48x1xf32> to vector<48x32xf32>
    %120 = arith.subf %103, %119 : vector<48x32xf32>
    %cst_49 = arith.constant 9.99999974E-6 : f32
    %121 = vector.broadcast %cst_49 : f32 to vector<48x1xf32>
    %122 = arith.addf %118, %121 : vector<48x1xf32>
    %123 = math.rsqrt %122 : vector<48x1xf32>
    %124 = vector.broadcast %123 : vector<48x1xf32> to vector<48x32xf32>
    %125 = arith.mulf %120, %124 : vector<48x32xf32>
    %126 = vector.broadcast %104 : vector<1x32xf32> to vector<48x32xf32>
    %127 = arith.mulf %125, %126 : vector<48x32xf32>
    %128 = vector.broadcast %105 : vector<1x32xf32> to vector<48x32xf32>
    %129 = arith.addf %127, %128 : vector<48x32xf32>
    %c8 = arith.constant 8 : index
    %c0_50 = arith.constant 0 : index
    %130 = vector.load %arg4[%c8, %c0_50] : memref<104x128xf32, #tpu.memory_space<vmem>>, vector<32x128xf32>
    %cst_51 = arith.constant dense<0.000000e+00> : vector<48x128xf32>
    %131 = tpu.matmul %129, %130, %cst_51 {dimension_numbers = #tpu.dot_dimension_numbers<[1], [0], [0], [1], [0, 0, 1, 1], [], []>} : vector<48x32xf32>, vector<32x128xf32>, vector<48x128xf32> -> vector<48x128xf32>
    %132 = vector.extract_strided_slice %1 {offsets = [0, 0], sizes = [1, 128], strides = [1, 1]} : vector<8x128xf32> to vector<1x128xf32>
    %133 = vector.broadcast %132 : vector<1x128xf32> to vector<48x128xf32>
    %134 = arith.addf %131, %133 : vector<48x128xf32>
    %cst_52 = arith.constant 5.000000e-01 : f32
    %135 = vector.broadcast %cst_52 : f32 to vector<48x128xf32>
    %136 = arith.mulf %135, %134 : vector<48x128xf32>
    %cst_53 = arith.constant 0.707106769 : f32
    %137 = vector.broadcast %cst_53 : f32 to vector<48x128xf32>
    %138 = arith.mulf %134, %137 : vector<48x128xf32>
    %cst_54 = arith.constant 0.000000e+00 : f32
    %139 = vector.broadcast %cst_54 : f32 to vector<48x128xf32>
    %140 = arith.cmpf oge, %138, %139 : vector<48x128xf32>
    %cst_55 = arith.constant 1.000000e+00 : f32
    %cst_56 = arith.constant -1.000000e+00 : f32
    %141 = vector.broadcast %cst_55 : f32 to vector<48x128xf32>
    %142 = vector.broadcast %cst_56 : f32 to vector<48x128xf32>
    %143 = arith.select %140, %141, %142 : vector<48x128xi1>, vector<48x128xf32>
    %144 = math.absf %138 : vector<48x128xf32>
    %cst_57 = arith.constant 0.327591091 : f32
    %145 = vector.broadcast %cst_57 : f32 to vector<48x128xf32>
    %146 = arith.mulf %145, %144 : vector<48x128xf32>
    %cst_58 = arith.constant 1.000000e+00 : f32
    %147 = vector.broadcast %cst_58 : f32 to vector<48x128xf32>
    %148 = arith.addf %147, %146 : vector<48x128xf32>
    %149 = tpu.reciprocal %148 {approx = true} : vector<48x128xf32> -> vector<48x128xf32>
    %cst_59 = arith.constant 1.06140542 : f32
    %150 = vector.broadcast %cst_59 : f32 to vector<48x128xf32>
    %151 = arith.mulf %150, %149 : vector<48x128xf32>
    %cst_60 = arith.constant -1.45315206 : f32
    %152 = vector.broadcast %cst_60 : f32 to vector<48x128xf32>
    %153 = arith.addf %151, %152 : vector<48x128xf32>
    %154 = arith.mulf %153, %149 : vector<48x128xf32>
    %cst_61 = arith.constant 1.42141378 : f32
    %155 = vector.broadcast %cst_61 : f32 to vector<48x128xf32>
    %156 = arith.addf %154, %155 : vector<48x128xf32>
    %157 = arith.mulf %156, %149 : vector<48x128xf32>
    %cst_62 = arith.constant -0.284496725 : f32
    %158 = vector.broadcast %cst_62 : f32 to vector<48x128xf32>
    %159 = arith.addf %157, %158 : vector<48x128xf32>
    %160 = arith.mulf %159, %149 : vector<48x128xf32>
    %cst_63 = arith.constant 0.254829586 : f32
    %161 = vector.broadcast %cst_63 : f32 to vector<48x128xf32>
    %162 = arith.addf %160, %161 : vector<48x128xf32>
    %163 = arith.mulf %162, %149 : vector<48x128xf32>
    %cst_64 = arith.constant 0.000000e+00 : f32
    %164 = vector.broadcast %cst_64 : f32 to vector<48x128xf32>
    %165 = arith.subf %164, %144 : vector<48x128xf32>
    %166 = arith.mulf %165, %144 : vector<48x128xf32>
    %167 = math.exp %166 : vector<48x128xf32>
    %168 = arith.mulf %163, %167 : vector<48x128xf32>
    %cst_65 = arith.constant 1.000000e+00 : f32
    %169 = vector.broadcast %cst_65 : f32 to vector<48x128xf32>
    %170 = arith.subf %169, %168 : vector<48x128xf32>
    %171 = arith.mulf %143, %170 : vector<48x128xf32>
    %cst_66 = arith.constant 1.000000e+00 : f32
    %172 = vector.broadcast %cst_66 : f32 to vector<48x128xf32>
    %173 = arith.addf %172, %171 : vector<48x128xf32>
    %174 = arith.mulf %136, %173 : vector<48x128xf32>
    %c128 = arith.constant 128 : index
    %c0_67 = arith.constant 0 : index
    %175 = vector.load %arg3[%c128, %c0_67] : memref<544x32xf32, #tpu.memory_space<vmem>>, vector<128x32xf32>
    %cst_68 = arith.constant dense<0.000000e+00> : vector<48x32xf32>
    %176 = tpu.matmul %174, %175, %cst_68 {dimension_numbers = #tpu.dot_dimension_numbers<[1], [0], [0], [1], [0, 0, 1, 1], [], []>} : vector<48x128xf32>, vector<128x32xf32>, vector<48x32xf32> -> vector<48x32xf32>
    %177 = vector.extract_strided_slice %0 {offsets = [9, 0], sizes = [1, 32], strides = [1, 1]} : vector<22x32xf32> to vector<1x32xf32>
    %178 = vector.broadcast %177 : vector<1x32xf32> to vector<48x32xf32>
    %179 = arith.addf %176, %178 : vector<48x32xf32>
    %180 = arith.addf %103, %179 : vector<48x32xf32>
    %181 = vector.extract_strided_slice %0 {offsets = [10, 0], sizes = [1, 32], strides = [1, 1]} : vector<22x32xf32> to vector<1x32xf32>
    %182 = vector.extract_strided_slice %0 {offsets = [11, 0], sizes = [1, 32], strides = [1, 1]} : vector<22x32xf32> to vector<1x32xf32>
    %cst_69 = arith.constant dense<0.000000e+00> : vector<48xf32>
    %183 = vector.multi_reduction <add>, %180, %cst_69 [1] : vector<48x32xf32> to vector<48xf32>
    %184 = vector.shape_cast %183 : vector<48xf32> to vector<48x1xf32>
    %cst_70 = arith.constant 3.200000e+01 : f32
    %185 = vector.broadcast %cst_70 : f32 to vector<48x1xf32>
    %186 = arith.divf %184, %185 : vector<48x1xf32>
    %187 = vector.broadcast %186 : vector<48x1xf32> to vector<48x32xf32>
    %188 = arith.subf %180, %187 : vector<48x32xf32>
    %189 = vector.broadcast %186 : vector<48x1xf32> to vector<48x32xf32>
    %190 = arith.subf %180, %189 : vector<48x32xf32>
    %191 = arith.mulf %188, %190 : vector<48x32xf32>
    %cst_71 = arith.constant dense<0.000000e+00> : vector<48xf32>
    %192 = vector.multi_reduction <add>, %191, %cst_71 [1] : vector<48x32xf32> to vector<48xf32>
    %193 = vector.shape_cast %192 : vector<48xf32> to vector<48x1xf32>
    %cst_72 = arith.constant 3.200000e+01 : f32
    %194 = vector.broadcast %cst_72 : f32 to vector<48x1xf32>
    %195 = arith.divf %193, %194 : vector<48x1xf32>
    %196 = vector.broadcast %186 : vector<48x1xf32> to vector<48x32xf32>
    %197 = arith.subf %180, %196 : vector<48x32xf32>
    %cst_73 = arith.constant 9.99999974E-6 : f32
    %198 = vector.broadcast %cst_73 : f32 to vector<48x1xf32>
    %199 = arith.addf %195, %198 : vector<48x1xf32>
    %200 = math.rsqrt %199 : vector<48x1xf32>
    %201 = vector.broadcast %200 : vector<48x1xf32> to vector<48x32xf32>
    %202 = arith.mulf %197, %201 : vector<48x32xf32>
    %203 = vector.broadcast %181 : vector<1x32xf32> to vector<48x32xf32>
    %204 = arith.mulf %202, %203 : vector<48x32xf32>
    %205 = vector.broadcast %182 : vector<1x32xf32> to vector<48x32xf32>
    %206 = arith.addf %204, %205 : vector<48x32xf32>
    %c256 = arith.constant 256 : index
    %c0_74 = arith.constant 0 : index
    %207 = vector.load %arg3[%c256, %c0_74] : memref<544x32xf32, #tpu.memory_space<vmem>>, vector<32x32xf32>
    %cst_75 = arith.constant dense<0.000000e+00> : vector<48x32xf32>
    %208 = tpu.matmul %206, %207, %cst_75 {dimension_numbers = #tpu.dot_dimension_numbers<[1], [0], [0], [1], [0, 0, 1, 1], [], []>} : vector<48x32xf32>, vector<32x32xf32>, vector<48x32xf32> -> vector<48x32xf32>
    %209 = vector.extract_strided_slice %0 {offsets = [12, 0], sizes = [1, 32], strides = [1, 1]} : vector<22x32xf32> to vector<1x32xf32>
    %210 = vector.broadcast %209 : vector<1x32xf32> to vector<48x32xf32>
    %211 = arith.addf %208, %210 : vector<48x32xf32>
    %c288 = arith.constant 288 : index
    %c0_76 = arith.constant 0 : index
    %212 = vector.load %arg3[%c288, %c0_76] : memref<544x32xf32, #tpu.memory_space<vmem>>, vector<32x32xf32>
    %cst_77 = arith.constant dense<0.000000e+00> : vector<48x32xf32>
    %213 = tpu.matmul %206, %212, %cst_77 {dimension_numbers = #tpu.dot_dimension_numbers<[1], [0], [0], [1], [0, 0, 1, 1], [], []>} : vector<48x32xf32>, vector<32x32xf32>, vector<48x32xf32> -> vector<48x32xf32>
    %214 = vector.extract_strided_slice %0 {offsets = [13, 0], sizes = [1, 32], strides = [1, 1]} : vector<22x32xf32> to vector<1x32xf32>
    %215 = vector.broadcast %214 : vector<1x32xf32> to vector<48x32xf32>
    %216 = arith.addf %213, %215 : vector<48x32xf32>
    %c320 = arith.constant 320 : index
    %c0_78 = arith.constant 0 : index
    %217 = vector.load %arg3[%c320, %c0_78] : memref<544x32xf32, #tpu.memory_space<vmem>>, vector<32x32xf32>
    %cst_79 = arith.constant dense<0.000000e+00> : vector<48x32xf32>
    %218 = tpu.matmul %206, %217, %cst_79 {dimension_numbers = #tpu.dot_dimension_numbers<[1], [0], [0], [1], [0, 0, 1, 1], [], []>} : vector<48x32xf32>, vector<32x32xf32>, vector<48x32xf32> -> vector<48x32xf32>
    %219 = vector.extract_strided_slice %0 {offsets = [14, 0], sizes = [1, 32], strides = [1, 1]} : vector<22x32xf32> to vector<1x32xf32>
    %220 = vector.broadcast %219 : vector<1x32xf32> to vector<48x32xf32>
    %221 = arith.addf %218, %220 : vector<48x32xf32>
    %222 = tpu.concatenate %211, %211, %211, %211 in 0 : vector<48x32xf32>, vector<48x32xf32>, vector<48x32xf32>, vector<48x32xf32> -> vector<192x32xf32>
    %223 = arith.mulf %222, %20 : vector<192x32xf32>
    %cst_80 = arith.constant dense<0.000000e+00> : vector<192x48xf32>
    %224 = tpu.matmul %223, %216, %cst_80 {dimension_numbers = #tpu.dot_dimension_numbers<[1], [1], [0], [0], [0, 0, 1, 0], [], []>} : vector<192x32xf32>, vector<48x32xf32>, vector<192x48xf32> -> vector<192x48xf32>
    %225 = arith.addf %224, %22 : vector<192x48xf32>
    %cst_81 = arith.constant dense<0xFF800000> : vector<192xf32>
    %226 = vector.multi_reduction <maximumf>, %225, %cst_81 [1] : vector<192x48xf32> to vector<192xf32>
    %227 = vector.shape_cast %226 : vector<192xf32> to vector<192x1xf32>
    %228 = vector.broadcast %227 : vector<192x1xf32> to vector<192x48xf32>
    %229 = arith.subf %225, %228 : vector<192x48xf32>
    %230 = math.exp %229 : vector<192x48xf32>
    %cst_82 = arith.constant dense<0.000000e+00> : vector<192xf32>
    %231 = vector.multi_reduction <add>, %230, %cst_82 [1] : vector<192x48xf32> to vector<192xf32>
    %232 = vector.shape_cast %231 : vector<192xf32> to vector<192x1xf32>
    %233 = tpu.reciprocal %232 {approx = true} : vector<192x1xf32> -> vector<192x1xf32>
    %234 = vector.broadcast %233 : vector<192x1xf32> to vector<192x48xf32>
    %235 = arith.mulf %230, %234 : vector<192x48xf32>
    %cst_83 = arith.constant dense<0.000000e+00> : vector<192x32xf32>
    %236 = tpu.matmul %235, %221, %cst_83 {dimension_numbers = #tpu.dot_dimension_numbers<[1], [0], [0], [1], [0, 0, 1, 1], [], []>} : vector<192x48xf32>, vector<48x32xf32>, vector<192x32xf32> -> vector<192x32xf32>
    %237 = vector.extract_strided_slice %236 {offsets = [0, 0], sizes = [48, 32], strides = [1, 1]} : vector<192x32xf32> to vector<48x32xf32>
    %238 = vector.extract_strided_slice %21 {offsets = [0, 0], sizes = [1, 32], strides = [1, 1]} : vector<4x32xf32> to vector<1x32xf32>
    %239 = vector.broadcast %238 : vector<1x32xf32> to vector<48x32xf32>
    %240 = arith.mulf %237, %239 : vector<48x32xf32>
    %241 = vector.extract_strided_slice %236 {offsets = [48, 0], sizes = [48, 32], strides = [1, 1]} : vector<192x32xf32> to vector<48x32xf32>
    %242 = vector.extract_strided_slice %21 {offsets = [1, 0], sizes = [1, 32], strides = [1, 1]} : vector<4x32xf32> to vector<1x32xf32>
    %243 = vector.broadcast %242 : vector<1x32xf32> to vector<48x32xf32>
    %244 = arith.mulf %241, %243 : vector<48x32xf32>
    %245 = arith.addf %240, %244 : vector<48x32xf32>
    %246 = vector.extract_strided_slice %236 {offsets = [96, 0], sizes = [48, 32], strides = [1, 1]} : vector<192x32xf32> to vector<48x32xf32>
    %247 = vector.extract_strided_slice %21 {offsets = [2, 0], sizes = [1, 32], strides = [1, 1]} : vector<4x32xf32> to vector<1x32xf32>
    %248 = vector.broadcast %247 : vector<1x32xf32> to vector<48x32xf32>
    %249 = arith.mulf %246, %248 : vector<48x32xf32>
    %250 = arith.addf %245, %249 : vector<48x32xf32>
    %251 = vector.extract_strided_slice %236 {offsets = [144, 0], sizes = [48, 32], strides = [1, 1]} : vector<192x32xf32> to vector<48x32xf32>
    %252 = vector.extract_strided_slice %21 {offsets = [3, 0], sizes = [1, 32], strides = [1, 1]} : vector<4x32xf32> to vector<1x32xf32>
    %253 = vector.broadcast %252 : vector<1x32xf32> to vector<48x32xf32>
    %254 = arith.mulf %251, %253 : vector<48x32xf32>
    %255 = arith.addf %250, %254 : vector<48x32xf32>
    %c352 = arith.constant 352 : index
    %c0_84 = arith.constant 0 : index
    %256 = vector.load %arg3[%c352, %c0_84] : memref<544x32xf32, #tpu.memory_space<vmem>>, vector<32x32xf32>
    %cst_85 = arith.constant dense<0.000000e+00> : vector<48x32xf32>
    %257 = tpu.matmul %255, %256, %cst_85 {dimension_numbers = #tpu.dot_dimension_numbers<[1], [0], [0], [1], [0, 0, 1, 1], [], []>} : vector<48x32xf32>, vector<32x32xf32>, vector<48x32xf32> -> vector<48x32xf32>
    %258 = vector.extract_strided_slice %0 {offsets = [15, 0], sizes = [1, 32], strides = [1, 1]} : vector<22x32xf32> to vector<1x32xf32>
    %259 = vector.broadcast %258 : vector<1x32xf32> to vector<48x32xf32>
    %260 = arith.addf %257, %259 : vector<48x32xf32>
    %261 = arith.addf %180, %260 : vector<48x32xf32>
    %262 = vector.extract_strided_slice %0 {offsets = [16, 0], sizes = [1, 32], strides = [1, 1]} : vector<22x32xf32> to vector<1x32xf32>
    %263 = vector.extract_strided_slice %0 {offsets = [17, 0], sizes = [1, 32], strides = [1, 1]} : vector<22x32xf32> to vector<1x32xf32>
    %cst_86 = arith.constant dense<0.000000e+00> : vector<48xf32>
    %264 = vector.multi_reduction <add>, %261, %cst_86 [1] : vector<48x32xf32> to vector<48xf32>
    %265 = vector.shape_cast %264 : vector<48xf32> to vector<48x1xf32>
    %cst_87 = arith.constant 3.200000e+01 : f32
    %266 = vector.broadcast %cst_87 : f32 to vector<48x1xf32>
    %267 = arith.divf %265, %266 : vector<48x1xf32>
    %268 = vector.broadcast %267 : vector<48x1xf32> to vector<48x32xf32>
    %269 = arith.subf %261, %268 : vector<48x32xf32>
    %270 = vector.broadcast %267 : vector<48x1xf32> to vector<48x32xf32>
    %271 = arith.subf %261, %270 : vector<48x32xf32>
    %272 = arith.mulf %269, %271 : vector<48x32xf32>
    %cst_88 = arith.constant dense<0.000000e+00> : vector<48xf32>
    %273 = vector.multi_reduction <add>, %272, %cst_88 [1] : vector<48x32xf32> to vector<48xf32>
    %274 = vector.shape_cast %273 : vector<48xf32> to vector<48x1xf32>
    %cst_89 = arith.constant 3.200000e+01 : f32
    %275 = vector.broadcast %cst_89 : f32 to vector<48x1xf32>
    %276 = arith.divf %274, %275 : vector<48x1xf32>
    %277 = vector.broadcast %267 : vector<48x1xf32> to vector<48x32xf32>
    %278 = arith.subf %261, %277 : vector<48x32xf32>
    %cst_90 = arith.constant 9.99999974E-6 : f32
    %279 = vector.broadcast %cst_90 : f32 to vector<48x1xf32>
    %280 = arith.addf %276, %279 : vector<48x1xf32>
    %281 = math.rsqrt %280 : vector<48x1xf32>
    %282 = vector.broadcast %281 : vector<48x1xf32> to vector<48x32xf32>
    %283 = arith.mulf %278, %282 : vector<48x32xf32>
    %284 = vector.broadcast %262 : vector<1x32xf32> to vector<48x32xf32>
    %285 = arith.mulf %283, %284 : vector<48x32xf32>
    %286 = vector.broadcast %263 : vector<1x32xf32> to vector<48x32xf32>
    %287 = arith.addf %285, %286 : vector<48x32xf32>
    %c40_91 = arith.constant 40 : index
    %c0_92 = arith.constant 0 : index
    %288 = vector.load %arg4[%c40_91, %c0_92] : memref<104x128xf32, #tpu.memory_space<vmem>>, vector<32x128xf32>
    %cst_93 = arith.constant dense<0.000000e+00> : vector<48x128xf32>
    %289 = tpu.matmul %287, %288, %cst_93 {dimension_numbers = #tpu.dot_dimension_numbers<[1], [0], [0], [1], [0, 0, 1, 1], [], []>} : vector<48x32xf32>, vector<32x128xf32>, vector<48x128xf32> -> vector<48x128xf32>
    %290 = vector.extract_strided_slice %1 {offsets = [1, 0], sizes = [1, 128], strides = [1, 1]} : vector<8x128xf32> to vector<1x128xf32>
    %291 = vector.broadcast %290 : vector<1x128xf32> to vector<48x128xf32>
    %292 = arith.addf %289, %291 : vector<48x128xf32>
    %cst_94 = arith.constant 5.000000e-01 : f32
    %293 = vector.broadcast %cst_94 : f32 to vector<48x128xf32>
    %294 = arith.mulf %293, %292 : vector<48x128xf32>
    %cst_95 = arith.constant 0.707106769 : f32
    %295 = vector.broadcast %cst_95 : f32 to vector<48x128xf32>
    %296 = arith.mulf %292, %295 : vector<48x128xf32>
    %cst_96 = arith.constant 0.000000e+00 : f32
    %297 = vector.broadcast %cst_96 : f32 to vector<48x128xf32>
    %298 = arith.cmpf oge, %296, %297 : vector<48x128xf32>
    %cst_97 = arith.constant 1.000000e+00 : f32
    %cst_98 = arith.constant -1.000000e+00 : f32
    %299 = vector.broadcast %cst_97 : f32 to vector<48x128xf32>
    %300 = vector.broadcast %cst_98 : f32 to vector<48x128xf32>
    %301 = arith.select %298, %299, %300 : vector<48x128xi1>, vector<48x128xf32>
    %302 = math.absf %296 : vector<48x128xf32>
    %cst_99 = arith.constant 0.327591091 : f32
    %303 = vector.broadcast %cst_99 : f32 to vector<48x128xf32>
    %304 = arith.mulf %303, %302 : vector<48x128xf32>
    %cst_100 = arith.constant 1.000000e+00 : f32
    %305 = vector.broadcast %cst_100 : f32 to vector<48x128xf32>
    %306 = arith.addf %305, %304 : vector<48x128xf32>
    %307 = tpu.reciprocal %306 {approx = true} : vector<48x128xf32> -> vector<48x128xf32>
    %cst_101 = arith.constant 1.06140542 : f32
    %308 = vector.broadcast %cst_101 : f32 to vector<48x128xf32>
    %309 = arith.mulf %308, %307 : vector<48x128xf32>
    %cst_102 = arith.constant -1.45315206 : f32
    %310 = vector.broadcast %cst_102 : f32 to vector<48x128xf32>
    %311 = arith.addf %309, %310 : vector<48x128xf32>
    %312 = arith.mulf %311, %307 : vector<48x128xf32>
    %cst_103 = arith.constant 1.42141378 : f32
    %313 = vector.broadcast %cst_103 : f32 to vector<48x128xf32>
    %314 = arith.addf %312, %313 : vector<48x128xf32>
    %315 = arith.mulf %314, %307 : vector<48x128xf32>
    %cst_104 = arith.constant -0.284496725 : f32
    %316 = vector.broadcast %cst_104 : f32 to vector<48x128xf32>
    %317 = arith.addf %315, %316 : vector<48x128xf32>
    %318 = arith.mulf %317, %307 : vector<48x128xf32>
    %cst_105 = arith.constant 0.254829586 : f32
    %319 = vector.broadcast %cst_105 : f32 to vector<48x128xf32>
    %320 = arith.addf %318, %319 : vector<48x128xf32>
    %321 = arith.mulf %320, %307 : vector<48x128xf32>
    %cst_106 = arith.constant 0.000000e+00 : f32
    %322 = vector.broadcast %cst_106 : f32 to vector<48x128xf32>
    %323 = arith.subf %322, %302 : vector<48x128xf32>
    %324 = arith.mulf %323, %302 : vector<48x128xf32>
    %325 = math.exp %324 : vector<48x128xf32>
    %326 = arith.mulf %321, %325 : vector<48x128xf32>
    %cst_107 = arith.constant 1.000000e+00 : f32
    %327 = vector.broadcast %cst_107 : f32 to vector<48x128xf32>
    %328 = arith.subf %327, %326 : vector<48x128xf32>
    %329 = arith.mulf %301, %328 : vector<48x128xf32>
    %cst_108 = arith.constant 1.000000e+00 : f32
    %330 = vector.broadcast %cst_108 : f32 to vector<48x128xf32>
    %331 = arith.addf %330, %329 : vector<48x128xf32>
    %332 = arith.mulf %294, %331 : vector<48x128xf32>
    %c384 = arith.constant 384 : index
    %c0_109 = arith.constant 0 : index
    %333 = vector.load %arg3[%c384, %c0_109] : memref<544x32xf32, #tpu.memory_space<vmem>>, vector<128x32xf32>
    %cst_110 = arith.constant dense<0.000000e+00> : vector<48x32xf32>
    %334 = tpu.matmul %332, %333, %cst_110 {dimension_numbers = #tpu.dot_dimension_numbers<[1], [0], [0], [1], [0, 0, 1, 1], [], []>} : vector<48x128xf32>, vector<128x32xf32>, vector<48x32xf32> -> vector<48x32xf32>
    %335 = vector.extract_strided_slice %0 {offsets = [18, 0], sizes = [1, 32], strides = [1, 1]} : vector<22x32xf32> to vector<1x32xf32>
    %336 = vector.broadcast %335 : vector<1x32xf32> to vector<48x32xf32>
    %337 = arith.addf %334, %336 : vector<48x32xf32>
    %338 = arith.addf %261, %337 : vector<48x32xf32>
    %339 = vector.extract_strided_slice %0 {offsets = [19, 0], sizes = [1, 32], strides = [1, 1]} : vector<22x32xf32> to vector<1x32xf32>
    %340 = vector.extract_strided_slice %0 {offsets = [20, 0], sizes = [1, 32], strides = [1, 1]} : vector<22x32xf32> to vector<1x32xf32>
    %cst_111 = arith.constant dense<0.000000e+00> : vector<48xf32>
    %341 = vector.multi_reduction <add>, %338, %cst_111 [1] : vector<48x32xf32> to vector<48xf32>
    %342 = vector.shape_cast %341 : vector<48xf32> to vector<48x1xf32>
    %cst_112 = arith.constant 3.200000e+01 : f32
    %343 = vector.broadcast %cst_112 : f32 to vector<48x1xf32>
    %344 = arith.divf %342, %343 : vector<48x1xf32>
    %345 = vector.broadcast %344 : vector<48x1xf32> to vector<48x32xf32>
    %346 = arith.subf %338, %345 : vector<48x32xf32>
    %347 = vector.broadcast %344 : vector<48x1xf32> to vector<48x32xf32>
    %348 = arith.subf %338, %347 : vector<48x32xf32>
    %349 = arith.mulf %346, %348 : vector<48x32xf32>
    %cst_113 = arith.constant dense<0.000000e+00> : vector<48xf32>
    %350 = vector.multi_reduction <add>, %349, %cst_113 [1] : vector<48x32xf32> to vector<48xf32>
    %351 = vector.shape_cast %350 : vector<48xf32> to vector<48x1xf32>
    %cst_114 = arith.constant 3.200000e+01 : f32
    %352 = vector.broadcast %cst_114 : f32 to vector<48x1xf32>
    %353 = arith.divf %351, %352 : vector<48x1xf32>
    %354 = vector.broadcast %344 : vector<48x1xf32> to vector<48x32xf32>
    %355 = arith.subf %338, %354 : vector<48x32xf32>
    %cst_115 = arith.constant 9.99999974E-6 : f32
    %356 = vector.broadcast %cst_115 : f32 to vector<48x1xf32>
    %357 = arith.addf %353, %356 : vector<48x1xf32>
    %358 = math.rsqrt %357 : vector<48x1xf32>
    %359 = vector.broadcast %358 : vector<48x1xf32> to vector<48x32xf32>
    %360 = arith.mulf %355, %359 : vector<48x32xf32>
    %361 = vector.broadcast %339 : vector<1x32xf32> to vector<48x32xf32>
    %362 = arith.mulf %360, %361 : vector<48x32xf32>
    %363 = vector.broadcast %340 : vector<1x32xf32> to vector<48x32xf32>
    %364 = arith.addf %362, %363 : vector<48x32xf32>
    %c512 = arith.constant 512 : index
    %c0_116 = arith.constant 0 : index
    %365 = vector.load %arg3[%c512, %c0_116] : memref<544x32xf32, #tpu.memory_space<vmem>>, vector<32x32xf32>
    %cst_117 = arith.constant dense<0.000000e+00> : vector<48x32xf32>
    %366 = tpu.matmul %364, %365, %cst_117 {dimension_numbers = #tpu.dot_dimension_numbers<[1], [0], [0], [1], [0, 0, 1, 1], [], []>} : vector<48x32xf32>, vector<32x32xf32>, vector<48x32xf32> -> vector<48x32xf32>
    %367 = vector.extract_strided_slice %0 {offsets = [21, 0], sizes = [1, 32], strides = [1, 1]} : vector<22x32xf32> to vector<1x32xf32>
    %368 = vector.broadcast %367 : vector<1x32xf32> to vector<48x32xf32>
    %369 = arith.addf %366, %368 : vector<48x32xf32>
    %c72 = arith.constant 72 : index
    %c0_118 = arith.constant 0 : index
    %370 = vector.load %arg4[%c72, %c0_118] : memref<104x128xf32, #tpu.memory_space<vmem>>, vector<32x128xf32>
    %cst_119 = arith.constant dense<0.000000e+00> : vector<48x128xf32>
    %371 = tpu.matmul %369, %370, %cst_119 {dimension_numbers = #tpu.dot_dimension_numbers<[1], [0], [0], [1], [0, 0, 1, 1], [], []>} : vector<48x32xf32>, vector<32x128xf32>, vector<48x128xf32> -> vector<48x128xf32>
    %372 = vector.extract_strided_slice %1 {offsets = [2, 0], sizes = [1, 128], strides = [1, 1]} : vector<8x128xf32> to vector<1x128xf32>
    %373 = vector.broadcast %372 : vector<1x128xf32> to vector<48x128xf32>
    %374 = arith.addf %371, %373 : vector<48x128xf32>
    %375 = vector.extract_strided_slice %374 {offsets = [16, 0], sizes = [1, 128], strides = [1, 1]} : vector<48x128xf32> to vector<1x128xf32>
    %c0_120 = arith.constant 0 : index
    %c0_121 = arith.constant 0 : index
    %376 = vector.load %arg8[%c0_120, %c0_121] : memref<2x128xf32, #tpu.memory_space<vmem>>, vector<1x128xf32>
    tpu.vector_store %arg8[%c0_120, %c0_121], %375 {strides = array<i32>} : memref<2x128xf32, #tpu.memory_space<vmem>>, vector<1x128xf32>,
    %377 = vector.extract_strided_slice %374 {offsets = [40, 0], sizes = [1, 128], strides = [1, 1]} : vector<48x128xf32> to vector<1x128xf32>
    %c1 = arith.constant 1 : index
    %c0_122 = arith.constant 0 : index
    %378 = vector.load %arg8[%c1, %c0_122] : memref<2x128xf32, #tpu.memory_space<vmem>>, vector<1x128xf32>
    tpu.vector_store %arg8[%c1, %c0_122], %377 {strides = array<i32>} : memref<2x128xf32, #tpu.memory_space<vmem>>, vector<1x128xf32>,
    return
  }
}

</mosaic_0001>

<bundles_post_ra>
// kernel: tpu_custom_call.1
= control target key start
LH: loop header
LB: loop body
LE: loop exit
PB: predicated region body
PF: predicated region fallthrough
CT: control target
= control target key end

     0   :  { %vm50_vm0 = vcmask 523264   ;;  %s7935_s0 = inlined_call_operand.vmem [shape: f32[32,64], index: 0, kind: input, shape index: {}]   ;;  %s7936_s1 = inlined_call_operand.vmem [shape: f32[64,32], index: 1, kind: input, shape index: {}]   ;;  %s7937_s2 = inlined_call_operand.vmem [shape: f32[32,32], index: 2, kind: input, shape index: {}]   ;;  %s7938_s3 = inlined_call_operand.vmem [shape: f32[544,32], index: 3, kind: input, shape index: {}]   ;;  %s7939_s4 = inlined_call_operand.vmem [shape: f32[104,128], index: 4, kind: input, shape index: {}]   ;;  %s7940_s5 = inlined_call_operand.vmem [shape: f32[22,32], index: 5, kind: input, shape index: {}]   ;;  %s7941_s6 = inlined_call_operand.vmem [shape: f32[196,32], index: 6, kind: input, shape index: {}]   ;;  %s7942_s7 = inlined_call_operand.vmem [shape: f32[192,48], index: 7, kind: input, shape index: {}]   ;;  %s7943_s8 = inlined_call_operand.hbm [shape: f32[2,128], index: 8, kind: output, shape index: {}]  }
   0x1   :  { %v38_v0 = vld [vmem:[%s7936_s1] sm:$0xff]  ;;  %v39_v1 = vld [vmem:[%s7936_s1 + $0x8] sm:$0xff]  ;;  %v40_v2 = vld [vmem:[%s7936_s1 + $0x10] sm:$0xff] }
   0x2   :  { %v5383_v3 = vpack.c.bf16 %v39_v1, %v38_v0  ;;  %v41_v4 = vld [vmem:[%s7936_s1 + $0x18] sm:$0xff]  ;;  %v42_v6 = vld [vmem:[%s7936_s1 + $0x20] sm:$0xff]  ;;  %v43_v7 = vld [vmem:[%s7936_s1 + $0x28] sm:$0xff] }
   0x3   :  { %v5387_v5 = vpack.c.bf16 %v41_v4, %v40_v2  ;;  %v34_v8 = vld [vmem:[%s7935_s0] sm:$0xff] }
   0x4   :  { %5384 = vmatprep.subr.bf16.mxu0 %v5383_v3  ;;  %4899 = vmatprep.mubr.msk.f32.mxu0 %vm50_vm0, %v34_v8 }
   0x5   :  { %5386 = vmatpush3.bf16.msra.mxu0 %v5383_v3 }
   0x6   :  { %13 = vsyncpa [#allocation4], 0  ;;  %5388 = vmatprep.subr.bf16.mxu0 %v5387_v5  ;;  %v5391_v9 = vpack.c.bf16 %v43_v7, %v42_v6  ;;  %v44_v10 = vld [vmem:[%s7936_s1 + $0x30] sm:$0xff]  ;;  %v45_v11 = vld [vmem:[%s7936_s1 + $0x38] sm:$0xff]  ;;  %vm148_vm1 = vcmask 261120   ;;  %v6002_v17 = vmov 0.0  }
   0x7   :  { %v5395_v12 = vpack.c.bf16 %v45_v11, %v44_v10  ;;  %v35_v13 = vld [vmem:[%s7935_s0 + $0x8] sm:$0xff]  ;;  %v36_v14 = vld [vmem:[%s7935_s0 + $0x10] sm:$0xff]  ;;  %v37_v15 = vld [vmem:[%s7935_s0 + $0x18] sm:$0xff]  ;;  %151 = vst.msk [vmem:[#allocation2 + $0x10] sm:$0xff] %vm148_vm1, %v6002_v17  ;;  %vm152_vm2 = vcmask 253952   ;;  %vm938_vm4 = vcmask 392192  }
   0x8   :  { %v6093_v16 = vld [vmem:[%s7940_s5] sm:$0xff]  ;;  %156 = vst.msk [vmem:[#allocation2 + $0x28] sm:$0xff] %vm148_vm1, %v6002_v17  ;;  %v47_v20 = vld [vmem:[%s7937_s2 + $0x8] sm:$0xff]  ;;  %v49_v26 = vld [vmem:[%s7937_s2 + $0x18] sm:$0xff] }
   0x9   :  { %5390 = vmatpush3.bf16.msra.mxu0 %v5387_v5  ;;  %153 = vst.msk [vmem:[#allocation2 + $0x10] sm:$0x1] %vm152_vm2, %v6093_v16  ;;  %157 = vst.msk [vmem:[#allocation2 + $0x28] sm:$0x1] %vm152_vm2, %v6093_v16  ;;  %v46_v21 = vld [vmem:[%s7937_s2] sm:$0xff]  ;;  %v48_v27 = vld [vmem:[%s7937_s2 + $0x10] sm:$0xff] }
   0xa   :  { %5392 = vmatprep.subr.bf16.mxu0 %v5391_v9  ;;  %v312_v8 = vld [vmem:[%s7938_s3] sm:$0xff]  ;;  %vm6250_vm3 = vmpackc.low %vm148_vm1, %vm148_vm1 }
   0xb   :  { %v536_v10 = vld [vmem:[%s7938_s3 + $0x40] sm:$0xff] }
   0xd   :  { %5394 = vmatpush3.bf16.msra.mxu0 %v5391_v9  ;;  %v313_v9 = vld [vmem:[%s7938_s3 + $0x8] sm:$0xff] }
   0xe   :  { %5396 = vmatprep.subr.bf16.mxu0 %v5395_v12  ;;  %v5399_v11 = vpack.c.bf16 %v313_v9, %v312_v8 }
  0x10   :  { %v160_v18 = vld [vmem:[#allocation2 + $0x10] sm:$0xff]  ;;  %v163_v37 = vld [vmem:[#allocation2 + $0x28] sm:$0xff]  ;;  %5400 = vmatprep.subr.bf16.mxu1 %v5399_v11 }
  0x11   :  { %5398 = vmatpush3.bf16.msra.mxu0 %v5395_v12  ;;  %v219_v19 = vsel %vm148_vm1, %v160_v18, 0.0  ;;  %v228_v41 = vsel %vm148_vm1, %v163_v37, 0.0  ;;  %v537_v12 = vld [vmem:[%s7938_s3 + $0x48] sm:$0xff]  ;;  %5402 = vmatpush3.bf16.msra.mxu1 %v5399_v11 }
  0x12   :  { %220 = vadd.xlane.f32.xlu1 %v219_v19  ;;  %v539_v19 = vld [vmem:[%s7938_s3 + $0x58] sm:$0xff] }
  0x14   :  { %4900 = vmatmul.mubr.msk.f32.vlgmr.msra.gmra.mrb[0].mxu0 %vm50_vm0, %v35_v13  ;;  %v314_v13 = vld [vmem:[%s7938_s3 + $0x10] sm:$0xff] }
  0x15   :  { %4902 = vmatprep.mubr.msk.f32.mxu0 %vm50_vm0, %v36_v14  ;;  %v315_v14 = vld [vmem:[%s7938_s3 + $0x18] sm:$0xff] }
  0x16   :  { %v5403_v17 = vpack.c.bf16 %v315_v14, %v314_v13 }
  0x18   :  { %4903 = vmatmul.mubr.msk.f32.gmra.mrb[2].mxu0 %vm50_vm0, %v37_v15  ;;  %v5415_v15 = vpack.c.bf16 %v537_v12, %v536_v10  ;;  %5404 = vmatprep.subr.bf16.mxu1 %v5403_v17 }
  0x19   :  { %5406 = vmatpush3.bf16.msra.mxu1 %v5403_v17 }
  0x1a   :  { %5416 = vmatprep.subr.bf16.mxu0 %v5415_v15 }
  0x1b   :  { %5418 = vmatpush3.bf16.msra.mxu0 %v5415_v15 }
  0x9f   :  { %v221_v42 = vpop.xlane.xlu1 %220 }
  0xa0   :  { %v234_v43 = vmul.f32 0.03125, %v221_v42 }
  0xa2   :  { %v6121_v46 = vsub.f32 %v160_v18, %v234_v43  ;;  %v538_v18 = vld [vmem:[%s7938_s3 + $0x50] sm:$0xff] }
  0xa4   :  { %v246_v53 = vmul.f32 %v6121_v46, %v6121_v46 }
  0xa6   :  { %v256_v61 = vsel %vm148_vm1, %v246_v53, 0.0 }
  0xe7   :  { %v4901_v22 = vpop.f32.mrb[0].mxu0 }
  0xe8   :  { %v135_v23 = vadd.f32 %v4901_v22, %v47_v20  ;;  %v129_v24 = vpop.f32.mrb[1].mxu0  ;;  %v5419_v20 = vpack.c.bf16 %v539_v19, %v538_v18  ;;  %v434_v22 = vld [vmem:[%s7938_s3 + $0x28] sm:$0xff] }
  0xe9   :  { %v130_v25 = vadd.f32 %v129_v24, %v46_v21  ;;  %v433_v21 = vld [vmem:[%s7938_s3 + $0x20] sm:$0xff] }
  0xea   :  { %150 = vst.msk [vmem:[#allocation2 + $0x8] sm:$0xff] %vm148_vm1, %v135_v23  ;;  %5420 = vmatprep.subr.bf16.mxu0 %v5419_v20  ;;  %v5407_v23 = vpack.c.bf16 %v434_v22, %v433_v21  ;;  %v164_v21 = vld [vmem:[%s7941_s6] sm:$0xff] }
  0xeb   :  { %149 = vst.msk [vmem:[#allocation2] sm:$0xff] %vm148_vm1, %v130_v25  ;;  %v4904_v28 = vpop.f32.mrb[2].mxu0  ;;  %5422 = vmatpush3.bf16.msra.mxu0 %v5419_v20 }
  0xec   :  { %v145_v29 = vadd.f32 %v4904_v28, %v49_v26  ;;  %v139_v30 = vpop.f32.mrb[3].mxu0  ;;  %5408 = vmatprep.subr.bf16.mxu1 %v5407_v23  ;;  %v292_v26 = vlaneseq }
  0xed   :  { %v140_v31 = vadd.f32 %v139_v30, %v48_v27 }
  0xee   :  { %155 = vst.msk [vmem:[#allocation2 + $0x20] sm:$0xff] %vm148_vm1, %v145_v29 }
  0xef   :  { %154 = vst.msk [vmem:[#allocation2 + $0x18] sm:$0xff] %vm148_vm1, %v140_v31 }
  0xf1   :  { %v159_v34 = vld [vmem:[#allocation2 + $0x8] sm:$0xff] }
  0xf2   :  { %v158_v32 = vld [vmem:[#allocation2] sm:$0xff]  ;;  %v216_v38 = vsel %vm148_vm1, %v159_v34, 0.0 }
  0xf3   :  { %v213_v33 = vsel %vm148_vm1, %v158_v32, 0.0 }
  0xf4   :  { %214 = vadd.xlane.f32.xlu0 %v213_v33 }
  0xf5   :  { %v162_v36 = vld [vmem:[#allocation2 + $0x20] sm:$0xff] }
  0xf6   :  { %v161_v35 = vld [vmem:[#allocation2 + $0x18] sm:$0xff]  ;;  %v225_v40 = vsel %vm148_vm1, %v162_v36, 0.0 }
  0xf7   :  { %v222_v39 = vsel %vm148_vm1, %v161_v35, 0.0 }
  0xf8   :  { %217 = vadd.xlane.f32.xlu0 %v216_v38  ;;  %223 = vadd.xlane.f32.xlu1 %v222_v39 }
  0xfc   :  { %226 = vadd.xlane.f32.xlu0 %v225_v40  ;;  %229 = vadd.xlane.f32.xlu1 %v228_v41 }
 0x181   :  { %v215_v44 = vpop.xlane.xlu0 %214 }
 0x182   :  { %v232_v45 = vmul.f32 0.03125, %v215_v44 }
 0x184   :  { %v6123_v47 = vsub.f32 %v158_v32, %v232_v45  ;;  %v6181_v32 = vshrl.u32 %v292_v26, 7 }
 0x185   :  { %v218_v48 = vpop.xlane.xlu0 %217  ;;  %v224_v49 = vpop.xlane.xlu1 %223 }
 0x186   :  { %v233_v50 = vmul.f32 0.03125, %v218_v48  ;;  %v235_v51 = vmul.f32 0.03125, %v224_v49  ;;  %v244_v52 = vmul.f32 %v6123_v47, %v6123_v47  ;;  %v6184_v39 = vsub.s32 1, %v6181_v32 }
 0x187   :  { %v6187_v43 = vsub.s32 2, %v6181_v32  ;;  %v6227_v12 = vsub.s32 3, %v6181_v32 }
 0x188   :  { %v6129_v54 = vsub.f32 %v159_v34, %v233_v50  ;;  %v6131_v55 = vsub.f32 %v161_v35, %v235_v51  ;;  %v250_v56 = vsel %vm148_vm1, %v244_v52, 0.0  ;;  %v295_v45 = vrot.slane %v6093_v16, %v6184_v39 }
 0x189   :  { %251 = vadd.xlane.f32.xlu0 %v250_v56  ;;  %v227_v57 = vpop.xlane.xlu0 %226  ;;  %v230_v58 = vpop.xlane.xlu1 %229  ;;  %v305_v51 = vrot.slane %v6093_v16, %v6187_v43  ;;  %v6233_v14 = vrot.slane %v6093_v16, %v6227_v12 }
 0x18a   :  { %v236_v59 = vmul.f32 0.03125, %v227_v57  ;;  %v245_v60 = vmul.f32 %v6129_v54, %v6129_v54  ;;  %v237_v62 = vmul.f32 0.03125, %v230_v58  ;;  %v247_v2 = vmul.f32 %v6131_v55, %v6131_v55 }
 0x18c   :  { %v6137_v63 = vsub.f32 %v162_v36, %v236_v59  ;;  %v253_v0 = vsel %vm148_vm1, %v245_v60, 0.0  ;;  %v6140_v1 = vsub.f32 %v163_v37, %v237_v62  ;;  %v259_v6 = vsel %vm148_vm1, %v247_v2, 0.0 }
 0x18d   :  { %254 = vadd.xlane.f32.xlu1 %v253_v0  ;;  %257 = vadd.xlane.f32.xlu0 %v256_v61  ;;  %v436_v61 = vld [vmem:[%s7938_s3 + $0x38] sm:$0xff] }
 0x18e   :  { %v248_v3 = vmul.f32 %v6137_v63, %v6137_v63  ;;  %v249_v4 = vmul.f32 %v6140_v1, %v6140_v1 }
 0x190   :  { %v262_v5 = vsel %vm148_vm1, %v248_v3, 0.0  ;;  %v265_v7 = vsel %vm148_vm1, %v249_v4, 0.0 }
 0x191   :  { %263 = vadd.xlane.f32.xlu0 %v262_v5  ;;  %260 = vadd.xlane.f32.xlu1 %v259_v6 }
 0x195   :  { %266 = vadd.xlane.f32.xlu1 %v265_v7 }
 0x216   :  { %v252_v24 = vpop.xlane.xlu0 %251 }
 0x217   :  { %v268_v25 = vmul.f32 0.03125, %v252_v24 }
 0x219   :  { %v274_v27 = vadd.f32 1e-05, %v268_v25 }
 0x21a   :  { %v258_v28 = vpop.xlane.xlu0 %257  ;;  %v255_v29 = vpop.xlane.xlu1 %254 }
 0x21b   :  { %5622 = vrsqrt.f32 %v274_v27  ;;  %v270_v30 = vmul.f32 0.03125, %v258_v28  ;;  %v269_v31 = vmul.f32 0.03125, %v255_v29 }
 0x21d   :  { %v276_v33 = vadd.f32 1e-05, %v270_v30  ;;  %v275_v34 = vadd.f32 1e-05, %v269_v31  ;;  %v6243_v31 = vsub.s32 4, %v6181_v32 }
 0x21e   :  { %v264_v35 = vpop.xlane.xlu0 %263  ;;  %v261_v36 = vpop.xlane.xlu1 %260 }
 0x21f   :  { %5624 = vrsqrt.f32 %v276_v33  ;;  %v272_v37 = vmul.f32 0.03125, %v264_v35  ;;  %v271_v38 = vmul.f32 0.03125, %v261_v36 }
 0x220   :  { %5626 = vrsqrt.f32 %v275_v34 }
 0x221   :  { %v278_v40 = vadd.f32 1e-05, %v272_v37  ;;  %v277_v41 = vadd.f32 1e-05, %v271_v38 }
 0x222   :  { %v267_v42 = vpop.xlane.xlu1 %266 }
 0x223   :  { %5628 = vrsqrt.f32 %v278_v40  ;;  %v273_v44 = vmul.f32 0.03125, %v267_v42 }
 0x224   :  { %5630 = vrsqrt.f32 %v277_v41  ;;  %v440_v41 = vrot.slane %v6093_v16, %v6243_v31 }
 0x225   :  { %v5623_v48 = vpop.eup %5622  ;;  %v279_v49 = vadd.f32 1e-05, %v273_v44 }
 0x226   :  { %v286_v50 = vmul.f32 %v5623_v48, %v6123_v47  ;;  %v435_v47 = vld [vmem:[%s7938_s3 + $0x30] sm:$0xff] }
 0x227   :  { %5632 = vrsqrt.f32 %v279_v49  ;;  %v5411_v5 = vpack.c.bf16 %v436_v61, %v435_v47 }
 0x228   :  { %v296_v52 = vmul.f32 %v295_v45, %v286_v50 }
 0x229   :  { %v5625_v53 = vpop.eup %5624 }
 0x22a   :  { %v5627_v56 = vpop.eup %5626  ;;  %v306_v57 = vadd.f32 %v305_v51, %v296_v52  ;;  %v288_v58 = vmul.f32 %v5625_v53, %v6121_v46 }
 0x22b   :  { %v287_v59 = vmul.f32 %v5627_v56, %v6129_v54 }
 0x22c   :  { %4913 = vmatprep.mubr.msk.f32.mxu1 %vm148_vm1, %v306_v57  ;;  %4947 = vmatprep.mubr.msk.f32.mxu0 %vm148_vm1, %v306_v57  ;;  %v298_v60 = vmul.f32 %v295_v45, %v288_v58 }
 0x22d   :  { %v5629_v62 = vpop.eup %5628  ;;  %v297_v0 = vmul.f32 %v295_v45, %v287_v59 }
 0x22e   :  { %v5631_v2 = vpop.eup %5630  ;;  %v308_v3 = vadd.f32 %v305_v51, %v298_v60  ;;  %v290_v46 = vmul.f32 %v5629_v62, %v6137_v63 }
 0x22f   :  { %v307_v54 = vadd.f32 %v305_v51, %v297_v0  ;;  %v289_v4 = vmul.f32 %v5631_v2, %v6131_v55 }
 0x230   :  { %v300_v6 = vmul.f32 %v295_v45, %v290_v46 }
 0x231   :  { %v5633_v7 = vpop.eup %5632  ;;  %4914 = vmatmul.mubr.msk.f32.vlgmr.msra.gmra.mrb[0].mxu1 %vm148_vm1, %v307_v54  ;;  %4948 = vmatmul.mubr.msk.f32.vlgmr.msra.gmra.mrb[4].mxu0 %vm148_vm1, %v307_v54  ;;  %v299_v8 = vmul.f32 %v295_v45, %v289_v4 }
 0x232   :  { %5410 = vmatpush3.bf16.msra.mxu1 %v5407_v23  ;;  %4916 = vmatprep.mubr.msk.f32.mxu1 %vm148_vm1, %v308_v3  ;;  %v310_v9 = vadd.f32 %v305_v51, %v300_v6  ;;  %v291_v10 = vmul.f32 %v5633_v7, %v6140_v1  ;;  %v6224_v1 = vsub.s32 5, %v6181_v32 }
 0x233   :  { %4950 = vmatprep.mubr.msk.f32.mxu0 %vm148_vm1, %v308_v3  ;;  %v309_v63 = vadd.f32 %v305_v51, %v299_v8  ;;  %5412 = vmatprep.subr.bf16.mxu1 %v5411_v5  ;;  %v167_v8 = vld [vmem:[%s7941_s6 + $0x18] sm:$0xff] }
 0x234   :  { %v301_v11 = vmul.f32 %v295_v45, %v291_v10  ;;  %v543_v13 = vrot.slane %v6093_v16, %v6224_v1 }
 0x235   :  { %4917 = vmatmul.mubr.msk.f32.gmra.mrb[2].mxu1 %vm148_vm1, %v309_v63  ;;  %4951 = vmatmul.mubr.msk.f32.gmra.mrb[6].mxu0 %vm148_vm1, %v309_v63 }
 0x236   :  { %4919 = vmatprep.mubr.msk.f32.mxu1 %vm148_vm1, %v310_v9  ;;  %4953 = vmatprep.mubr.msk.f32.mxu0 %vm148_vm1, %v310_v9  ;;  %v311_v55 = vadd.f32 %v305_v51, %v301_v11 }
 0x237   :  { %5414 = vmatpush3.bf16.msra.mxu1 %v5411_v5 }
 0x239   :  { %4920 = vmatmul.mubr.msk.f32.gmra.mrb[4].mxu1 %vm148_vm1, %v311_v55  ;;  %4954 = vmatmul.mubr.msk.f32.gmra.mrb[8].mxu0 %vm148_vm1, %v311_v55 }
 0x23a   :  { %4930 = vmatprep.mubr.msk.f32.mxu1 %vm148_vm1, %v306_v57 }
 0x23d   :  { %4931 = vmatmul.mubr.msk.f32.vlgmr.msra.gmra.mrb[6].mxu1 %vm148_vm1, %v307_v54  ;;  %v166_v54 = vld [vmem:[%s7941_s6 + $0x10] sm:$0xff] }
 0x23e   :  { %4933 = vmatprep.mubr.msk.f32.mxu1 %vm148_vm1, %v308_v3  ;;  %v165_v3 = vld [vmem:[%s7941_s6 + $0x8] sm:$0xff] }
 0x241   :  { %4934 = vmatmul.mubr.msk.f32.gmra.mrb[8].mxu1 %vm148_vm1, %v309_v63 }
 0x242   :  { %4936 = vmatprep.mubr.msk.f32.mxu1 %vm148_vm1, %v310_v9  ;;  %v168_v9 = vld [vmem:[%s7941_s6 + $0x20] sm:$0xff] }
 0x245   :  { %4937 = vmatmul.mubr.msk.f32.gmra.mrb[10].mxu1 %vm148_vm1, %v311_v55  ;;  %v169_v55 = vld [vmem:[%s7941_s6 + $0x28] sm:$0xff] }
 0x304   :  { %v4915_v15 = vpop.f32.mrb[0].mxu1  ;;  %v4949_v17 = vpop.f32.mrb[4].mxu0 }
 0x305   :  { %v616_v18 = vadd.f32 %v4949_v17, %v543_v13  ;;  %v404_v19 = vpop.f32.mrb[1].mxu1  ;;  %v610_v20 = vpop.f32.mrb[5].mxu0  ;;  %v410_v2 = vadd.f32 %v4915_v15, %v6233_v14 }
 0x306   :  { %v6239_v22 = vadd.f32 %v404_v19, %v6233_v14  ;;  %v611_v23 = vadd.f32 %v610_v20, %v543_v13 }
 0x307   :  { %v640_v4 = vmul.f32 %v410_v2, %v165_v3  ;;  %v192_v3 = vld [vmem:[%s7942_s7 + $0x18] sm:$0xff] }
 0x308   :  { %v5441_v24 = vpack.c.bf16 %v616_v18, %v611_v23  ;;  %v4918_v25 = vpop.f32.mrb[2].mxu1  ;;  %v4952_v26 = vpop.f32.mrb[6].mxu0  ;;  %v639_v27 = vmul.f32 %v6239_v22, %v164_v21  ;;  %v172_v18 = vld [vmem:[%s7941_s6 + $0x40] sm:$0xff]  ;;  %v173_v21 = vld [vmem:[%s7941_s6 + $0x48] sm:$0xff]  ;;  %v174_v23 = vld [vmem:[%s7941_s6 + $0x50] sm:$0xff] }
 0x309   :  { %v626_v28 = vadd.f32 %v4952_v26, %v543_v13  ;;  %v414_v29 = vpop.f32.mrb[3].mxu1  ;;  %v620_v30 = vpop.f32.mrb[7].mxu0  ;;  %v420_v5 = vadd.f32 %v4918_v25, %v6233_v14  ;;  %v175_v26 = vld [vmem:[%s7941_s6 + $0x58] sm:$0xff] }
 0x30a   :  { %v621_v33 = vadd.f32 %v620_v30, %v543_v13  ;;  %4968 = vmatprep.mubr.msk.f32.mxu1 %vm148_vm1, %v639_v27  ;;  %5442 = vmatprep.subr.bf16.mxu0 %v5441_v24  ;;  %v415_v46 = vadd.f32 %v414_v29, %v6233_v14  ;;  %v176_v27 = vld [vmem:[%s7941_s6 + $0x60] sm:$0xff]  ;;  %v177_v30 = vld [vmem:[%s7941_s6 + $0x68] sm:$0xff] }
 0x30b   :  { %5444 = vmatpush3.bf16.msra.mxu0 %v5441_v24  ;;  %v642_v63 = vmul.f32 %v420_v5, %v167_v8  ;;  %v648_v24 = vmul.f32 %v420_v5, %v173_v21  ;;  %v651_v29 = vmul.f32 %v6239_v22, %v176_v27 }
 0x30c   :  { %v5445_v34 = vpack.c.bf16 %v626_v28, %v621_v33  ;;  %v4921_v35 = vpop.f32.mrb[4].mxu1  ;;  %v4955_v36 = vpop.f32.mrb[8].mxu0  ;;  %v641_v7 = vmul.f32 %v415_v46, %v166_v54  ;;  %v647_v20 = vmul.f32 %v415_v46, %v172_v18  ;;  %v178_v33 = vld [vmem:[%s7941_s6 + $0x70] sm:$0xff] }
 0x30d   :  { %v636_v37 = vadd.f32 %v4955_v36, %v543_v13  ;;  %v424_v38 = vpop.f32.mrb[5].mxu1  ;;  %v630_v40 = vpop.f32.mrb[9].mxu0  ;;  %v430_v10 = vadd.f32 %v4921_v35, %v6233_v14  ;;  %v653_v35 = vmul.f32 %v415_v46, %v178_v33  ;;  %v179_v36 = vld [vmem:[%s7941_s6 + $0x78] sm:$0xff]  ;;  %v191_v54 = vld [vmem:[%s7942_s7 + $0x10] sm:$0xff] }
 0x30e   :  { %v631_v42 = vadd.f32 %v630_v40, %v543_v13  ;;  %5446 = vmatprep.subr.bf16.mxu0 %v5445_v34  ;;  %v425_v6 = vadd.f32 %v424_v38, %v6233_v14  ;;  %v170_v13 = vld [vmem:[%s7941_s6 + $0x30] sm:$0xff]  ;;  %v171_v14 = vld [vmem:[%s7941_s6 + $0x38] sm:$0xff]  ;;  %v654_v38 = vmul.f32 %v420_v5, %v179_v36 }
 0x30f   :  { %5448 = vmatpush3.bf16.msra.mxu0 %v5445_v34  ;;  %v644_v15 = vmul.f32 %v430_v10, %v169_v55  ;;  %v645_v17 = vmul.f32 %v6239_v22, %v170_v13  ;;  %v646_v19 = vmul.f32 %v410_v2, %v171_v14  ;;  %v650_v28 = vmul.f32 %v430_v10, %v175_v26  ;;  %v196_v14 = vld [vmem:[%s7942_s7 + $0x38] sm:$0xff]  ;;  %v198_v26 = vld [vmem:[%s7942_s7 + $0x48] sm:$0xff] }
 0x310   :  { %v5449_v44 = vpack.c.bf16 %v636_v37, %v631_v42  ;;  %v4932_v45 = vpop.f32.mrb[6].mxu1  ;;  %v643_v11 = vmul.f32 %v425_v6, %v168_v9  ;;  %v649_v25 = vmul.f32 %v425_v6, %v174_v23  ;;  %v652_v34 = vmul.f32 %v410_v2, %v177_v30  ;;  %v180_v37 = vld [vmem:[%s7941_s6 + $0x80] sm:$0xff]  ;;  %v182_v42 = vld [vmem:[%s7941_s6 + $0x90] sm:$0xff]  ;;  %v194_v9 = vld [vmem:[%s7942_s7 + $0x28] sm:$0xff] }
 0x311   :  { %v513_v48 = vadd.f32 %v4932_v45, %v440_v41  ;;  %v507_v49 = vpop.f32.mrb[7].mxu1  ;;  %v655_v40 = vmul.f32 %v425_v6, %v180_v37  ;;  %v657_v45 = vmul.f32 %v6239_v22, %v182_v42  ;;  %v186_v22 = vld [vmem:[%s7941_s6 + $0xb0] sm:$0xff]  ;;  %v200_v36 = vld [vmem:[%s7942_s7 + $0x58] sm:$0xff] }
 0x312   :  { %v508_v50 = vadd.f32 %v507_v49, %v440_v41  ;;  %5450 = vmatprep.subr.bf16.mxu0 %v5449_v44  ;;  %v184_v49 = vld [vmem:[%s7941_s6 + $0xa0] sm:$0xff] }
 0x313   :  { %5452 = vmatpush3.bf16.msra.mxu0 %v5449_v44 }
 0x314   :  { %v5423_v52 = vpack.c.bf16 %v513_v48, %v508_v50  ;;  %v4935_v53 = vpop.f32.mrb[8].mxu1  ;;  %v183_v48 = vld [vmem:[%s7941_s6 + $0x98] sm:$0xff] }
 0x315   :  { %v523_v56 = vadd.f32 %v4935_v53, %v440_v41  ;;  %v517_v57 = vpop.f32.mrb[9].mxu1  ;;  %v658_v50 = vmul.f32 %v410_v2, %v183_v48  ;;  %v185_v53 = vld [vmem:[%s7941_s6 + $0xa8] sm:$0xff] }
 0x316   :  { %v518_v58 = vadd.f32 %v517_v57, %v440_v41  ;;  %5425 = vmatprep.subr.msk.bf16.mxu1 %vm6250_vm3, %v5423_v52  ;;  %v661_v57 = vmul.f32 %v425_v6, %v186_v22  ;;  %v202_v48 = vld [vmem:[%s7942_s7 + $0x68] sm:$0xff] }
 0x317   :  { %5428 = vmatpush3.bf16.xpose.msk.msra.mxu1 %vm6250_vm3, %v5423_v52  ;;  %v659_v52 = vmul.f32 %v415_v46, %v184_v49 }
 0x318   :  { %v5429_v59 = vpack.c.bf16 %v523_v56, %v518_v58  ;;  %v4938_v60 = vpop.f32.mrb[10].mxu1  ;;  %v660_v56 = vmul.f32 %v420_v5, %v185_v53  ;;  %v187_v58 = vld [vmem:[%s7941_s6 + $0xb8] sm:$0xff] }
 0x319   :  { %v533_v47 = vadd.f32 %v4938_v60, %v440_v41  ;;  %v527_v61 = vpop.f32.mrb[11].mxu1  ;;  %v190_v60 = vld [vmem:[%s7942_s7 + $0x8] sm:$0xff] }
 0x31a   :  { %v528_v62 = vadd.f32 %v527_v61, %v440_v41  ;;  %5431 = vmatprep.subr.msk.bf16.mxu1 %vm6250_vm3, %v5429_v59  ;;  %v181_v41 = vld [vmem:[%s7941_s6 + $0x88] sm:$0xff] }
 0x31b   :  { %v656_v44 = vmul.f32 %v430_v10, %v181_v41 }
 0x31c   :  { %v5435_v0 = vpack.c.bf16 %v533_v47, %v528_v62  ;;  %v189_v47 = vld [vmem:[%s7942_s7] sm:$0xff] }
 0x31f   :  { %5434 = vmatpush3.bf16.xpose.msk.msra.mxu1 %vm6250_vm3, %v5429_v59  ;;  %v662_v59 = vmul.f32 %v430_v10, %v187_v58  ;;  %v204_v58 = vld [vmem:[%s7942_s7 + $0x78] sm:$0xff] }
 0x320   :  { %5437 = vmatprep.subr.msk.bf16.mxu1 %vm6250_vm3, %v5435_v0 }
 0x327   :  { %5440 = vmatpush3.bf16.xpose.msk.msra.mxu1 %vm6250_vm3, %v5435_v0 }
 0x32e   :  { %4969 = vmatmul.mubr.msk.f32.vlgmr.msra.gmra.mrb[12].mxu1 %vm148_vm1, %v640_v4 }
 0x32f   :  { %4971 = vmatprep.mubr.msk.f32.mxu1 %vm148_vm1, %v641_v7 }
 0x332   :  { %4972 = vmatmul.mubr.msk.f32.gmra.mrb[14].mxu1 %vm148_vm1, %v642_v63  ;;  %v193_v63 = vld [vmem:[%s7942_s7 + $0x20] sm:$0xff] }
 0x333   :  { %4974 = vmatprep.mubr.msk.f32.mxu1 %vm148_vm1, %v643_v11 }
 0x336   :  { %4975 = vmatmul.mubr.msk.f32.gmra.mrb[16].mxu1 %vm148_vm1, %v644_v15 }
 0x337   :  { %4977 = vmatprep.mubr.msk.f32.mxu1 %vm148_vm1, %v645_v17 }
 0x33a   :  { %4978 = vmatmul.mubr.msk.f32.gmra.mrb[18].mxu1 %vm148_vm1, %v646_v19  ;;  %v195_v19 = vld [vmem:[%s7942_s7 + $0x30] sm:$0xff] }
 0x33b   :  { %4980 = vmatprep.mubr.msk.f32.mxu1 %vm148_vm1, %v647_v20 }
 0x33e   :  { %4981 = vmatmul.mubr.msk.f32.gmra.mrb[20].mxu1 %vm148_vm1, %v648_v24 }
 0x33f   :  { %4983 = vmatprep.mubr.msk.f32.mxu1 %vm148_vm1, %v649_v25 }
 0x342   :  { %4984 = vmatmul.mubr.msk.f32.gmra.mrb[22].mxu1 %vm148_vm1, %v650_v28  ;;  %v197_v28 = vld [vmem:[%s7942_s7 + $0x40] sm:$0xff] }
 0x343   :  { %4986 = vmatprep.mubr.msk.f32.mxu1 %vm148_vm1, %v651_v29 }
 0x346   :  { %4987 = vmatmul.mubr.msk.f32.gmra.mrb[24].mxu1 %vm148_vm1, %v652_v34 }
 0x347   :  { %4989 = vmatprep.mubr.msk.f32.mxu1 %vm148_vm1, %v653_v35 }
 0x34a   :  { %4990 = vmatmul.mubr.msk.f32.gmra.mrb[26].mxu1 %vm148_vm1, %v654_v38  ;;  %v199_v38 = vld [vmem:[%s7942_s7 + $0x50] sm:$0xff] }
 0x34b   :  { %4992 = vmatprep.mubr.msk.f32.mxu1 %vm148_vm1, %v655_v40 }
 0x34e   :  { %4993 = vmatmul.mubr.msk.f32.gmra.mrb[28].mxu1 %vm148_vm1, %v656_v44 }
 0x34f   :  { %4995 = vmatprep.mubr.msk.f32.mxu1 %vm148_vm1, %v657_v45 }
 0x352   :  { %4996 = vmatmul.mubr.msk.f32.gmra.mrb[30].mxu1 %vm148_vm1, %v658_v50  ;;  %v201_v50 = vld [vmem:[%s7942_s7 + $0x60] sm:$0xff] }
 0x353   :  { %4998 = vmatprep.mubr.msk.f32.mxu1 %vm148_vm1, %v659_v52 }
 0x356   :  { %4999 = vmatmul.mubr.msk.f32.gmra.mrb[32].mxu1 %vm148_vm1, %v660_v56 }
 0x357   :  { %5001 = vmatprep.mubr.msk.f32.mxu1 %vm148_vm1, %v661_v57 }
 0x35a   :  { %5002 = vmatmul.mubr.msk.f32.gmra.mrb[34].mxu1 %vm148_vm1, %v662_v59 }
 0x401   :  { %v4970_v61 = vpop.f32.mrb[12].mxu1 }
 0x402   :  { %v6372_v62 = vadd.f32 %v4970_v61, %v190_v60  ;;  %v819_v0 = vpop.f32.mrb[13].mxu1  ;;  %v203_v60 = vld [vmem:[%s7942_s7 + $0x70] sm:$0xff] }
 0x403   :  { %v6374_v2 = vadd.f32 %v819_v0, %v189_v47 }
 0x404   :  { %v942_v46 = vsel %vm938_vm4, %v6372_v62, -inf }
 0x405   :  { %943 = vmax.xlane.f32.xlu1 %v942_v46  ;;  %v4973_v4 = vpop.f32.mrb[14].mxu1  ;;  %v939_v5 = vsel %vm938_vm4, %v6374_v2, -inf }
 0x406   :  { %v6386_v6 = vadd.f32 %v4973_v4, %v192_v3  ;;  %v829_v7 = vpop.f32.mrb[15].mxu1  ;;  %940 = vmax.xlane.f32.xlu0 %v939_v5  ;;  %v205_v5 = vld [vmem:[%s7942_s7 + $0x80] sm:$0xff] }
 0x407   :  { %v6388_v8 = vadd.f32 %v829_v7, %v191_v54  ;;  %v206_v54 = vld [vmem:[%s7942_s7 + $0x88] sm:$0xff] }
 0x408   :  { %v948_v10 = vsel %vm938_vm4, %v6386_v6, -inf }
 0x409   :  { %949 = vmax.xlane.f32.xlu1 %v948_v10  ;;  %v4976_v11 = vpop.f32.mrb[16].mxu1  ;;  %v945_v55 = vsel %vm938_vm4, %v6388_v8, -inf }
 0x40a   :  { %v6400_v13 = vadd.f32 %v4976_v11, %v194_v9  ;;  %946 = vmax.xlane.f32.xlu0 %v945_v55  ;;  %v839_v15 = vpop.f32.mrb[17].mxu1  ;;  %v208_v55 = vld [vmem:[%s7942_s7 + $0x98] sm:$0xff] }
 0x40b   :  { %v6402_v17 = vadd.f32 %v839_v15, %v193_v63 }
 0x40c   :  { %v954_v18 = vsel %vm938_vm4, %v6400_v13, -inf }
 0x40d   :  { %955 = vmax.xlane.f32.xlu1 %v954_v18  ;;  %v4979_v20 = vpop.f32.mrb[18].mxu1  ;;  %v951_v21 = vsel %vm938_vm4, %v6402_v17, -inf }
 0x40e   :  { %v6414_v23 = vadd.f32 %v4979_v20, %v196_v14  ;;  %v849_v24 = vpop.f32.mrb[19].mxu1  ;;  %952 = vmax.xlane.f32.xlu0 %v951_v21  ;;  %v207_v14 = vld [vmem:[%s7942_s7 + $0x90] sm:$0xff] }
 0x40f   :  { %v6416_v25 = vadd.f32 %v849_v24, %v195_v19 }
 0x410   :  { %v960_v27 = vsel %vm938_vm4, %v6414_v23, -inf }
 0x411   :  { %961 = vmax.xlane.f32.xlu1 %v960_v27  ;;  %v4982_v29 = vpop.f32.mrb[20].mxu1  ;;  %v957_v30 = vsel %vm938_vm4, %v6416_v25, -inf }
 0x412   :  { %v6428_v33 = vadd.f32 %v4982_v29, %v198_v26  ;;  %v859_v34 = vpop.f32.mrb[21].mxu1  ;;  %958 = vmax.xlane.f32.xlu0 %v957_v30  ;;  %v210_v26 = vld [vmem:[%s7942_s7 + $0xa8] sm:$0xff] }
 0x413   :  { %v6430_v35 = vadd.f32 %v859_v34, %v197_v28  ;;  %v209_v28 = vld [vmem:[%s7942_s7 + $0xa0] sm:$0xff] }
 0x414   :  { %v966_v37 = vsel %vm938_vm4, %v6428_v33, -inf }
 0x415   :  { %967 = vmax.xlane.f32.xlu1 %v966_v37  ;;  %v4985_v40 = vpop.f32.mrb[22].mxu1  ;;  %v963_v41 = vsel %vm938_vm4, %v6430_v35, -inf }
 0x416   :  { %v6442_v42 = vadd.f32 %v4985_v40, %v200_v36  ;;  %v869_v44 = vpop.f32.mrb[23].mxu1  ;;  %964 = vmax.xlane.f32.xlu0 %v963_v41  ;;  %v211_v41 = vld [vmem:[%s7942_s7 + $0xb0] sm:$0xff] }
 0x417   :  { %v6444_v45 = vadd.f32 %v869_v44, %v199_v38  ;;  %v212_v38 = vld [vmem:[%s7942_s7 + $0xb8] sm:$0xff] }
 0x418   :  { %v972_v49 = vsel %vm938_vm4, %v6442_v42, -inf }
 0x419   :  { %973 = vmax.xlane.f32.xlu1 %v972_v49  ;;  %v4988_v52 = vpop.f32.mrb[24].mxu1  ;;  %v969_v53 = vsel %vm938_vm4, %v6444_v45, -inf }
 0x41a   :  { %v6456_v22 = vadd.f32 %v4988_v52, %v202_v48  ;;  %v879_v56 = vpop.f32.mrb[25].mxu1  ;;  %970 = vmax.xlane.f32.xlu0 %v969_v53 }
 0x41b   :  { %v6458_v57 = vadd.f32 %v879_v56, %v201_v50 }
 0x41c   :  { %v978_v59 = vsel %vm938_vm4, %v6456_v22, -inf }
 0x41d   :  { %979 = vmax.xlane.f32.xlu1 %v978_v59  ;;  %v4991_v47 = vpop.f32.mrb[26].mxu1  ;;  %v975_v61 = vsel %vm938_vm4, %v6458_v57, -inf }
 0x41e   :  { %v6470_v0 = vadd.f32 %v4991_v47, %v204_v58  ;;  %v889_v3 = vpop.f32.mrb[27].mxu1  ;;  %976 = vmax.xlane.f32.xlu0 %v975_v61 }
 0x41f   :  { %v6472_v46 = vadd.f32 %v889_v3, %v203_v60 }
 0x420   :  { %v984_v4 = vsel %vm938_vm4, %v6470_v0, -inf }
 0x421   :  { %985 = vmax.xlane.f32.xlu1 %v984_v4  ;;  %v4994_v7 = vpop.f32.mrb[28].mxu1  ;;  %v981_v9 = vsel %vm938_vm4, %v6472_v46, -inf }
 0x422   :  { %v6484_v10 = vadd.f32 %v4994_v7, %v206_v54  ;;  %v899_v63 = vpop.f32.mrb[29].mxu1  ;;  %982 = vmax.xlane.f32.xlu0 %v981_v9 }
 0x423   :  { %v6486_v11 = vadd.f32 %v899_v63, %v205_v5 }
 0x424   :  { %v990_v15 = vsel %vm938_vm4, %v6484_v10, -inf }
 0x425   :  { %991 = vmax.xlane.f32.xlu1 %v990_v15  ;;  %v4997_v18 = vpop.f32.mrb[30].mxu1  ;;  %v987_v19 = vsel %vm938_vm4, %v6486_v11, -inf }
 0x426   :  { %v6498_v20 = vadd.f32 %v4997_v18, %v208_v55  ;;  %v909_v21 = vpop.f32.mrb[31].mxu1  ;;  %988 = vmax.xlane.f32.xlu0 %v987_v19 }
 0x427   :  { %v6500_v24 = vadd.f32 %v909_v21, %v207_v14 }
 0x428   :  { %v996_v27 = vsel %vm938_vm4, %v6498_v20, -inf }
 0x429   :  { %997 = vmax.xlane.f32.xlu1 %v996_v27  ;;  %v5000_v29 = vpop.f32.mrb[32].mxu1  ;;  %v993_v30 = vsel %vm938_vm4, %v6500_v24, -inf }
 0x42a   :  { %v6512_v34 = vadd.f32 %v5000_v29, %v210_v26  ;;  %v919_v36 = vpop.f32.mrb[33].mxu1  ;;  %994 = vmax.xlane.f32.xlu0 %v993_v30 }
 0x42b   :  { %v6514_v37 = vadd.f32 %v919_v36, %v209_v28 }
 0x42c   :  { %v1002_v40 = vsel %vm938_vm4, %v6512_v34, -inf }
 0x42d   :  { %1003 = vmax.xlane.f32.xlu1 %v1002_v40  ;;  %v5003_v44 = vpop.f32.mrb[34].mxu1  ;;  %v999_v48 = vsel %vm938_vm4, %v6514_v37, -inf }
 0x42e   :  { %v6526_v49 = vadd.f32 %v5003_v44, %v212_v38  ;;  %v929_v50 = vpop.f32.mrb[35].mxu1  ;;  %1000 = vmax.xlane.f32.xlu0 %v999_v48 }
 0x42f   :  { %v6528_v52 = vadd.f32 %v929_v50, %v211_v41 }
 0x430   :  { %v1008_v53 = vsel %vm938_vm4, %v6526_v49, -inf }
 0x431   :  { %1009 = vmax.xlane.f32.xlu1 %v1008_v53  ;;  %v1005_v56 = vsel %vm938_vm4, %v6528_v52, -inf }
 0x432   :  { %1006 = vmax.xlane.f32.xlu0 %v1005_v56 }
 0x492   :  { %v944_v58 = vpop.xlane.xlu1 %943 }
 0x493   :  { %v1012_v59 = vsub.f32 %v6372_v62, %v944_v58  ;;  %v941_v60 = vpop.xlane.xlu0 %940 }
 0x494   :  { %v1011_v47 = vsub.f32 %v6374_v2, %v941_v60 }
 0x495   :  { %v1037_v61 = vmul.f32 1.442695, %v1012_v59 }
 0x496   :  { %v1035_v3 = vmul.f32 1.442695, %v1011_v47  ;;  %v950_v54 = vpop.xlane.xlu1 %949 }
 0x497   :  { %5634 = vpow2.f32 %v1037_v61  ;;  %v1014_v4 = vsub.f32 %v6386_v6, %v950_v54  ;;  %v947_v5 = vpop.xlane.xlu0 %946 }
 0x498   :  { %5636 = vpow2.f32 %v1035_v3  ;;  %v1013_v7 = vsub.f32 %v6388_v8, %v947_v5 }
 0x499   :  { %v1041_v9 = vmul.f32 1.442695, %v1014_v4 }
 0x49a   :  { %v1039_v63 = vmul.f32 1.442695, %v1013_v7  ;;  %v956_v55 = vpop.xlane.xlu1 %955 }
 0x49b   :  { %5638 = vpow2.f32 %v1041_v9  ;;  %v1016_v15 = vsub.f32 %v6400_v13, %v956_v55  ;;  %v953_v62 = vpop.xlane.xlu0 %952 }
 0x49c   :  { %5640 = vpow2.f32 %v1039_v63  ;;  %v1015_v2 = vsub.f32 %v6402_v17, %v953_v62 }
 0x49d   :  { %v1045_v14 = vmul.f32 1.442695, %v1016_v15 }
 0x49e   :  { %v1043_v18 = vmul.f32 1.442695, %v1015_v2  ;;  %v962_v19 = vpop.xlane.xlu1 %961 }
 0x49f   :  { %5642 = vpow2.f32 %v1045_v14  ;;  %v1018_v6 = vsub.f32 %v6414_v23, %v962_v19  ;;  %v959_v21 = vpop.xlane.xlu0 %958 }
 0x4a0   :  { %5644 = vpow2.f32 %v1043_v18  ;;  %v1017_v8 = vsub.f32 %v6416_v25, %v959_v21 }
 0x4a1   :  { %v6542_v26 = vpop.eup %5634  ;;  %v1049_v27 = vmul.f32 1.442695, %v1018_v6 }
 0x4a2   :  { %v6544_v28 = vpop.eup %5636  ;;  %v1047_v13 = vmul.f32 1.442695, %v1017_v8  ;;  %v968_v29 = vpop.xlane.xlu1 %967  ;;  %v1086_v17 = vsel %vm938_vm4, %v6542_v26, 0.0 }
 0x4a3   :  { %5646 = vpow2.f32 %v1049_v27  ;;  %v1020_v30 = vsub.f32 %v6428_v33, %v968_v29  ;;  %1087 = vadd.xlane.f32.xlu1 %v1086_v17  ;;  %v965_v36 = vpop.xlane.xlu0 %964  ;;  %v1083_v23 = vsel %vm938_vm4, %v6544_v28, 0.0 }
 0x4a4   :  { %5648 = vpow2.f32 %v1047_v13  ;;  %v1019_v25 = vsub.f32 %v6430_v35, %v965_v36  ;;  %1084 = vadd.xlane.f32.xlu0 %v1083_v23 }
 0x4a5   :  { %v6552_v38 = vpop.eup %5638  ;;  %v1053_v40 = vmul.f32 1.442695, %v1020_v30 }
 0x4a6   :  { %v6554_v41 = vpop.eup %5640  ;;  %v1051_v44 = vmul.f32 1.442695, %v1019_v25  ;;  %v974_v48 = vpop.xlane.xlu1 %973  ;;  %v1092_v50 = vsel %vm938_vm4, %v6552_v38, 0.0 }
 0x4a7   :  { %5650 = vpow2.f32 %v1053_v40  ;;  %v1022_v33 = vsub.f32 %v6442_v42, %v974_v48  ;;  %1093 = vadd.xlane.f32.xlu1 %v1092_v50  ;;  %v971_v53 = vpop.xlane.xlu0 %970  ;;  %v1089_v56 = vsel %vm938_vm4, %v6554_v41, 0.0 }
 0x4a8   :  { %5652 = vpow2.f32 %v1051_v44  ;;  %v1021_v35 = vsub.f32 %v6444_v45, %v971_v53  ;;  %1090 = vadd.xlane.f32.xlu0 %v1089_v56 }
 0x4a9   :  { %v6562_v58 = vpop.eup %5642  ;;  %v1057_v59 = vmul.f32 1.442695, %v1022_v33 }
 0x4aa   :  { %v6564_v60 = vpop.eup %5644  ;;  %v1055_v47 = vmul.f32 1.442695, %v1021_v35  ;;  %v980_v61 = vpop.xlane.xlu1 %979  ;;  %v1098_v3 = vsel %vm938_vm4, %v6562_v58, 0.0 }
 0x4ab   :  { %5654 = vpow2.f32 %v1057_v59  ;;  %v1024_v42 = vsub.f32 %v6456_v22, %v980_v61  ;;  %1099 = vadd.xlane.f32.xlu1 %v1098_v3  ;;  %v977_v54 = vpop.xlane.xlu0 %976  ;;  %v1095_v4 = vsel %vm938_vm4, %v6564_v60, 0.0 }
 0x4ac   :  { %5656 = vpow2.f32 %v1055_v47  ;;  %v1023_v45 = vsub.f32 %v6458_v57, %v977_v54  ;;  %1096 = vadd.xlane.f32.xlu0 %v1095_v4 }
 0x4ad   :  { %v6572_v5 = vpop.eup %5646  ;;  %v1061_v7 = vmul.f32 1.442695, %v1024_v42 }
 0x4ae   :  { %v6574_v9 = vpop.eup %5648  ;;  %v1059_v63 = vmul.f32 1.442695, %v1023_v45  ;;  %v986_v55 = vpop.xlane.xlu1 %985  ;;  %v1104_v15 = vsel %vm938_vm4, %v6572_v5, 0.0 }
 0x4af   :  { %5658 = vpow2.f32 %v1061_v7  ;;  %v1026_v22 = vsub.f32 %v6470_v0, %v986_v55  ;;  %1105 = vadd.xlane.f32.xlu1 %v1104_v15  ;;  %v983_v62 = vpop.xlane.xlu0 %982  ;;  %v1101_v2 = vsel %vm938_vm4, %v6574_v9, 0.0 }
 0x4b0   :  { %5660 = vpow2.f32 %v1059_v63  ;;  %v1025_v57 = vsub.f32 %v6472_v46, %v983_v62  ;;  %1102 = vadd.xlane.f32.xlu0 %v1101_v2 }
 0x4b1   :  { %v6582_v14 = vpop.eup %5650  ;;  %v1065_v18 = vmul.f32 1.442695, %v1026_v22 }
 0x4b2   :  { %v6584_v19 = vpop.eup %5652  ;;  %v1063_v6 = vmul.f32 1.442695, %v1025_v57  ;;  %v992_v21 = vpop.xlane.xlu1 %991  ;;  %v1110_v8 = vsel %vm938_vm4, %v6582_v14, 0.0 }
 0x4b3   :  { %5662 = vpow2.f32 %v1065_v18  ;;  %v1028_v0 = vsub.f32 %v6484_v10, %v992_v21  ;;  %1111 = vadd.xlane.f32.xlu1 %v1110_v8  ;;  %v989_v27 = vpop.xlane.xlu0 %988  ;;  %v1107_v13 = vsel %vm938_vm4, %v6584_v19, 0.0 }
 0x4b4   :  { %5664 = vpow2.f32 %v1063_v6  ;;  %v1027_v46 = vsub.f32 %v6486_v11, %v989_v27  ;;  %1108 = vadd.xlane.f32.xlu0 %v1107_v13 }
 0x4b5   :  { %v6592_v29 = vpop.eup %5654  ;;  %v1069_v17 = vmul.f32 1.442695, %v1028_v0 }
 0x4b6   :  { %v6594_v30 = vpop.eup %5656  ;;  %v1067_v36 = vmul.f32 1.442695, %v1027_v46  ;;  %v998_v23 = vpop.xlane.xlu1 %997  ;;  %v1116_v25 = vsel %vm938_vm4, %v6592_v29, 0.0 }
 0x4b7   :  { %5666 = vpow2.f32 %v1069_v17  ;;  %v1030_v10 = vsub.f32 %v6498_v20, %v998_v23  ;;  %1117 = vadd.xlane.f32.xlu1 %v1116_v25  ;;  %v995_v40 = vpop.xlane.xlu0 %994  ;;  %v1113_v44 = vsel %vm938_vm4, %v6594_v30, 0.0  ;;  %v1518_v23 = vld [vmem:[%s7938_s3 + $0x60] sm:$0xff]  ;;  %v1519_v25 = vld [vmem:[%s7938_s3 + $0x68] sm:$0xff] }
 0x4b8   :  { %5668 = vpow2.f32 %v1067_v36  ;;  %v1029_v11 = vsub.f32 %v6500_v24, %v995_v40  ;;  %1114 = vadd.xlane.f32.xlu0 %v1113_v44 }
 0x4b9   :  { %v6602_v48 = vpop.eup %5658  ;;  %v1073_v50 = vmul.f32 1.442695, %v1030_v10  ;;  %v5453_v10 = vpack.c.bf16 %v1519_v25, %v1518_v23 }
 0x4ba   :  { %v6604_v33 = vpop.eup %5660  ;;  %v1071_v53 = vmul.f32 1.442695, %v1029_v11  ;;  %v1004_v56 = vpop.xlane.xlu1 %1003  ;;  %v1122_v35 = vsel %vm938_vm4, %v6602_v48, 0.0 }
 0x4bb   :  { %5670 = vpow2.f32 %v1073_v50  ;;  %v1032_v20 = vsub.f32 %v6512_v34, %v1004_v56  ;;  %1123 = vadd.xlane.f32.xlu1 %v1122_v35  ;;  %v1001_v59 = vpop.xlane.xlu0 %1000  ;;  %v1119_v47 = vsel %vm938_vm4, %v6604_v33, 0.0  ;;  %5454 = vmatprep.subr.bf16.mxu0 %v5453_v10 }
 0x4bc   :  { %5672 = vpow2.f32 %v1071_v53  ;;  %v1031_v24 = vsub.f32 %v6514_v37, %v1001_v59  ;;  %1120 = vadd.xlane.f32.xlu0 %v1119_v47 }
 0x4bd   :  { %v6612_v61 = vpop.eup %5662  ;;  %v1077_v3 = vmul.f32 1.442695, %v1032_v20 }
 0x4be   :  { %v6614_v42 = vpop.eup %5664  ;;  %v1075_v54 = vmul.f32 1.442695, %v1031_v24  ;;  %v1010_v4 = vpop.xlane.xlu1 %1009  ;;  %v1128_v45 = vsel %vm938_vm4, %v6612_v61, 0.0 }
 0x4bf   :  { %5674 = vpow2.f32 %v1077_v3  ;;  %v1034_v34 = vsub.f32 %v6526_v49, %v1010_v4  ;;  %1129 = vadd.xlane.f32.xlu1 %v1128_v45  ;;  %v1007_v7 = vpop.xlane.xlu0 %1006  ;;  %v1125_v63 = vsel %vm938_vm4, %v6614_v42, 0.0 }
 0x4c0   :  { %5676 = vpow2.f32 %v1075_v54  ;;  %v1033_v37 = vsub.f32 %v6528_v52, %v1007_v7  ;;  %1126 = vadd.xlane.f32.xlu0 %v1125_v63 }
 0x4c1   :  { %v6622_v55 = vpop.eup %5666  ;;  %v1081_v15 = vmul.f32 1.442695, %v1034_v34 }
 0x4c2   :  { %v6624_v22 = vpop.eup %5668  ;;  %v1079_v62 = vmul.f32 1.442695, %v1033_v37  ;;  %v1134_v2 = vsel %vm938_vm4, %v6622_v55, 0.0 }
 0x4c3   :  { %5678 = vpow2.f32 %v1081_v15  ;;  %1135 = vadd.xlane.f32.xlu1 %v1134_v2  ;;  %v1131_v49 = vsel %vm938_vm4, %v6624_v22, 0.0 }
 0x4c4   :  { %5680 = vpow2.f32 %v1079_v62  ;;  %1132 = vadd.xlane.f32.xlu0 %v1131_v49 }
 0x4c5   :  { %v6630_v57 = vpop.eup %5670 }
 0x4c6   :  { %v6632_v52 = vpop.eup %5672  ;;  %v1140_v18 = vsel %vm938_vm4, %v6630_v57, 0.0 }
 0x4c7   :  { %1141 = vadd.xlane.f32.xlu1 %v1140_v18  ;;  %v1137_v6 = vsel %vm938_vm4, %v6632_v52, 0.0 }
 0x4c8   :  { %1138 = vadd.xlane.f32.xlu0 %v1137_v6 }
 0x4c9   :  { %v6638_v21 = vpop.eup %5674 }
 0x4ca   :  { %v6640_v8 = vpop.eup %5676  ;;  %v1146_v0 = vsel %vm938_vm4, %v6638_v21, 0.0 }
 0x4cb   :  { %1147 = vadd.xlane.f32.xlu1 %v1146_v0  ;;  %v1143_v27 = vsel %vm938_vm4, %v6640_v8, 0.0 }
 0x4cc   :  { %1144 = vadd.xlane.f32.xlu0 %v1143_v27 }
 0x4cd   :  { %v6646_v13 = vpop.eup %5678 }
 0x4ce   :  { %v6648_v46 = vpop.eup %5680  ;;  %v1152_v17 = vsel %vm938_vm4, %v6646_v13, 0.0 }
 0x4cf   :  { %1153 = vadd.xlane.f32.xlu1 %v1152_v17  ;;  %v1149_v36 = vsel %vm938_vm4, %v6648_v46, 0.0 }
 0x4d0   :  { %1150 = vadd.xlane.f32.xlu0 %v1149_v36 }
 0x530   :  { %v1088_v40 = vpop.xlane.xlu1 %1087 }
 0x531   :  { %5682 = vrcp.f32 %v1088_v40  ;;  %v1085_v44 = vpop.xlane.xlu0 %1084 }
 0x532   :  { %5684 = vrcp.f32 %v1085_v44 }
 0x534   :  { %v1094_v11 = vpop.xlane.xlu1 %1093 }
 0x535   :  { %5686 = vrcp.f32 %v1094_v11  ;;  %v1091_v50 = vpop.xlane.xlu0 %1090 }
 0x536   :  { %5688 = vrcp.f32 %v1091_v50 }
 0x538   :  { %v1100_v53 = vpop.xlane.xlu1 %1099 }
 0x539   :  { %5690 = vrcp.f32 %v1100_v53  ;;  %v1097_v56 = vpop.xlane.xlu0 %1096 }
 0x53a   :  { %5692 = vrcp.f32 %v1097_v56 }
 0x53b   :  { %v5683_v35 = vpop.eup %5682 }
 0x53c   :  { %v5685_v20 = vpop.eup %5684  ;;  %v1106_v59 = vpop.xlane.xlu1 %1105  ;;  %v1180_v3 = vmul.f32 %v5683_v35, %v6542_v26 }
 0x53d   :  { %5694 = vrcp.f32 %v1106_v59  ;;  %v1103_v47 = vpop.xlane.xlu0 %1102  ;;  %v1179_v24 = vmul.f32 %v5685_v20, %v6544_v28 }
 0x53e   :  { %5696 = vrcp.f32 %v1103_v47 }
 0x53f   :  { %v5687_v54 = vpop.eup %5686  ;;  %5016 = vmatprep.mubr.msk.f32.mxu0 %vm938_vm4, %v1179_v24 }
 0x540   :  { %v5689_v4 = vpop.eup %5688  ;;  %v1112_v45 = vpop.xlane.xlu1 %1111  ;;  %5017 = vmatmul.mubr.msk.f32.vlgmr.msra.gmra.mrb[10].mxu0 %vm938_vm4, %v1180_v3  ;;  %v1182_v63 = vmul.f32 %v5687_v54, %v6552_v38 }
 0x541   :  { %5698 = vrcp.f32 %v1112_v45  ;;  %v1109_v34 = vpop.xlane.xlu0 %1108  ;;  %v1181_v7 = vmul.f32 %v5689_v4, %v6554_v41  ;;  %5456 = vmatpush3.bf16.msra.mxu0 %v5453_v10 }
 0x542   :  { %5700 = vrcp.f32 %v1109_v34 }
 0x543   :  { %v5691_v37 = vpop.eup %5690  ;;  %5019 = vmatprep.mubr.msk.f32.mxu0 %vm938_vm4, %v1181_v7 }
 0x544   :  { %v5693_v26 = vpop.eup %5692  ;;  %v1118_v28 = vpop.xlane.xlu1 %1117  ;;  %5020 = vmatmul.mubr.msk.f32.gmra.mrb[12].mxu0 %vm938_vm4, %v1182_v63  ;;  %v1184_v2 = vmul.f32 %v5691_v37, %v6562_v58 }
 0x545   :  { %5702 = vrcp.f32 %v1118_v28  ;;  %v1115_v15 = vpop.xlane.xlu0 %1114  ;;  %v1183_v62 = vmul.f32 %v5693_v26, %v6564_v60 }
 0x546   :  { %5704 = vrcp.f32 %v1115_v15 }
 0x547   :  { %v5695_v49 = vpop.eup %5694  ;;  %5022 = vmatprep.mubr.msk.f32.mxu0 %vm938_vm4, %v1183_v62 }
 0x548   :  { %v5697_v41 = vpop.eup %5696  ;;  %v1124_v18 = vpop.xlane.xlu1 %1123  ;;  %5023 = vmatmul.mubr.msk.f32.gmra.mrb[14].mxu0 %vm938_vm4, %v1184_v2  ;;  %v1186_v0 = vmul.f32 %v5695_v49, %v6572_v5  ;;  %v188_v49 = vld [vmem:[%s7941_s6 + $0xc0] sm:$0xf] }
 0x549   :  { %5706 = vrcp.f32 %v1124_v18  ;;  %v1121_v38 = vpop.xlane.xlu0 %1120  ;;  %v1185_v6 = vmul.f32 %v5697_v41, %v6574_v9 }
 0x54a   :  { %5708 = vrcp.f32 %v1121_v38  ;;  %v6724_v38 = vrot.slane %v188_v49, %v6184_v39 }
 0x54b   :  { %v5699_v27 = vpop.eup %5698  ;;  %5025 = vmatprep.mubr.msk.f32.mxu0 %vm938_vm4, %v1185_v6 }
 0x54c   :  { %v5701_v60 = vpop.eup %5700  ;;  %v1130_v17 = vpop.xlane.xlu1 %1129  ;;  %5026 = vmatmul.mubr.msk.f32.gmra.mrb[16].mxu0 %vm938_vm4, %v1186_v0  ;;  %v1188_v23 = vmul.f32 %v5699_v27, %v6582_v14 }
 0x54d   :  { %5710 = vrcp.f32 %v1130_v17  ;;  %v1127_v58 = vpop.xlane.xlu0 %1126  ;;  %v1187_v36 = vmul.f32 %v5701_v60, %v6584_v19 }
 0x54e   :  { %5712 = vrcp.f32 %v1127_v58 }
 0x54f   :  { %v5703_v25 = vpop.eup %5702  ;;  %5028 = vmatprep.mubr.msk.f32.mxu0 %vm938_vm4, %v1187_v36 }
 0x550   :  { %v5705_v9 = vpop.eup %5704  ;;  %v1136_v10 = vpop.xlane.xlu1 %1135  ;;  %5029 = vmatmul.mubr.msk.f32.gmra.mrb[18].mxu0 %vm938_vm4, %v1188_v23  ;;  %v1190_v44 = vmul.f32 %v5703_v25, %v6592_v29 }
 0x551   :  { %5714 = vrcp.f32 %v1136_v10  ;;  %v1133_v5 = vpop.xlane.xlu0 %1132  ;;  %v1189_v40 = vmul.f32 %v5705_v9, %v6594_v30 }
 0x552   :  { %5716 = vrcp.f32 %v1133_v5 }
 0x553   :  { %v5707_v11 = vpop.eup %5706  ;;  %5031 = vmatprep.mubr.msk.f32.mxu0 %vm938_vm4, %v1189_v40 }
 0x554   :  { %v5709_v19 = vpop.eup %5708  ;;  %v1142_v50 = vpop.xlane.xlu1 %1141  ;;  %5032 = vmatmul.mubr.msk.f32.gmra.mrb[20].mxu0 %vm938_vm4, %v1190_v44  ;;  %v1192_v56 = vmul.f32 %v5707_v11, %v6602_v48 }
 0x555   :  { %5718 = vrcp.f32 %v1142_v50  ;;  %v1139_v14 = vpop.xlane.xlu0 %1138  ;;  %v1191_v53 = vmul.f32 %v5709_v19, %v6604_v33 }
 0x556   :  { %5720 = vrcp.f32 %v1139_v14 }
 0x557   :  { %v5711_v35 = vpop.eup %5710  ;;  %5034 = vmatprep.mubr.msk.f32.mxu0 %vm938_vm4, %v1191_v53  ;;  %v6735_v53 = vrot.slane %v188_v49, %v6187_v43 }
 0x558   :  { %v5713_v30 = vpop.eup %5712  ;;  %v1148_v20 = vpop.xlane.xlu1 %1147  ;;  %5035 = vmatmul.mubr.msk.f32.gmra.mrb[22].mxu0 %vm938_vm4, %v1192_v56  ;;  %v1194_v47 = vmul.f32 %v5711_v35, %v6612_v61 }
 0x559   :  { %5722 = vrcp.f32 %v1148_v20  ;;  %v1145_v29 = vpop.xlane.xlu0 %1144  ;;  %v1193_v59 = vmul.f32 %v5713_v30, %v6614_v42 }
 0x55a   :  { %5724 = vrcp.f32 %v1145_v29 }
 0x55b   :  { %v5715_v24 = vpop.eup %5714  ;;  %5037 = vmatprep.mubr.msk.f32.mxu0 %vm938_vm4, %v1193_v59 }
 0x55c   :  { %v5717_v33 = vpop.eup %5716  ;;  %v1154_v3 = vpop.xlane.xlu1 %1153  ;;  %5038 = vmatmul.mubr.msk.f32.gmra.mrb[24].mxu0 %vm938_vm4, %v1194_v47  ;;  %v1196_v4 = vmul.f32 %v5715_v24, %v6622_v55 }
 0x55d   :  { %5726 = vrcp.f32 %v1154_v3  ;;  %v1151_v48 = vpop.xlane.xlu0 %1150  ;;  %v1195_v54 = vmul.f32 %v5717_v33, %v6624_v22 }
 0x55e   :  { %5728 = vrcp.f32 %v1151_v48 }
 0x55f   :  { %v5719_v45 = vpop.eup %5718  ;;  %5040 = vmatprep.mubr.msk.f32.mxu0 %vm938_vm4, %v1195_v54 }
 0x560   :  { %v5721_v42 = vpop.eup %5720  ;;  %5041 = vmatmul.mubr.msk.f32.gmra.mrb[26].mxu0 %vm938_vm4, %v1196_v4  ;;  %v1198_v34 = vmul.f32 %v5719_v45, %v6630_v57 }
 0x561   :  { %v1197_v61 = vmul.f32 %v5721_v42, %v6632_v52 }
 0x563   :  { %v5723_v7 = vpop.eup %5722  ;;  %5043 = vmatprep.mubr.msk.f32.mxu0 %vm938_vm4, %v1197_v61 }
 0x564   :  { %v5725_v63 = vpop.eup %5724  ;;  %5044 = vmatmul.mubr.msk.f32.gmra.mrb[28].mxu0 %vm938_vm4, %v1198_v34  ;;  %v1200_v55 = vmul.f32 %v5723_v7, %v6638_v21  ;;  %v1521_v21 = vld [vmem:[%s7938_s3 + $0x78] sm:$0xff] }
 0x565   :  { %v1199_v22 = vmul.f32 %v5725_v63, %v6640_v8  ;;  %v1520_v8 = vld [vmem:[%s7938_s3 + $0x70] sm:$0xff] }
 0x566   :  { %v5457_v28 = vpack.c.bf16 %v1521_v21, %v1520_v8 }
 0x567   :  { %v5727_v37 = vpop.eup %5726  ;;  %5046 = vmatprep.mubr.msk.f32.mxu0 %vm938_vm4, %v1199_v22 }
 0x568   :  { %v5729_v26 = vpop.eup %5728  ;;  %5047 = vmatmul.mubr.msk.f32.gmra.mrb[30].mxu0 %vm938_vm4, %v1200_v55  ;;  %v1202_v57 = vmul.f32 %v5727_v37, %v6646_v13  ;;  %5458 = vmatprep.subr.bf16.mxu0 %v5457_v28  ;;  %v6715_v13 = vsub.s32 0, %v6181_v32  ;;  %v6746_v55 = vrot.slane %v188_v49, %v6227_v12 }
 0x569   :  { %v1201_v52 = vmul.f32 %v5729_v26, %v6648_v46  ;;  %5460 = vmatpush3.bf16.msra.mxu0 %v5457_v28 }
 0x56a   :  { %v6721_v18 = vrot.slane %v188_v49, %v6715_v13 }
 0x56b   :  { %5049 = vmatprep.mubr.msk.f32.mxu0 %vm938_vm4, %v1201_v52 }
 0x56c   :  { %5050 = vmatmul.mubr.msk.f32.gmra.mrb[32].mxu0 %vm938_vm4, %v1202_v57 }
 0x613   :  { %v5018_v15 = vpop.f32.mrb[10].mxu0 }
 0x614   :  { %v1341_v62 = vpop.f32.mrb[11].mxu0  ;;  %v1465_v27 = vmul.f32 %v5018_v15, %v6721_v18 }
 0x615   :  { %v1464_v58 = vmul.f32 %v6721_v18, %v1341_v62 }
 0x617   :  { %v5021_v46 = vpop.f32.mrb[12].mxu0 }
 0x618   :  { %v1351_v2 = vpop.f32.mrb[13].mxu0  ;;  %v1467_v10 = vmul.f32 %v5021_v46, %v6721_v18 }
 0x619   :  { %v1466_v44 = vmul.f32 %v6721_v18, %v1351_v2 }
 0x61b   :  { %v5024_v41 = vpop.f32.mrb[14].mxu0 }
 0x61c   :  { %v1361_v6 = vpop.f32.mrb[15].mxu0  ;;  %v1469_v56 = vmul.f32 %v5024_v41, %v6721_v18 }
 0x61d   :  { %v1468_v20 = vmul.f32 %v6721_v18, %v1361_v6 }
 0x61f   :  { %v5027_v0 = vpop.f32.mrb[16].mxu0 }
 0x620   :  { %v1475_v60 = vmul.f32 %v5027_v0, %v6724_v38  ;;  %v1371_v17 = vpop.f32.mrb[17].mxu0 }
 0x621   :  { %v1474_v36 = vmul.f32 %v6724_v38, %v1371_v17 }
 0x622   :  { %v1481_v23 = vadd.f32 %v1475_v60, %v1465_v27 }
 0x623   :  { %v1480_v25 = vadd.f32 %v1474_v36, %v1464_v58  ;;  %v5030_v9 = vpop.f32.mrb[18].mxu0 }
 0x624   :  { %v1477_v5 = vmul.f32 %v5030_v9, %v6724_v38  ;;  %v1381_v40 = vpop.f32.mrb[19].mxu0 }
 0x625   :  { %v1476_v11 = vmul.f32 %v6724_v38, %v1381_v40 }
 0x626   :  { %v1483_v19 = vadd.f32 %v1477_v5, %v1467_v10  ;;  %v1524_v10 = vsub.s32 6, %v6181_v32 }
 0x627   :  { %v1482_v50 = vadd.f32 %v1476_v11, %v1466_v44  ;;  %v5033_v14 = vpop.f32.mrb[20].mxu0 }
 0x628   :  { %v1479_v35 = vmul.f32 %v5033_v14, %v6724_v38  ;;  %v1391_v30 = vpop.f32.mrb[21].mxu0  ;;  %v1525_v5 = vrot.slane %v6093_v16, %v1524_v10 }
 0x629   :  { %v1478_v29 = vmul.f32 %v6724_v38, %v1391_v30 }
 0x62a   :  { %v1485_v59 = vadd.f32 %v1479_v35, %v1469_v56  ;;  %v5923_v56 = vld [vmem:[#allocation2] sm:$0xff] }
 0x62b   :  { %v1484_v47 = vadd.f32 %v1478_v29, %v1468_v20  ;;  %v5036_v24 = vpop.f32.mrb[22].mxu0 }
 0x62c   :  { %v1491_v33 = vmul.f32 %v5036_v24, %v6735_v53  ;;  %v1401_v3 = vpop.f32.mrb[23].mxu0 }
 0x62d   :  { %v1490_v48 = vmul.f32 %v6735_v53, %v1401_v3 }
 0x62e   :  { %v1497_v54 = vadd.f32 %v1491_v33, %v1481_v23  ;;  %v5924_v33 = vld [vmem:[#allocation2 + $0x18] sm:$0xff] }
 0x62f   :  { %v1496_v4 = vadd.f32 %v1490_v48, %v1480_v25  ;;  %v5039_v45 = vpop.f32.mrb[24].mxu0  ;;  %v5925_v48 = vld [vmem:[#allocation2 + $0x10] sm:$0xff] }
 0x630   :  { %v1493_v42 = vmul.f32 %v5039_v45, %v6735_v53  ;;  %v1411_v61 = vpop.f32.mrb[25].mxu0 }
 0x631   :  { %v1492_v34 = vmul.f32 %v6735_v53, %v1411_v61 }
 0x632   :  { %v1499_v7 = vadd.f32 %v1493_v42, %v1483_v19 }
 0x633   :  { %v1498_v63 = vadd.f32 %v1492_v34, %v1482_v50  ;;  %v5042_v22 = vpop.f32.mrb[26].mxu0  ;;  %v5922_v50 = vld [vmem:[#allocation2 + $0x8] sm:$0xff] }
 0x634   :  { %v1495_v37 = vmul.f32 %v5042_v22, %v6735_v53  ;;  %v1421_v26 = vpop.f32.mrb[27].mxu0 }
 0x635   :  { %v1494_v52 = vmul.f32 %v6735_v53, %v1421_v26 }
 0x636   :  { %v1501_v57 = vadd.f32 %v1495_v37, %v1485_v59  ;;  %v5927_v37 = vld [vmem:[#allocation2 + $0x20] sm:$0xff] }
 0x637   :  { %v1500_v8 = vadd.f32 %v1494_v52, %v1484_v47  ;;  %v5045_v21 = vpop.f32.mrb[28].mxu0 }
 0x638   :  { %v1507_v28 = vmul.f32 %v5045_v21, %v6746_v55  ;;  %v1431_v15 = vpop.f32.mrb[29].mxu0  ;;  %v1744_v21 = vld [vmem:[%s7939_s4 + $0x10] sm:$0xff] }
 0x639   :  { %v1506_v62 = vmul.f32 %v6746_v55, %v1431_v15 }
 0x63a   :  { %v1513_v46 = vadd.f32 %v1507_v28, %v1497_v54  ;;  %v1745_v28 = vld [vmem:[%s7939_s4 + $0x18] sm:$0xff] }
 0x63b   :  { %v1512_v2 = vadd.f32 %v1506_v62, %v1496_v4  ;;  %v5048_v41 = vpop.f32.mrb[30].mxu0  ;;  %v1746_v62 = vld [vmem:[%s7939_s4 + $0x20] sm:$0xff] }
 0x63c   :  { %v1509_v6 = vmul.f32 %v5048_v41, %v6746_v55  ;;  %v1441_v49 = vpop.f32.mrb[31].mxu0 }
 0x63d   :  { %v1508_v0 = vmul.f32 %v6746_v55, %v1441_v49  ;;  %5060 = vmatprep.mubr.msk.f32.mxu0 %vm148_vm1, %v1512_v2 }
 0x63e   :  { %v1515_v27 = vadd.f32 %v1509_v6, %v1499_v7  ;;  %5061 = vmatmul.mubr.msk.f32.vlgmr.msra.gmra.mrb[34].mxu0 %vm148_vm1, %v1513_v46  ;;  %v5465_v46 = vpack.c.bf16 %v1746_v62, %v1745_v28 }
 0x63f   :  { %v1514_v60 = vadd.f32 %v1508_v0, %v1498_v63  ;;  %v5051_v17 = vpop.f32.mrb[32].mxu0  ;;  %v5926_v63 = vld [vmem:[#allocation2 + $0x28] sm:$0xff] }
 0x640   :  { %v1511_v58 = vmul.f32 %v5051_v17, %v6746_v55  ;;  %v1451_v36 = vpop.f32.mrb[33].mxu0 }
 0x641   :  { %v1510_v23 = vmul.f32 %v6746_v55, %v1451_v36  ;;  %5063 = vmatprep.mubr.msk.f32.mxu0 %vm148_vm1, %v1514_v60 }
 0x642   :  { %v1517_v25 = vadd.f32 %v1511_v58, %v1501_v57  ;;  %5064 = vmatmul.mubr.msk.f32.gmra.mrb[36].mxu0 %vm148_vm1, %v1515_v27 }
 0x643   :  { %v1516_v9 = vadd.f32 %v1510_v23, %v1500_v8  ;;  %v1743_v8 = vld [vmem:[%s7939_s4 + $0x8] sm:$0xff] }
 0x644   :  { %v5461_v15 = vpack.c.bf16 %v1744_v21, %v1743_v8 }
 0x645   :  { %5066 = vmatprep.mubr.msk.f32.mxu0 %vm148_vm1, %v1516_v9 }
 0x646   :  { %5067 = vmatmul.mubr.msk.f32.gmra.mrb[38].mxu0 %vm148_vm1, %v1517_v25  ;;  %5462 = vmatprep.subr.bf16.mxu1 %v5461_v15 }
 0x647   :  { %5464 = vmatpush3.bf16.msra.mxu1 %v5461_v15 }
 0x648   :  { %5466 = vmatprep.subr.bf16.mxu1 %v5465_v46 }
 0x64b   :  { %5468 = vmatpush3.bf16.msra.mxu1 %v5465_v46 }
 0x711   :  { %v5062_v40 = vpop.f32.mrb[34].mxu0 }
 0x712   :  { %v1616_v44 = vadd.f32 %v5062_v40, %v1525_v5  ;;  %v1610_v11 = vpop.f32.mrb[35].mxu0 }
 0x713   :  { %v1611_v19 = vadd.f32 %v1610_v11, %v1525_v5 }
 0x714   :  { %v6766_v14 = vadd.f32 %v5922_v50, %v1616_v44 }
 0x715   :  { %v6768_v35 = vadd.f32 %v5923_v56, %v1611_v19  ;;  %v5065_v30 = vpop.f32.mrb[36].mxu0 }
 0x716   :  { %v1626_v20 = vadd.f32 %v5065_v30, %v1525_v5  ;;  %v1620_v29 = vpop.f32.mrb[37].mxu0  ;;  %v1648_v59 = vsel %vm148_vm1, %v6766_v14, 0.0 }
 0x717   :  { %v1621_v47 = vadd.f32 %v1620_v29, %v1525_v5  ;;  %1649 = vadd.xlane.f32.xlu1 %v1648_v59  ;;  %v1645_v24 = vsel %vm148_vm1, %v6768_v35, 0.0 }
 0x718   :  { %v6774_v3 = vadd.f32 %v5924_v33, %v1626_v20  ;;  %1646 = vadd.xlane.f32.xlu0 %v1645_v24 }
 0x719   :  { %v6776_v54 = vadd.f32 %v5925_v48, %v1621_v47  ;;  %v5068_v4 = vpop.f32.mrb[38].mxu0 }
 0x71a   :  { %v1636_v45 = vadd.f32 %v5068_v4, %v1525_v5  ;;  %v1630_v42 = vpop.f32.mrb[39].mxu0  ;;  %v1654_v61 = vsel %vm148_vm1, %v6774_v3, 0.0 }
 0x71b   :  { %v1631_v34 = vadd.f32 %v1630_v42, %v1525_v5  ;;  %1655 = vadd.xlane.f32.xlu1 %v1654_v61  ;;  %v1651_v7 = vsel %vm148_vm1, %v6776_v54, 0.0 }
 0x71c   :  { %v6782_v22 = vadd.f32 %v5926_v63, %v1636_v45  ;;  %1652 = vadd.xlane.f32.xlu0 %v1651_v7 }
 0x71d   :  { %v6784_v26 = vadd.f32 %v5927_v37, %v1631_v34 }
 0x71e   :  { %v1660_v52 = vsel %vm148_vm1, %v6782_v22, 0.0 }
 0x71f   :  { %1661 = vadd.xlane.f32.xlu1 %v1660_v52  ;;  %v1657_v57 = vsel %vm148_vm1, %v6784_v26, 0.0 }
 0x720   :  { %1658 = vadd.xlane.f32.xlu0 %v1657_v57 }
 0x7a4   :  { %v1650_v2 = vpop.xlane.xlu1 %1649 }
 0x7a5   :  { %v1664_v41 = vmul.f32 0.03125, %v1650_v2  ;;  %v1647_v6 = vpop.xlane.xlu0 %1646 }
 0x7a6   :  { %v1663_v49 = vmul.f32 0.03125, %v1647_v6 }
 0x7a7   :  { %v1670_v0 = vsub.f32 %v6766_v14, %v1664_v41  ;;  %v1725_v41 = vsub.s32 7, %v6181_v32 }
 0x7a8   :  { %v1669_v27 = vsub.f32 %v6768_v35, %v1663_v49  ;;  %v1656_v60 = vpop.xlane.xlu1 %1655 }
 0x7a9   :  { %v1666_v17 = vmul.f32 0.03125, %v1656_v60  ;;  %v1653_v58 = vpop.xlane.xlu0 %1652  ;;  %v1676_v36 = vmul.f32 %v1670_v0, %v1670_v0 }
 0x7aa   :  { %v1665_v23 = vmul.f32 0.03125, %v1653_v58  ;;  %v1675_v25 = vmul.f32 %v1669_v27, %v1669_v27  ;;  %v1726_v58 = vrot.slane %v6093_v16, %v1725_v41 }
 0x7ab   :  { %v1672_v9 = vsub.f32 %v6774_v3, %v1666_v17  ;;  %v1684_v5 = vsel %vm148_vm1, %v1676_v36, 0.0  ;;  %v6818_v17 = vld [vmem:[%s7940_s5 + $0x8] sm:$0xff] }
 0x7ac   :  { %v1671_v40 = vsub.f32 %v6776_v54, %v1665_v23  ;;  %1685 = vadd.xlane.f32.xlu1 %v1684_v5  ;;  %v1662_v44 = vpop.xlane.xlu1 %1661  ;;  %v1681_v11 = vsel %vm148_vm1, %v1675_v25, 0.0  ;;  %v1736_v5 = vrot.slane %v6818_v17, %v6715_v13 }
 0x7ad   :  { %v1668_v19 = vmul.f32 0.03125, %v1662_v44  ;;  %1682 = vadd.xlane.f32.xlu0 %v1681_v11  ;;  %v1659_v50 = vpop.xlane.xlu0 %1658  ;;  %v1678_v56 = vmul.f32 %v1672_v9, %v1672_v9 }
 0x7ae   :  { %v1667_v30 = vmul.f32 0.03125, %v1659_v50  ;;  %v1677_v20 = vmul.f32 %v1671_v40, %v1671_v40 }
 0x7af   :  { %v1674_v29 = vsub.f32 %v6782_v22, %v1668_v19  ;;  %v1690_v59 = vsel %vm148_vm1, %v1678_v56, 0.0 }
 0x7b0   :  { %v1673_v47 = vsub.f32 %v6784_v26, %v1667_v30  ;;  %1691 = vadd.xlane.f32.xlu1 %v1690_v59  ;;  %v1687_v24 = vsel %vm148_vm1, %v1677_v20, 0.0 }
 0x7b1   :  { %1688 = vadd.xlane.f32.xlu0 %v1687_v24  ;;  %v1680_v33 = vmul.f32 %v1674_v29, %v1674_v29 }
 0x7b2   :  { %v1679_v48 = vmul.f32 %v1673_v47, %v1673_v47 }
 0x7b3   :  { %v1696_v4 = vsel %vm148_vm1, %v1680_v33, 0.0 }
 0x7b4   :  { %1697 = vadd.xlane.f32.xlu1 %v1696_v4  ;;  %v1693_v45 = vsel %vm148_vm1, %v1679_v48, 0.0 }
 0x7b5   :  { %1694 = vadd.xlane.f32.xlu0 %v1693_v45 }
 0x839   :  { %v1686_v42 = vpop.xlane.xlu1 %1685 }
 0x83a   :  { %v1700_v61 = vmul.f32 0.03125, %v1686_v42  ;;  %v1683_v34 = vpop.xlane.xlu0 %1682 }
 0x83b   :  { %v1699_v7 = vmul.f32 0.03125, %v1683_v34 }
 0x83c   :  { %v1706_v63 = vadd.f32 1e-05, %v1700_v61 }
 0x83d   :  { %v1705_v37 = vadd.f32 1e-05, %v1699_v7  ;;  %v1692_v52 = vpop.xlane.xlu1 %1691  ;;  %v2020_v7 = vld [vmem:[%s7938_s3 + $0x80] sm:$0xff] }
 0x83e   :  { %5730 = vrsqrt.f32 %v1706_v63  ;;  %v1702_v57 = vmul.f32 0.03125, %v1692_v52  ;;  %v1689_v8 = vpop.xlane.xlu0 %1688  ;;  %v2022_v63 = vld [vmem:[%s7938_s3 + $0x90] sm:$0xff] }
 0x83f   :  { %5732 = vrsqrt.f32 %v1705_v37  ;;  %v1701_v21 = vmul.f32 0.03125, %v1689_v8  ;;  %v2023_v37 = vld [vmem:[%s7938_s3 + $0x98] sm:$0xff]  ;;  %v2025_v8 = vld [vmem:[%s7938_s3 + $0xa8] sm:$0xff] }
 0x840   :  { %v1708_v28 = vadd.f32 1e-05, %v1702_v57  ;;  %v5473_v52 = vpack.c.bf16 %v2023_v37, %v2022_v63  ;;  %v2024_v57 = vld [vmem:[%s7938_s3 + $0xa0] sm:$0xff] }
 0x841   :  { %v1707_v15 = vadd.f32 1e-05, %v1701_v21  ;;  %v1698_v62 = vpop.xlane.xlu1 %1697  ;;  %v5477_v21 = vpack.c.bf16 %v2025_v8, %v2024_v57 }
 0x842   :  { %5734 = vrsqrt.f32 %v1708_v28  ;;  %v1704_v46 = vmul.f32 0.03125, %v1698_v62  ;;  %v1695_v2 = vpop.xlane.xlu0 %1694  ;;  %v2026_v28 = vld [vmem:[%s7938_s3 + $0xb0] sm:$0xff] }
 0x843   :  { %5736 = vrsqrt.f32 %v1707_v15  ;;  %v1703_v6 = vmul.f32 0.03125, %v1695_v2  ;;  %v2027_v15 = vld [vmem:[%s7938_s3 + $0xb8] sm:$0xff]  ;;  %v2029_v2 = vld [vmem:[%s7938_s3 + $0xc8] sm:$0xff] }
 0x844   :  { %v1710_v49 = vadd.f32 1e-05, %v1704_v46  ;;  %v5481_v62 = vpack.c.bf16 %v2027_v15, %v2026_v28  ;;  %v2028_v46 = vld [vmem:[%s7938_s3 + $0xc0] sm:$0xff] }
 0x845   :  { %v1709_v60 = vadd.f32 1e-05, %v1703_v6  ;;  %v5485_v6 = vpack.c.bf16 %v2029_v2, %v2028_v46 }
 0x846   :  { %5738 = vrsqrt.f32 %v1710_v49  ;;  %v2030_v49 = vld [vmem:[%s7938_s3 + $0xd0] sm:$0xff] }
 0x847   :  { %5740 = vrsqrt.f32 %v1709_v60  ;;  %v2031_v60 = vld [vmem:[%s7938_s3 + $0xd8] sm:$0xff] }
 0x848   :  { %v5731_v36 = vpop.eup %5730 }
 0x849   :  { %v5733_v23 = vpop.eup %5732  ;;  %v1718_v25 = vmul.f32 %v5731_v36, %v1670_v0  ;;  %v2032_v36 = vld [vmem:[%s7938_s3 + $0xe0] sm:$0xff] }
 0x84a   :  { %v1717_v44 = vmul.f32 %v5733_v23, %v1669_v27  ;;  %v2033_v23 = vld [vmem:[%s7938_s3 + $0xe8] sm:$0xff] }
 0x84b   :  { %v1728_v11 = vmul.f32 %v1726_v58, %v1718_v25  ;;  %v5493_v25 = vpack.c.bf16 %v2033_v23, %v2032_v36 }
 0x84c   :  { %v5735_v19 = vpop.eup %5734  ;;  %v1727_v50 = vmul.f32 %v1726_v58, %v1717_v44  ;;  %v2035_v44 = vld [vmem:[%s7938_s3 + $0xf8] sm:$0xff] }
 0x84d   :  { %v5737_v56 = vpop.eup %5736  ;;  %v1720_v30 = vmul.f32 %v5735_v19, %v1672_v9  ;;  %v1738_v24 = vadd.f32 %v1736_v5, %v1728_v11  ;;  %v33_v19 = vld [vmem:[%s7939_s4] sm:$0xff] }
 0x84e   :  { %v1737_v20 = vadd.f32 %v1736_v5, %v1727_v50  ;;  %v1719_v59 = vmul.f32 %v5737_v56, %v1671_v40  ;;  %v1750_v50 = vrot.slane %v33_v19, %v6715_v13 }
 0x84f   :  { %v1730_v33 = vmul.f32 %v1726_v58, %v1720_v30 }
 0x850   :  { %v5739_v48 = vpop.eup %5738  ;;  %5077 = vmatprep.mubr.msk.f32.mxu1 %vm148_vm1, %v1737_v20  ;;  %v1729_v16 = vmul.f32 %v1726_v58, %v1719_v59 }
 0x851   :  { %v5741_v4 = vpop.eup %5740  ;;  %5078 = vmatmul.mubr.msk.f32.vlgmr.msra.gmra.mrb[36].mxu1 %vm148_vm1, %v1738_v24  ;;  %v1722_v0 = vmul.f32 %v5739_v48, %v1674_v29  ;;  %v1740_v27 = vadd.f32 %v1736_v5, %v1730_v33  ;;  %v2021_v29 = vld [vmem:[%s7938_s3 + $0x88] sm:$0xff] }
 0x852   :  { %v1739_v45 = vadd.f32 %v1736_v5, %v1729_v16  ;;  %v1721_v42 = vmul.f32 %v5741_v4, %v1673_v47  ;;  %v5469_v47 = vpack.c.bf16 %v2021_v29, %v2020_v7 }
 0x853   :  { %v1732_v61 = vmul.f32 %v1726_v58, %v1722_v0 }
 0x854   :  { %5080 = vmatprep.mubr.msk.f32.mxu1 %vm148_vm1, %v1739_v45  ;;  %v1731_v34 = vmul.f32 %v1726_v58, %v1721_v42  ;;  %5470 = vmatprep.subr.bf16.mxu0 %v5469_v47  ;;  %v5489_v58 = vpack.c.bf16 %v2031_v60, %v2030_v49 }
 0x855   :  { %5081 = vmatmul.mubr.msk.f32.gmra.mrb[38].mxu1 %vm148_vm1, %v1740_v27  ;;  %v1742_v40 = vadd.f32 %v1736_v5, %v1732_v61  ;;  %5472 = vmatpush3.bf16.msra.mxu0 %v5469_v47 }
 0x856   :  { %v1741_v9 = vadd.f32 %v1736_v5, %v1731_v34  ;;  %5474 = vmatprep.subr.bf16.mxu0 %v5473_v52  ;;  %v2034_v5 = vld [vmem:[%s7938_s3 + $0xf0] sm:$0xff] }
 0x857   :  { %v5497_v11 = vpack.c.bf16 %v2035_v44, %v2034_v5 }
 0x858   :  { %5083 = vmatprep.mubr.msk.f32.mxu1 %vm148_vm1, %v1741_v9 }
 0x859   :  { %5084 = vmatmul.mubr.msk.f32.gmra.mrb[40].mxu1 %vm148_vm1, %v1742_v40  ;;  %5476 = vmatpush3.bf16.msra.mxu0 %v5473_v52 }
 0x85a   :  { %5478 = vmatprep.subr.bf16.mxu0 %v5477_v21 }
 0x85d   :  { %5480 = vmatpush3.bf16.msra.mxu0 %v5477_v21 }
 0x85e   :  { %5482 = vmatprep.subr.bf16.mxu0 %v5481_v62 }
 0x861   :  { %5484 = vmatpush3.bf16.msra.mxu0 %v5481_v62 }
 0x862   :  { %5486 = vmatprep.subr.bf16.mxu0 %v5485_v6 }
 0x865   :  { %5488 = vmatpush3.bf16.msra.mxu0 %v5485_v6 }
 0x866   :  { %5490 = vmatprep.subr.bf16.mxu0 %v5489_v58 }
 0x869   :  { %5492 = vmatpush3.bf16.msra.mxu0 %v5489_v58 }
 0x86a   :  { %5494 = vmatprep.subr.bf16.mxu0 %v5493_v25 }
 0x86d   :  { %5496 = vmatpush3.bf16.msra.mxu0 %v5493_v25 }
 0x86e   :  { %5498 = vmatprep.subr.bf16.mxu0 %v5497_v11 }
 0x871   :  { %5500 = vmatpush3.bf16.msra.mxu0 %v5497_v11 }
 0x924   :  { %v5079_v56 = vpop.f32.mrb[36].mxu1 }
 0x925   :  { %v6883_v30 = vadd.f32 %v5079_v56, %v1750_v50  ;;  %v1835_v20 = vpop.f32.mrb[37].mxu1 }
 0x926   :  { %v6885_v59 = vadd.f32 %v1835_v20, %v1750_v50 }
 0x927   :  { %v6888_v24 = vmul.f32 0.70710677, %v6883_v30 }
 0x928   :  { %v6891_v33 = vmul.f32 0.70710677, %v6885_v59  ;;  %v5082_v48 = vpop.f32.mrb[38].mxu1 }
 0x929   :  { %v1889_v16 = vand.u32 2147483647, %v6888_v24  ;;  %v6894_v4 = vadd.f32 %v5082_v48, %v1750_v50  ;;  %v1845_v0 = vpop.f32.mrb[39].mxu1  ;;  %vm1877_vm5 = vcmp.ge.f32.partialorder %v6888_v24, 0.0  ;;  %v1865_v24 = vmul.f32 0.5, %v6883_v30 }
 0x92a   :  { %v1888_v45 = vand.u32 2147483647, %v6891_v33  ;;  %v6897_v42 = vadd.f32 %v1845_v0, %v1750_v50  ;;  %vm1876_vm6 = vcmp.ge.f32.partialorder %v6891_v33, 0.0 }
 0x92b   :  { %v1895_v27 = vmul.f32 0.3275911, %v1889_v16  ;;  %v6900_v34 = vmul.f32 0.70710677, %v6894_v4  ;;  %v1967_v62 = vsub.f32 0.0, %v1889_v16 }
 0x92c   :  { %v1894_v61 = vmul.f32 0.3275911, %v1888_v45  ;;  %v6903_v40 = vmul.f32 0.70710677, %v6897_v42  ;;  %v5085_v7 = vpop.f32.mrb[40].mxu1  ;;  %v1966_v49 = vsub.f32 0.0, %v1888_v45 }
 0x92d   :  { %v1901_v9 = vadd.f32 1.0, %v1895_v27  ;;  %v1891_v47 = vand.u32 2147483647, %v6900_v34  ;;  %v1855_v63 = vpop.f32.mrb[41].mxu1  ;;  %v6907_v57 = vadd.f32 %v5085_v7, %v1750_v50  ;;  %v1973_v36 = vmul.f32 %v1967_v62, %v1889_v16 }
 0x92e   :  { %v1900_v29 = vadd.f32 1.0, %v1894_v61  ;;  %v1890_v52 = vand.u32 2147483647, %v6903_v40  ;;  %v6909_v21 = vadd.f32 %v1855_v63, %v1750_v50  ;;  %v1972_v50 = vmul.f32 %v1966_v49, %v1888_v45 }
 0x92f   :  { %5742 = vrcp.f32 %v1901_v9  ;;  %v1897_v37 = vmul.f32 0.3275911, %v1891_v47  ;;  %v6912_v15 = vmul.f32 0.70710677, %v6907_v57  ;;  %v1969_v5 = vsub.f32 0.0, %v1891_v47 }
 0x930   :  { %5744 = vrcp.f32 %v1900_v29  ;;  %v1896_v28 = vmul.f32 0.3275911, %v1890_v52  ;;  %v6915_v46 = vmul.f32 0.70710677, %v6909_v21  ;;  %v1980_v0 = vmul.f32 1.442695, %v1973_v36 }
 0x931   :  { %v1903_v8 = vadd.f32 1.0, %v1897_v37  ;;  %v1893_v6 = vand.u32 2147483647, %v6912_v15  ;;  %v1975_v27 = vmul.f32 %v1969_v5, %v1891_v47  ;;  %v1968_v61 = vsub.f32 0.0, %v1890_v52 }
 0x932   :  { %v1902_v2 = vadd.f32 1.0, %v1896_v28  ;;  %v1892_v60 = vand.u32 2147483647, %v6915_v46  ;;  %v1978_v16 = vmul.f32 1.442695, %v1972_v50  ;;  %vm1879_vm7 = vcmp.ge.f32.partialorder %v6900_v34, 0.0 }
 0x933   :  { %5746 = vrcp.f32 %v1903_v8  ;;  %v1899_v58 = vmul.f32 0.3275911, %v1893_v6  ;;  %v1971_v63 = vsub.f32 0.0, %v1893_v6  ;;  %v1984_v62 = vmul.f32 1.442695, %v1975_v27 }
 0x934   :  { %5748 = vrcp.f32 %v1902_v2  ;;  %v1898_v23 = vmul.f32 0.3275911, %v1892_v60  ;;  %v1974_v2 = vmul.f32 %v1968_v61, %v1890_v52  ;;  %v1970_v47 = vsub.f32 0.0, %v1892_v60 }
 0x935   :  { %v1905_v44 = vadd.f32 1.0, %v1899_v58  ;;  %v1977_v5 = vmul.f32 %v1971_v63, %v1893_v6  ;;  %vm1878_vm8 = vcmp.ge.f32.partialorder %v6903_v40, 0.0  ;;  %vm1881_vm9 = vcmp.ge.f32.partialorder %v6912_v15, 0.0 }
 0x936   :  { %v1904_v56 = vadd.f32 1.0, %v1898_v23  ;;  %vm1880_vm10 = vcmp.ge.f32.partialorder %v6915_v46, 0.0  ;;  %v1868_v46 = vmul.f32 0.5, %v6909_v21 }
 0x937   :  { %5750 = vrcp.f32 %v1905_v44  ;;  %v1988_v6 = vmul.f32 1.442695, %v1977_v5 }
 0x938   :  { %5752 = vrcp.f32 %v1904_v56 }
 0x939   :  { %v5743_v25 = vpop.eup %5742  ;;  %5754 = vpow2.f32 %v1980_v0 }
 0x93a   :  { %v5745_v11 = vpop.eup %5744  ;;  %v1913_v19 = vmul.f32 1.0614054, %v5743_v25  ;;  %5756 = vpow2.f32 %v1978_v16 }
 0x93b   :  { %v1912_v20 = vmul.f32 1.0614054, %v5745_v11  ;;  %5758 = vpow2.f32 %v1984_v62 }
 0x93c   :  { %v1919_v48 = vadd.f32 -1.4531521, %v1913_v19 }
 0x93d   :  { %v1918_v9 = vadd.f32 -1.4531521, %v1912_v20  ;;  %v6919_v7 = vpop.eup %5746 }
 0x93e   :  { %v1925_v29 = vmul.f32 %v5743_v25, %v1919_v48  ;;  %v1915_v8 = vmul.f32 1.0614054, %v6919_v7  ;;  %v6922_v45 = vpop.eup %5748  ;;  %v1982_v48 = vmul.f32 1.442695, %v1974_v2 }
 0x93f   :  { %v1924_v37 = vmul.f32 %v5745_v11, %v1918_v9  ;;  %v1914_v23 = vmul.f32 1.0614054, %v6922_v45  ;;  %v1976_v9 = vmul.f32 %v1970_v47, %v1892_v60 }
 0x940   :  { %v1931_v28 = vadd.f32 1.4214138, %v1925_v29  ;;  %v1921_v58 = vadd.f32 -1.4531521, %v1915_v8  ;;  %5760 = vpow2.f32 %v1982_v48 }
 0x941   :  { %v1930_v49 = vadd.f32 1.4214138, %v1924_v37  ;;  %v1920_v56 = vadd.f32 -1.4531521, %v1914_v23  ;;  %v6926_v20 = vpop.eup %5750  ;;  %v1986_v60 = vmul.f32 1.442695, %v1976_v9  ;;  %5762 = vpow2.f32 %v1988_v6 }
 0x942   :  { %v1937_v36 = vmul.f32 %v5743_v25, %v1931_v28  ;;  %v1927_v19 = vmul.f32 %v6919_v7, %v1921_v58  ;;  %v6928_v52 = vpop.eup %5752  ;;  %v1917_v16 = vmul.f32 1.0614054, %v6926_v20 }
 0x943   :  { %v1936_v44 = vmul.f32 %v5745_v11, %v1930_v49  ;;  %v1926_v29 = vmul.f32 %v6922_v45, %v1920_v56  ;;  %v1916_v8 = vmul.f32 1.0614054, %v6928_v52  ;;  %v5755_v23 = vpop.eup %5754  ;;  %5764 = vpow2.f32 %v1986_v60 }
 0x944   :  { %v1943_v50 = vadd.f32 -0.28449672, %v1937_v36  ;;  %v1933_v27 = vadd.f32 1.4214138, %v1927_v19  ;;  %v1923_v62 = vadd.f32 -1.4531521, %v1917_v16 }
 0x945   :  { %v1942_v0 = vadd.f32 -0.28449672, %v1936_v44  ;;  %v1932_v49 = vadd.f32 1.4214138, %v1926_v29  ;;  %v1922_v36 = vadd.f32 -1.4531521, %v1916_v8 }
 0x946   :  { %v1949_v61 = vmul.f32 %v5743_v25, %v1943_v50  ;;  %v1939_v37 = vmul.f32 %v6919_v7, %v1933_v27  ;;  %v1929_v19 = vmul.f32 %v6926_v20, %v1923_v62  ;;  %v6003_v8 = vmov -1.0  }
 0x947   :  { %v1948_v63 = vmul.f32 %v5745_v11, %v1942_v0  ;;  %v1938_v47 = vmul.f32 %v6922_v45, %v1932_v49  ;;  %v1928_v56 = vmul.f32 %v6928_v52, %v1922_v36  ;;  %v5757_v0 = vpop.eup %5756 }
 0x948   :  { %v1955_v28 = vadd.f32 0.2548296, %v1949_v61  ;;  %v1945_v58 = vadd.f32 -0.28449672, %v1939_v37  ;;  %v1935_v61 = vadd.f32 1.4214138, %v1929_v19  ;;  %v5759_v37 = vpop.eup %5758 }
 0x949   :  { %v1954_v2 = vadd.f32 0.2548296, %v1948_v63  ;;  %v1944_v48 = vadd.f32 -0.28449672, %v1938_v47  ;;  %v1934_v29 = vadd.f32 1.4214138, %v1928_v56 }
 0x94a   :  { %v1961_v44 = vmul.f32 %v5743_v25, %v1955_v28  ;;  %v1951_v50 = vmul.f32 %v6919_v7, %v1945_v58  ;;  %v1883_v28 = vsel %vm1877_vm5, 1.0, %v6003_v8  ;;  %v1882_v58 = vsel %vm1876_vm6, 1.0, %v6003_v8 }
 0x94b   :  { %v1960_v5 = vmul.f32 %v5745_v11, %v1954_v2  ;;  %v1950_v63 = vmul.f32 %v6922_v45, %v1944_v48  ;;  %v1941_v11 = vmul.f32 %v6926_v20, %v1935_v61  ;;  %v1940_v6 = vmul.f32 %v6928_v52, %v1934_v29 }
 0x94c   :  { %v1991_v27 = vmul.f32 %v5755_v23, %v1961_v44  ;;  %v1957_v9 = vadd.f32 0.2548296, %v1951_v50  ;;  %v5761_v50 = vpop.eup %5760  ;;  %v1864_v56 = vmul.f32 0.5, %v6885_v59  ;;  %v1885_v48 = vsel %vm1879_vm7, 1.0, %v6003_v8 }
 0x94d   :  { %v1990_v25 = vmul.f32 %v5757_v0, %v1960_v5  ;;  %v1956_v36 = vadd.f32 0.2548296, %v1950_v63  ;;  %v1947_v23 = vadd.f32 -0.28449672, %v1941_v11  ;;  %v1946_v47 = vadd.f32 -0.28449672, %v1940_v6  ;;  %v5763_v63 = vpop.eup %5762 }
 0x94e   :  { %v1997_v16 = vsub.f32 1.0, %v1991_v27  ;;  %v1963_v62 = vmul.f32 %v6919_v7, %v1957_v9  ;;  %v1884_v59 = vsel %vm1878_vm8, 1.0, %v6003_v8  ;;  %v1866_v6 = vmul.f32 0.5, %v6897_v42 }
 0x94f   :  { %v1996_v49 = vsub.f32 1.0, %v1990_v25  ;;  %v1962_v5 = vmul.f32 %v6922_v45, %v1956_v36  ;;  %v1953_v7 = vmul.f32 %v6926_v20, %v1947_v23  ;;  %v1952_v27 = vmul.f32 %v6928_v52, %v1946_v47 }
 0x950   :  { %v2003_v2 = vmul.f32 %v1997_v16, %v1883_v28  ;;  %v1993_v60 = vmul.f32 %v5759_v37, %v1963_v62  ;;  %v5765_v37 = vpop.eup %5764  ;;  %v1887_v36 = vsel %vm1881_vm9, 1.0, %v6003_v8  ;;  %v1869_v42 = vmul.f32 0.5, %v6907_v57 }
 0x951   :  { %v2002_v44 = vmul.f32 %v1996_v49, %v1882_v58  ;;  %v1992_v34 = vmul.f32 %v5761_v50, %v1962_v5  ;;  %v1959_v61 = vadd.f32 0.2548296, %v1953_v7  ;;  %v1958_v9 = vadd.f32 0.2548296, %v1952_v27 }
 0x952   :  { %v2009_v19 = vadd.f32 1.0, %v2003_v2  ;;  %v1999_v33 = vsub.f32 1.0, %v1993_v60  ;;  %v1867_v58 = vmul.f32 0.5, %v6894_v4  ;;  %v2039_v4 = vrot.slane %v6818_v17, %v6184_v39 }
 0x953   :  { %v2008_v0 = vadd.f32 1.0, %v2002_v44  ;;  %v1998_v45 = vsub.f32 1.0, %v1992_v34  ;;  %v1965_v16 = vmul.f32 %v6926_v20, %v1959_v61  ;;  %v1964_v11 = vmul.f32 %v6928_v52, %v1958_v9 }
 0x954   :  { %v2005_v30 = vmul.f32 %v1999_v33, %v1885_v48  ;;  %v2015_v29 = vmul.f32 %v2009_v19, %v1865_v24  ;;  %v1886_v52 = vsel %vm1880_vm10, 1.0, %v6003_v8 }
 0x955   :  { %v2014_v25 = vmul.f32 %v2008_v0, %v1864_v56  ;;  %v2004_v40 = vmul.f32 %v1998_v45, %v1884_v59  ;;  %v1995_v28 = vmul.f32 %v5763_v63, %v1965_v16  ;;  %v1994_v62 = vmul.f32 %v5765_v37, %v1964_v11 }
 0x956   :  { %v2011_v49 = vadd.f32 1.0, %v2005_v30 }
 0x957   :  { %5118 = vmatprep.mubr.f32.mxu0 %v2014_v25  ;;  %v2010_v2 = vadd.f32 1.0, %v2004_v40  ;;  %v2001_v20 = vsub.f32 1.0, %v1995_v28  ;;  %v2000_v23 = vsub.f32 1.0, %v1994_v62 }
 0x958   :  { %5119 = vmatmul.mubr.f32.vlgmr.msra.gmra.mrb[40].mxu0 %v2015_v29  ;;  %v2017_v60 = vmul.f32 %v2011_v49, %v1867_v58 }
 0x959   :  { %v2016_v44 = vmul.f32 %v2010_v2, %v1866_v6  ;;  %v2007_v15 = vmul.f32 %v2001_v20, %v1887_v36  ;;  %v2006_v47 = vmul.f32 %v2000_v23, %v1886_v52 }
 0x95b   :  { %5121 = vmatprep.mubr.f32.mxu0 %v2016_v44  ;;  %v2013_v24 = vadd.f32 1.0, %v2007_v15  ;;  %v2012_v19 = vadd.f32 1.0, %v2006_v47 }
 0x95c   :  { %5122 = vmatmul.mubr.f32.gmra.mrb[42].mxu0 %v2017_v60 }
 0x95d   :  { %v2018_v5 = vmul.f32 %v2012_v19, %v1868_v46  ;;  %v2019_v7 = vmul.f32 %v2013_v24, %v1869_v42 }
 0x95f   :  { %5124 = vmatprep.mubr.f32.mxu0 %v2018_v5 }
 0x960   :  { %5125 = vmatmul.mubr.f32.gmra.mrb[44].mxu0 %v2019_v7 }
 0xa2b   :  { %v5120_v50 = vpop.f32.mrb[40].mxu0 }
 0xa2c   :  { %v2112_v56 = vadd.f32 %v5120_v50, %v2039_v4  ;;  %v2106_v0 = vpop.f32.mrb[41].mxu0 }
 0xa2d   :  { %v2107_v33 = vadd.f32 %v2106_v0, %v2039_v4 }
 0xa2e   :  { %v6972_v27 = vadd.f32 %v2112_v56, %v6766_v14 }
 0xa2f   :  { %v6975_v21 = vadd.f32 %v2107_v33, %v6768_v35  ;;  %v5123_v34 = vpop.f32.mrb[42].mxu0 }
 0xa30   :  { %v2144_v57 = vsel %vm148_vm1, %v6972_v27, 0.0  ;;  %v2122_v61 = vadd.f32 %v5123_v34, %v2039_v4  ;;  %v2116_v25 = vpop.f32.mrb[43].mxu0  ;;  %v2239_v34 = vld [vmem:[%s7938_s3 + $0x100] sm:$0xff] }
 0xa31   :  { %2145 = vadd.xlane.f32.xlu1 %v2144_v57  ;;  %v2141_v48 = vsel %vm148_vm1, %v6975_v21, 0.0  ;;  %v2117_v30 = vadd.f32 %v2116_v25, %v2039_v4  ;;  %v2463_v25 = vld [vmem:[%s7938_s3 + $0x140] sm:$0xff] }
 0xa32   :  { %2142 = vadd.xlane.f32.xlu0 %v2141_v48  ;;  %v6982_v9 = vadd.f32 %v2122_v61, %v6774_v3  ;;  %v2240_v61 = vld [vmem:[%s7938_s3 + $0x108] sm:$0xff] }
 0xa33   :  { %v6985_v14 = vadd.f32 %v2117_v30, %v6776_v54  ;;  %v5126_v35 = vpop.f32.mrb[44].mxu0  ;;  %v5501_v30 = vpack.c.bf16 %v2240_v61, %v2239_v34  ;;  %v2232_v61 = vrot.slane %v6818_v17, %v6227_v12 }
 0xa34   :  { %v2150_v29 = vsel %vm148_vm1, %v6982_v9, 0.0  ;;  %v2132_v45 = vadd.f32 %v5126_v35, %v2039_v4  ;;  %v2126_v16 = vpop.f32.mrb[45].mxu0  ;;  %v2464_v35 = vld [vmem:[%s7938_s3 + $0x148] sm:$0xff] }
 0xa35   :  { %2151 = vadd.xlane.f32.xlu1 %v2150_v29  ;;  %v2147_v63 = vsel %vm148_vm1, %v6985_v14, 0.0  ;;  %v2127_v59 = vadd.f32 %v2126_v16, %v2039_v4  ;;  %v5517_v29 = vpack.c.bf16 %v2464_v35, %v2463_v25  ;;  %v2242_v16 = vld [vmem:[%s7938_s3 + $0x118] sm:$0xff]  ;;  %5502 = vmatprep.subr.bf16.mxu1 %v5501_v30 }
 0xa36   :  { %2148 = vadd.xlane.f32.xlu0 %v2147_v63  ;;  %v6992_v11 = vadd.f32 %v2132_v45, %v6782_v22  ;;  %v2241_v45 = vld [vmem:[%s7938_s3 + $0x110] sm:$0xff]  ;;  %5504 = vmatpush3.bf16.msra.mxu1 %v5501_v30 }
 0xa37   :  { %v6995_v3 = vadd.f32 %v2127_v59, %v6784_v26  ;;  %v2465_v63 = vld [vmem:[%s7938_s3 + $0x150] sm:$0xff]  ;;  %v5505_v59 = vpack.c.bf16 %v2242_v16, %v2241_v45  ;;  %5518 = vmatprep.subr.bf16.mxu0 %v5517_v29  ;;  %v2363_v45 = vld [vmem:[%s7938_s3 + $0x138] sm:$0xff] }
 0xa38   :  { %v2156_v54 = vsel %vm148_vm1, %v6992_v11, 0.0  ;;  %5520 = vmatpush3.bf16.msra.mxu0 %v5517_v29  ;;  %v2362_v29 = vld [vmem:[%s7938_s3 + $0x130] sm:$0xff] }
 0xa39   :  { %2157 = vadd.xlane.f32.xlu1 %v2156_v54  ;;  %v2153_v37 = vsel %vm148_vm1, %v6995_v3, 0.0  ;;  %v2466_v54 = vld [vmem:[%s7938_s3 + $0x158] sm:$0xff]  ;;  %5506 = vmatprep.subr.bf16.mxu1 %v5505_v59 }
 0xa3a   :  { %2154 = vadd.xlane.f32.xlu0 %v2153_v37  ;;  %v5521_v37 = vpack.c.bf16 %v2466_v54, %v2465_v63  ;;  %5508 = vmatpush3.bf16.msra.mxu1 %v5505_v59  ;;  %v5513_v59 = vpack.c.bf16 %v2363_v45, %v2362_v29 }
 0xa3c   :  { %5522 = vmatprep.subr.bf16.mxu0 %v5521_v37 }
 0xa3d   :  { %5524 = vmatpush3.bf16.msra.mxu0 %v5521_v37 }
 0xabe   :  { %v2146_v40 = vpop.xlane.xlu1 %2145 }
 0xabf   :  { %v2160_v28 = vmul.f32 0.03125, %v2146_v40  ;;  %v2143_v49 = vpop.xlane.xlu0 %2142  ;;  %v2360_v40 = vld [vmem:[%s7938_s3 + $0x120] sm:$0xff] }
 0xac0   :  { %v2159_v62 = vmul.f32 0.03125, %v2143_v49 }
 0xac1   :  { %v7002_v6 = vsub.f32 %v6972_v27, %v2160_v28  ;;  %v2361_v28 = vld [vmem:[%s7938_s3 + $0x128] sm:$0xff] }
 0xac2   :  { %v7005_v22 = vsub.f32 %v6975_v21, %v2159_v62  ;;  %v2152_v20 = vpop.xlane.xlu1 %2151  ;;  %v5509_v49 = vpack.c.bf16 %v2361_v28, %v2360_v40 }
 0xac3   :  { %v2172_v26 = vmul.f32 %v7002_v6, %v7002_v6  ;;  %v2162_v36 = vmul.f32 0.03125, %v2152_v20  ;;  %v2149_v23 = vpop.xlane.xlu0 %2148 }
 0xac4   :  { %v2171_v2 = vmul.f32 %v7005_v22, %v7005_v22  ;;  %v2161_v44 = vmul.f32 0.03125, %v2149_v23  ;;  %5510 = vmatprep.subr.bf16.mxu1 %v5509_v49 }
 0xac5   :  { %v2180_v58 = vsel %vm148_vm1, %v2172_v26, 0.0  ;;  %v7014_v15 = vsub.f32 %v6982_v9, %v2162_v36 }
 0xac6   :  { %2181 = vadd.xlane.f32.xlu1 %v2180_v58  ;;  %v2177_v52 = vsel %vm148_vm1, %v2171_v2, 0.0  ;;  %v7017_v60 = vsub.f32 %v6985_v14, %v2161_v44  ;;  %v2158_v47 = vpop.xlane.xlu1 %2157 }
 0xac7   :  { %2178 = vadd.xlane.f32.xlu0 %v2177_v52  ;;  %v2174_v24 = vmul.f32 %v7014_v15, %v7014_v15  ;;  %v2164_v46 = vmul.f32 0.03125, %v2158_v47  ;;  %v2155_v19 = vpop.xlane.xlu0 %2154 }
 0xac8   :  { %v2173_v42 = vmul.f32 %v7017_v60, %v7017_v60  ;;  %v2163_v5 = vmul.f32 0.03125, %v2155_v19 }
 0xac9   :  { %v2186_v7 = vsel %vm148_vm1, %v2174_v24, 0.0  ;;  %v7025_v4 = vsub.f32 %v6992_v11, %v2164_v46 }
 0xaca   :  { %2187 = vadd.xlane.f32.xlu1 %v2186_v7  ;;  %v2183_v50 = vsel %vm148_vm1, %v2173_v42, 0.0  ;;  %v7029_v56 = vsub.f32 %v6995_v3, %v2163_v5  ;;  %v2222_v7 = vrot.slane %v6818_v17, %v6187_v43 }
 0xacb   :  { %2184 = vadd.xlane.f32.xlu0 %v2183_v50  ;;  %v2176_v0 = vmul.f32 %v7025_v4, %v7025_v4 }
 0xacc   :  { %v2175_v33 = vmul.f32 %v7029_v56, %v7029_v56 }
 0xacd   :  { %v2192_v57 = vsel %vm148_vm1, %v2176_v0, 0.0 }
 0xace   :  { %2193 = vadd.xlane.f32.xlu1 %v2192_v57  ;;  %v2189_v48 = vsel %vm148_vm1, %v2175_v33, 0.0 }
 0xacf   :  { %2190 = vadd.xlane.f32.xlu0 %v2189_v48 }
 0xb53   :  { %v2182_v62 = vpop.xlane.xlu1 %2181 }
 0xb54   :  { %v2196_v26 = vmul.f32 0.03125, %v2182_v62  ;;  %v2179_v2 = vpop.xlane.xlu0 %2178 }
 0xb55   :  { %v2195_v20 = vmul.f32 0.03125, %v2179_v2 }
 0xb56   :  { %v2202_v58 = vadd.f32 1e-05, %v2196_v26 }
 0xb57   :  { %v2201_v36 = vadd.f32 1e-05, %v2195_v20  ;;  %v2188_v23 = vpop.xlane.xlu1 %2187 }
 0xb58   :  { %5766 = vrsqrt.f32 %v2202_v58  ;;  %v2198_v52 = vmul.f32 0.03125, %v2188_v23  ;;  %v2185_v44 = vpop.xlane.xlu0 %2184 }
 0xb59   :  { %5768 = vrsqrt.f32 %v2201_v36  ;;  %v2197_v47 = vmul.f32 0.03125, %v2185_v44 }
 0xb5a   :  { %v2204_v24 = vadd.f32 1e-05, %v2198_v52 }
 0xb5b   :  { %v2203_v46 = vadd.f32 1e-05, %v2197_v47  ;;  %v2194_v19 = vpop.xlane.xlu1 %2193 }
 0xb5c   :  { %5770 = vrsqrt.f32 %v2204_v24  ;;  %v2200_v42 = vmul.f32 0.03125, %v2194_v19  ;;  %v2191_v5 = vpop.xlane.xlu0 %2190 }
 0xb5d   :  { %5772 = vrsqrt.f32 %v2203_v46  ;;  %v2199_v50 = vmul.f32 0.03125, %v2191_v5 }
 0xb5e   :  { %v2206_v33 = vadd.f32 1e-05, %v2200_v42 }
 0xb5f   :  { %v2205_v34 = vadd.f32 1e-05, %v2199_v50 }
 0xb60   :  { %5774 = vrsqrt.f32 %v2206_v33 }
 0xb61   :  { %5776 = vrsqrt.f32 %v2205_v34 }
 0xb62   :  { %v5767_v0 = vpop.eup %5766 }
 0xb63   :  { %v5769_v57 = vpop.eup %5768  ;;  %v2214_v48 = vmul.f32 %v5767_v0, %v7002_v6 }
 0xb64   :  { %v2213_v25 = vmul.f32 %v5769_v57, %v7005_v22 }
 0xb65   :  { %v2224_v30 = vmul.f32 %v2222_v7, %v2214_v48 }
 0xb66   :  { %v2223_v35 = vmul.f32 %v2222_v7, %v2213_v25  ;;  %v5771_v6 = vpop.eup %5770 }
 0xb67   :  { %v2234_v63 = vadd.f32 %v2232_v61, %v2224_v30  ;;  %v5773_v54 = vpop.eup %5772  ;;  %v2216_v22 = vmul.f32 %v5771_v6, %v7014_v15 }
 0xb68   :  { %v2233_v16 = vadd.f32 %v2232_v61, %v2223_v35  ;;  %v2215_v37 = vmul.f32 %v5773_v54, %v7017_v60 }
 0xb69   :  { %v2226_v40 = vmul.f32 %v2222_v7, %v2216_v22 }
 0xb6a   :  { %5135 = vmatprep.mubr.msk.f32.mxu1 %vm148_vm1, %v2233_v16  ;;  %5169 = vmatprep.mubr.msk.f32.mxu0 %vm148_vm1, %v2233_v16  ;;  %v2225_v28 = vmul.f32 %v2222_v7, %v2215_v37  ;;  %v5775_v62 = vpop.eup %5774 }
 0xb6b   :  { %5136 = vmatmul.mubr.msk.f32.vlgmr.msra.gmra.mrb[42].mxu1 %vm148_vm1, %v2234_v63  ;;  %5170 = vmatmul.mubr.msk.f32.vlgmr.msra.gmra.mrb[46].mxu0 %vm148_vm1, %v2234_v63  ;;  %v5777_v26 = vpop.eup %5776  ;;  %v2218_v20 = vmul.f32 %v5775_v62, %v7025_v4  ;;  %v2236_v58 = vadd.f32 %v2232_v61, %v2226_v40  ;;  %v2470_v4 = vrot.slane %v6818_v17, %v1524_v10 }
 0xb6c   :  { %5512 = vmatpush3.bf16.msra.mxu1 %v5509_v49  ;;  %v2235_v2 = vadd.f32 %v2232_v61, %v2225_v28  ;;  %v2217_v36 = vmul.f32 %v5777_v26, %v7029_v56  ;;  %v7106_v56 = vrot.slane %v6818_v17, %v6243_v31 }
 0xb6d   :  { %5514 = vmatprep.subr.bf16.mxu1 %v5513_v59  ;;  %v2228_v15 = vmul.f32 %v2222_v7, %v2218_v20 }
 0xb6e   :  { %5138 = vmatprep.mubr.msk.f32.mxu1 %vm148_vm1, %v2235_v2  ;;  %5172 = vmatprep.mubr.msk.f32.mxu0 %vm148_vm1, %v2235_v2  ;;  %v2227_v60 = vmul.f32 %v2222_v7, %v2217_v36  ;;  %v5928_v7 = vld [vmem:[%s7941_s6] sm:$0xff] }
 0xb6f   :  { %5139 = vmatmul.mubr.msk.f32.gmra.mrb[44].mxu1 %vm148_vm1, %v2236_v58  ;;  %5173 = vmatmul.mubr.msk.f32.gmra.mrb[48].mxu0 %vm148_vm1, %v2236_v58  ;;  %v2238_v23 = vadd.f32 %v2232_v61, %v2228_v15 }
 0xb70   :  { %5516 = vmatpush3.bf16.msra.mxu1 %v5513_v59  ;;  %v2237_v49 = vadd.f32 %v2232_v61, %v2227_v60 }
 0xb72   :  { %5141 = vmatprep.mubr.msk.f32.mxu1 %vm148_vm1, %v2237_v49  ;;  %5175 = vmatprep.mubr.msk.f32.mxu0 %vm148_vm1, %v2237_v49 }
 0xb73   :  { %5142 = vmatmul.mubr.msk.f32.gmra.mrb[46].mxu1 %vm148_vm1, %v2238_v23  ;;  %5176 = vmatmul.mubr.msk.f32.gmra.mrb[50].mxu0 %vm148_vm1, %v2238_v23 }
 0xb74   :  { %5152 = vmatprep.mubr.msk.f32.mxu1 %vm148_vm1, %v2233_v16  ;;  %v2367_v16 = vrot.slane %v6818_v17, %v6224_v1 }
 0xb77   :  { %5153 = vmatmul.mubr.msk.f32.vlgmr.msra.gmra.mrb[48].mxu1 %vm148_vm1, %v2234_v63 }
 0xb78   :  { %5155 = vmatprep.mubr.msk.f32.mxu1 %vm148_vm1, %v2235_v2 }
 0xb7b   :  { %5156 = vmatmul.mubr.msk.f32.gmra.mrb[50].mxu1 %vm148_vm1, %v2236_v58 }
 0xb7c   :  { %5158 = vmatprep.mubr.msk.f32.mxu1 %vm148_vm1, %v2237_v49 }
 0xb7f   :  { %5159 = vmatmul.mubr.msk.f32.gmra.mrb[52].mxu1 %vm148_vm1, %v2238_v23 }
 0xc3e   :  { %v5137_v52 = vpop.f32.mrb[42].mxu1  ;;  %v5171_v44 = vpop.f32.mrb[46].mxu0 }
 0xc3f   :  { %v2543_v47 = vadd.f32 %v5171_v44, %v2470_v4  ;;  %v2331_v24 = vpop.f32.mrb[43].mxu1  ;;  %v2537_v46 = vpop.f32.mrb[47].mxu0  ;;  %v2337_v49 = vadd.f32 %v5137_v52, %v7106_v56 }
 0xc40   :  { %v7109_v19 = vadd.f32 %v2331_v24, %v7106_v56  ;;  %v2538_v42 = vadd.f32 %v2537_v46, %v2470_v4  ;;  %v5930_v46 = vld [vmem:[%s7941_s6 + $0x10] sm:$0xff] }
 0xc42   :  { %v5543_v5 = vpack.c.bf16 %v2543_v47, %v2538_v42  ;;  %v2566_v10 = vmul.f32 %v5928_v7, %v7109_v19  ;;  %v5140_v50 = vpop.f32.mrb[44].mxu1  ;;  %v5174_v0 = vpop.f32.mrb[48].mxu0  ;;  %v5931_v42 = vld [vmem:[%s7941_s6 + $0x18] sm:$0xff]  ;;  %v5932_v7 = vld [vmem:[%s7941_s6 + $0x20] sm:$0xff] }
 0xc43   :  { %v2553_v33 = vadd.f32 %v5174_v0, %v2470_v4  ;;  %v2341_v57 = vpop.f32.mrb[45].mxu1  ;;  %v2547_v48 = vpop.f32.mrb[49].mxu0  ;;  %v2347_v47 = vadd.f32 %v5140_v50, %v7106_v56  ;;  %v5933_v50 = vld [vmem:[%s7941_s6 + $0x28] sm:$0xff]  ;;  %v5934_v0 = vld [vmem:[%s7941_s6 + $0x30] sm:$0xff] }
 0xc44   :  { %5190 = vmatprep.mubr.msk.f32.mxu1 %vm148_vm1, %v2566_v10  ;;  %5544 = vmatprep.subr.bf16.mxu0 %v5543_v5  ;;  %v2548_v34 = vadd.f32 %v2547_v48, %v2470_v4  ;;  %v2342_v23 = vadd.f32 %v2341_v57, %v7106_v56  ;;  %v5935_v57 = vld [vmem:[%s7941_s6 + $0x38] sm:$0xff] }
 0xc45   :  { %5546 = vmatpush3.bf16.msra.mxu0 %v5543_v5  ;;  %v2569_v5 = vmul.f32 %v5931_v42, %v2347_v47  ;;  %v2573_v48 = vmul.f32 %v5935_v57, %v2337_v49 }
 0xc46   :  { %v5547_v61 = vpack.c.bf16 %v2553_v33, %v2548_v34  ;;  %v5143_v25 = vpop.f32.mrb[46].mxu1  ;;  %v5177_v30 = vpop.f32.mrb[50].mxu0  ;;  %v2568_v51 = vmul.f32 %v5930_v46, %v2342_v23  ;;  %v2572_v33 = vmul.f32 %v5934_v0, %v7109_v19  ;;  %v5936_v34 = vld [vmem:[%s7941_s6 + $0x40] sm:$0xff]  ;;  %v5950_v46 = vld [vmem:[%s7941_s6 + $0xb0] sm:$0xff]  ;;  %v5954_v0 = vld [vmem:[%s7942_s7 + $0x18] sm:$0xff] }
 0xc47   :  { %v2563_v35 = vadd.f32 %v5177_v30, %v2470_v4  ;;  %v2351_v29 = vpop.f32.mrb[47].mxu1  ;;  %v2557_v45 = vpop.f32.mrb[51].mxu0  ;;  %v2357_v52 = vadd.f32 %v5143_v25, %v7106_v56  ;;  %v5937_v25 = vld [vmem:[%s7941_s6 + $0x48] sm:$0xff] }
 0xc48   :  { %5548 = vmatprep.subr.bf16.mxu0 %v5547_v61  ;;  %v2558_v6 = vadd.f32 %v2557_v45, %v2470_v4  ;;  %v5929_v4 = vld [vmem:[%s7941_s6 + $0x8] sm:$0xff]  ;;  %v7137_v24 = vadd.f32 %v2351_v29, %v7106_v56  ;;  %v2575_v30 = vmul.f32 %v5937_v25, %v2347_v47  ;;  %v5939_v45 = vld [vmem:[%s7941_s6 + $0x58] sm:$0xff] }
 0xc49   :  { %5550 = vmatpush3.bf16.msra.mxu0 %v5547_v61  ;;  %v2567_v44 = vmul.f32 %v5929_v4, %v2337_v49  ;;  %v2571_v56 = vmul.f32 %v5933_v50, %v2357_v52  ;;  %v2574_v61 = vmul.f32 %v5936_v34, %v2342_v23 }
 0xc4a   :  { %v5551_v63 = vpack.c.bf16 %v2563_v35, %v2558_v6  ;;  %v5154_v59 = vpop.f32.mrb[48].mxu1  ;;  %v2570_v10 = vmul.f32 %v5932_v7, %v7137_v24  ;;  %v5938_v35 = vld [vmem:[%s7941_s6 + $0x50] sm:$0xff]  ;;  %v5940_v6 = vld [vmem:[%s7941_s6 + $0x60] sm:$0xff] }
 0xc4b   :  { %v2440_v54 = vadd.f32 %v5154_v59, %v2367_v16  ;;  %v2434_v22 = vpop.f32.mrb[49].mxu1  ;;  %v2576_v29 = vmul.f32 %v5938_v35, %v7137_v24  ;;  %v5941_v59 = vld [vmem:[%s7941_s6 + $0x68] sm:$0xff] }
 0xc4c   :  { %v2435_v37 = vadd.f32 %v2434_v22, %v2367_v16  ;;  %5552 = vmatprep.subr.bf16.mxu0 %v5551_v63  ;;  %v5942_v22 = vld [vmem:[%s7941_s6 + $0x70] sm:$0xff]  ;;  %v5956_v35 = vld [vmem:[%s7942_s7 + $0x28] sm:$0xff] }
 0xc4d   :  { %5554 = vmatpush3.bf16.msra.mxu0 %v5551_v63  ;;  %v2578_v63 = vmul.f32 %v5940_v6, %v7109_v19 }
 0xc4e   :  { %v5525_v40 = vpack.c.bf16 %v2440_v54, %v2435_v37  ;;  %v5157_v28 = vpop.f32.mrb[50].mxu1  ;;  %v2579_v54 = vmul.f32 %v5941_v59, %v2337_v49  ;;  %v2580_v37 = vmul.f32 %v5942_v22, %v2342_v23  ;;  %v5958_v22 = vld [vmem:[%s7942_s7 + $0x38] sm:$0xff] }
 0xc4f   :  { %v2450_v62 = vadd.f32 %v5157_v28, %v2367_v16  ;;  %v2444_v26 = vpop.f32.mrb[51].mxu1 }
 0xc50   :  { %v2445_v2 = vadd.f32 %v2444_v26, %v2367_v16  ;;  %5527 = vmatprep.subr.msk.bf16.mxu1 %vm6250_vm3, %v5525_v40 }
 0xc51   :  { %5530 = vmatpush3.bf16.xpose.msk.msra.mxu1 %vm6250_vm3, %v5525_v40  ;;  %v5943_v40 = vld [vmem:[%s7941_s6 + $0x78] sm:$0xff] }
 0xc52   :  { %v5531_v17 = vpack.c.bf16 %v2450_v62, %v2445_v2  ;;  %v5160_v20 = vpop.f32.mrb[52].mxu1  ;;  %v2581_v28 = vmul.f32 %v5943_v40, %v2347_v47  ;;  %v5944_v62 = vld [vmem:[%s7941_s6 + $0x80] sm:$0xff]  ;;  %v5945_v2 = vld [vmem:[%s7941_s6 + $0x88] sm:$0xff] }
 0xc53   :  { %v2460_v58 = vadd.f32 %v5160_v20, %v2367_v16  ;;  %v2454_v36 = vpop.f32.mrb[53].mxu1  ;;  %v2582_v26 = vmul.f32 %v5944_v62, %v7137_v24  ;;  %v5946_v20 = vld [vmem:[%s7941_s6 + $0x90] sm:$0xff] }
 0xc54   :  { %v2455_v15 = vadd.f32 %v2454_v36, %v2367_v16  ;;  %5533 = vmatprep.subr.msk.bf16.mxu1 %vm6250_vm3, %v5531_v17  ;;  %v2577_v16 = vmul.f32 %v5939_v45, %v2357_v52  ;;  %v5947_v36 = vld [vmem:[%s7941_s6 + $0x98] sm:$0xff] }
 0xc56   :  { %v5537_v60 = vpack.c.bf16 %v2460_v58, %v2455_v15  ;;  %v2584_v58 = vmul.f32 %v5946_v20, %v7109_v19  ;;  %v2585_v15 = vmul.f32 %v5947_v36, %v2337_v49  ;;  %v5949_v19 = vld [vmem:[%s7941_s6 + $0xa8] sm:$0xff]  ;;  %v2588_v49 = vmul.f32 %v5950_v46, %v7137_v24  ;;  %v5953_v24 = vld [vmem:[%s7942_s7] sm:$0xff]  ;;  %v5962_v46 = vld [vmem:[%s7942_s7 + $0x58] sm:$0xff] }
 0xc57   :  { %v5960_v20 = vld [vmem:[%s7942_s7 + $0x48] sm:$0xff] }
 0xc59   :  { %5536 = vmatpush3.bf16.xpose.msk.msra.mxu1 %vm6250_vm3, %v5531_v17  ;;  %v2583_v17 = vmul.f32 %v5945_v2, %v2357_v52 }
 0xc5a   :  { %5539 = vmatprep.subr.msk.bf16.mxu1 %vm6250_vm3, %v5537_v60 }
 0xc61   :  { %5542 = vmatpush3.bf16.xpose.msk.msra.mxu1 %vm6250_vm3, %v5537_v60  ;;  %v5948_v60 = vld [vmem:[%s7941_s6 + $0xa0] sm:$0xff] }
 0xc62   :  { %v2586_v4 = vmul.f32 %v5948_v60, %v2342_v23  ;;  %v5951_v23 = vld [vmem:[%s7941_s6 + $0xb8] sm:$0xff] }
 0xc68   :  { %5191 = vmatmul.mubr.msk.f32.vlgmr.msra.gmra.mrb[54].mxu1 %vm148_vm1, %v2567_v44  ;;  %v2587_v44 = vmul.f32 %v5949_v19, %v2347_v47  ;;  %v5952_v47 = vld [vmem:[%s7942_s7 + $0x8] sm:$0xff] }
 0xc69   :  { %5193 = vmatprep.mubr.msk.f32.mxu1 %vm148_vm1, %v2568_v51  ;;  %v2589_v51 = vmul.f32 %v5951_v23, %v2357_v52 }
 0xc6c   :  { %5194 = vmatmul.mubr.msk.f32.gmra.mrb[56].mxu1 %vm148_vm1, %v2569_v5 }
 0xc6d   :  { %5196 = vmatprep.mubr.msk.f32.mxu1 %vm148_vm1, %v2570_v10 }
 0xc70   :  { %5197 = vmatmul.mubr.msk.f32.gmra.mrb[58].mxu1 %vm148_vm1, %v2571_v56 }
 0xc71   :  { %5199 = vmatprep.mubr.msk.f32.mxu1 %vm148_vm1, %v2572_v33 }
 0xc74   :  { %5200 = vmatmul.mubr.msk.f32.gmra.mrb[60].mxu1 %vm148_vm1, %v2573_v48  ;;  %v5955_v48 = vld [vmem:[%s7942_s7 + $0x10] sm:$0xff] }
 0xc75   :  { %5202 = vmatprep.mubr.msk.f32.mxu1 %vm148_vm1, %v2574_v61 }
 0xc78   :  { %5203 = vmatmul.mubr.msk.f32.gmra.mrb[62].mxu1 %vm148_vm1, %v2575_v30 }
 0xc79   :  { %5205 = vmatprep.mubr.msk.f32.mxu1 %vm148_vm1, %v2576_v29 }
 0xc7c   :  { %5206 = vmatmul.mubr.msk.f32.gmra.mrb[64].mxu1 %vm148_vm1, %v2577_v16  ;;  %v5957_v16 = vld [vmem:[%s7942_s7 + $0x20] sm:$0xff] }
 0xc7d   :  { %5208 = vmatprep.mubr.msk.f32.mxu1 %vm148_vm1, %v2578_v63 }
 0xc80   :  { %5209 = vmatmul.mubr.msk.f32.gmra.mrb[66].mxu1 %vm148_vm1, %v2579_v54 }
 0xc81   :  { %5211 = vmatprep.mubr.msk.f32.mxu1 %vm148_vm1, %v2580_v37 }
 0xc84   :  { %5212 = vmatmul.mubr.msk.f32.gmra.mrb[68].mxu1 %vm148_vm1, %v2581_v28  ;;  %v5959_v28 = vld [vmem:[%s7942_s7 + $0x30] sm:$0xff] }
 0xc85   :  { %5214 = vmatprep.mubr.msk.f32.mxu1 %vm148_vm1, %v2582_v26 }
 0xc88   :  { %5215 = vmatmul.mubr.msk.f32.gmra.mrb[70].mxu1 %vm148_vm1, %v2583_v17 }
 0xc89   :  { %5217 = vmatprep.mubr.msk.f32.mxu1 %vm148_vm1, %v2584_v58 }
 0xc8c   :  { %5218 = vmatmul.mubr.msk.f32.gmra.mrb[72].mxu1 %vm148_vm1, %v2585_v15  ;;  %v5961_v15 = vld [vmem:[%s7942_s7 + $0x40] sm:$0xff] }
 0xc8d   :  { %5220 = vmatprep.mubr.msk.f32.mxu1 %vm148_vm1, %v2586_v4 }
 0xc90   :  { %5221 = vmatmul.mubr.msk.f32.gmra.mrb[74].mxu1 %vm148_vm1, %v2587_v44 }
 0xc91   :  { %5223 = vmatprep.mubr.msk.f32.mxu1 %vm148_vm1, %v2588_v49 }
 0xc94   :  { %5224 = vmatmul.mubr.msk.f32.gmra.mrb[76].mxu1 %vm148_vm1, %v2589_v51  ;;  %v5963_v51 = vld [vmem:[%s7942_s7 + $0x50] sm:$0xff] }
 0xd3b   :  { %v5192_v42 = vpop.f32.mrb[54].mxu1 }
 0xd3c   :  { %v7239_v5 = vadd.f32 %v5952_v47, %v5192_v42  ;;  %v2746_v7 = vpop.f32.mrb[55].mxu1 }
 0xd3d   :  { %v7244_v10 = vadd.f32 %v5953_v24, %v2746_v7 }
 0xd3e   :  { %v2868_v50 = vsel %vm938_vm4, %v7239_v5, -inf }
 0xd3f   :  { %2869 = vmax.xlane.f32.xlu1 %v2868_v50  ;;  %v5195_v52 = vpop.f32.mrb[56].mxu1  ;;  %v2865_v56 = vsel %vm938_vm4, %v7244_v10, -inf  ;;  %v5964_v50 = vld [vmem:[%s7942_s7 + $0x68] sm:$0xff] }
 0xd40   :  { %v7253_v33 = vadd.f32 %v5954_v0, %v5195_v52  ;;  %v2756_v57 = vpop.f32.mrb[57].mxu1  ;;  %2866 = vmax.xlane.f32.xlu0 %v2865_v56  ;;  %v5965_v0 = vld [vmem:[%s7942_s7 + $0x60] sm:$0xff] }
 0xd41   :  { %v7258_v34 = vadd.f32 %v5955_v48, %v2756_v57 }
 0xd42   :  { %v2874_v61 = vsel %vm938_vm4, %v7253_v33, -inf }
 0xd43   :  { %2875 = vmax.xlane.f32.xlu1 %v2874_v61  ;;  %v5198_v25 = vpop.f32.mrb[58].mxu1  ;;  %v2871_v30 = vsel %vm938_vm4, %v7258_v34, -inf }
 0xd44   :  { %v7267_v29 = vadd.f32 %v5956_v35, %v5198_v25  ;;  %2872 = vmax.xlane.f32.xlu0 %v2871_v30  ;;  %v2766_v45 = vpop.f32.mrb[59].mxu1  ;;  %v5966_v30 = vld [vmem:[%s7942_s7 + $0x78] sm:$0xff] }
 0xd45   :  { %v7272_v6 = vadd.f32 %v5957_v16, %v2766_v45  ;;  %v5967_v16 = vld [vmem:[%s7942_s7 + $0x70] sm:$0xff] }
 0xd46   :  { %v2880_v63 = vsel %vm938_vm4, %v7267_v29, -inf }
 0xd47   :  { %2881 = vmax.xlane.f32.xlu1 %v2880_v63  ;;  %v5201_v59 = vpop.f32.mrb[60].mxu1  ;;  %v2877_v54 = vsel %vm938_vm4, %v7272_v6, -inf }
 0xd48   :  { %v7281_v37 = vadd.f32 %v5958_v22, %v5201_v59  ;;  %v2776_v40 = vpop.f32.mrb[61].mxu1  ;;  %2878 = vmax.xlane.f32.xlu0 %v2877_v54 }
 0xd49   :  { %v7286_v62 = vadd.f32 %v5959_v28, %v2776_v40  ;;  %v5968_v40 = vld [vmem:[%s7942_s7 + $0x88] sm:$0xff] }
 0xd4a   :  { %v2886_v26 = vsel %vm938_vm4, %v7281_v37, -inf }
 0xd4b   :  { %2887 = vmax.xlane.f32.xlu1 %v2886_v26  ;;  %v5204_v2 = vpop.f32.mrb[62].mxu1  ;;  %v2883_v17 = vsel %vm938_vm4, %v7286_v62, -inf }
 0xd4c   :  { %v7295_v58 = vadd.f32 %v5960_v20, %v5204_v2  ;;  %v2786_v36 = vpop.f32.mrb[63].mxu1  ;;  %2884 = vmax.xlane.f32.xlu0 %v2883_v17  ;;  %v5969_v2 = vld [vmem:[%s7942_s7 + $0x80] sm:$0xff] }
 0xd4d   :  { %v7300_v60 = vadd.f32 %v5961_v15, %v2786_v36 }
 0xd4e   :  { %v2892_v4 = vsel %vm938_vm4, %v7295_v58, -inf }
 0xd4f   :  { %2893 = vmax.xlane.f32.xlu1 %v2892_v4  ;;  %v5207_v19 = vpop.f32.mrb[64].mxu1  ;;  %v2889_v44 = vsel %vm938_vm4, %v7300_v60, -inf  ;;  %v5970_v4 = vld [vmem:[%s7942_s7 + $0x98] sm:$0xff] }
 0xd50   :  { %v7309_v49 = vadd.f32 %v5962_v46, %v5207_v19  ;;  %v2796_v23 = vpop.f32.mrb[65].mxu1  ;;  %2890 = vmax.xlane.f32.xlu0 %v2889_v44  ;;  %v5971_v46 = vld [vmem:[%s7942_s7 + $0x90] sm:$0xff] }
 0xd51   :  { %v7314_v42 = vadd.f32 %v5963_v51, %v2796_v23 }
 0xd52   :  { %v2898_v47 = vsel %vm938_vm4, %v7309_v49, -inf }
 0xd53   :  { %2899 = vmax.xlane.f32.xlu1 %v2898_v47  ;;  %v5210_v7 = vpop.f32.mrb[66].mxu1  ;;  %v2895_v24 = vsel %vm938_vm4, %v7314_v42, -inf }
 0xd54   :  { %v7323_v52 = vadd.f32 %v5964_v50, %v5210_v7  ;;  %v2806_v56 = vpop.f32.mrb[67].mxu1  ;;  %2896 = vmax.xlane.f32.xlu0 %v2895_v24  ;;  %v5972_v24 = vld [vmem:[%s7942_s7 + $0xa8] sm:$0xff] }
 0xd55   :  { %v7328_v57 = vadd.f32 %v5965_v0, %v2806_v56  ;;  %v5973_v0 = vld [vmem:[%s7942_s7 + $0xa0] sm:$0xff] }
 0xd56   :  { %v2904_v48 = vsel %vm938_vm4, %v7323_v52, -inf }
 0xd57   :  { %2905 = vmax.xlane.f32.xlu1 %v2904_v48  ;;  %v5213_v61 = vpop.f32.mrb[68].mxu1  ;;  %v2901_v25 = vsel %vm938_vm4, %v7328_v57, -inf }
 0xd58   :  { %v7337_v35 = vadd.f32 %v5966_v30, %v5213_v61  ;;  %v2816_v45 = vpop.f32.mrb[69].mxu1  ;;  %2902 = vmax.xlane.f32.xlu0 %v2901_v25 }
 0xd59   :  { %v7342_v63 = vadd.f32 %v5967_v16, %v2816_v45  ;;  %v5974_v45 = vld [vmem:[%s7942_s7 + $0xb8] sm:$0xff] }
 0xd5a   :  { %v2910_v59 = vsel %vm938_vm4, %v7337_v35, -inf }
 0xd5b   :  { %2911 = vmax.xlane.f32.xlu1 %v2910_v59  ;;  %v5216_v54 = vpop.f32.mrb[70].mxu1  ;;  %v2907_v22 = vsel %vm938_vm4, %v7342_v63, -inf }
 0xd5c   :  { %v7351_v28 = vadd.f32 %v5968_v40, %v5216_v54  ;;  %v2826_v26 = vpop.f32.mrb[71].mxu1  ;;  %2908 = vmax.xlane.f32.xlu0 %v2907_v22  ;;  %v5975_v54 = vld [vmem:[%s7942_s7 + $0xb0] sm:$0xff] }
 0xd5d   :  { %v7356_v17 = vadd.f32 %v5969_v2, %v2826_v26 }
 0xd5e   :  { %v2916_v20 = vsel %vm938_vm4, %v7351_v28, -inf }
 0xd5f   :  { %2917 = vmax.xlane.f32.xlu1 %v2916_v20  ;;  %v5219_v36 = vpop.f32.mrb[72].mxu1  ;;  %v2913_v15 = vsel %vm938_vm4, %v7356_v17, -inf }
 0xd60   :  { %v7365_v19 = vadd.f32 %v5970_v4, %v5219_v36  ;;  %v2836_v44 = vpop.f32.mrb[73].mxu1  ;;  %2914 = vmax.xlane.f32.xlu0 %v2913_v15 }
 0xd61   :  { %v7370_v23 = vadd.f32 %v5971_v46, %v2836_v44 }
 0xd62   :  { %v2922_v51 = vsel %vm938_vm4, %v7365_v19, -inf }
 0xd63   :  { %2923 = vmax.xlane.f32.xlu1 %v2922_v51  ;;  %v5222_v47 = vpop.f32.mrb[74].mxu1  ;;  %v2919_v7 = vsel %vm938_vm4, %v7370_v23, -inf }
 0xd64   :  { %v7379_v50 = vadd.f32 %v5972_v24, %v5222_v47  ;;  %v2846_v56 = vpop.f32.mrb[75].mxu1  ;;  %2920 = vmax.xlane.f32.xlu0 %v2919_v7 }
 0xd65   :  { %v7384_v48 = vadd.f32 %v5973_v0, %v2846_v56 }
 0xd66   :  { %v2928_v61 = vsel %vm938_vm4, %v7379_v50, -inf }
 0xd67   :  { %2929 = vmax.xlane.f32.xlu1 %v2928_v61  ;;  %v5225_v25 = vpop.f32.mrb[76].mxu1  ;;  %v2925_v30 = vsel %vm938_vm4, %v7384_v48, -inf }
 0xd68   :  { %v7393_v16 = vadd.f32 %v5974_v45, %v5225_v25  ;;  %v2856_v59 = vpop.f32.mrb[77].mxu1  ;;  %2926 = vmax.xlane.f32.xlu0 %v2925_v30 }
 0xd69   :  { %v7398_v22 = vadd.f32 %v5975_v54, %v2856_v59 }
 0xd6a   :  { %v2934_v40 = vsel %vm938_vm4, %v7393_v16, -inf }
 0xd6b   :  { %2935 = vmax.xlane.f32.xlu1 %v2934_v40  ;;  %v2931_v26 = vsel %vm938_vm4, %v7398_v22, -inf }
 0xd6c   :  { %2932 = vmax.xlane.f32.xlu0 %v2931_v26 }
 0xdcc   :  { %v2870_v2 = vpop.xlane.xlu1 %2869 }
 0xdcd   :  { %v2938_v20 = vsub.f32 %v7239_v5, %v2870_v2  ;;  %v2867_v36 = vpop.xlane.xlu0 %2866 }
 0xdce   :  { %v2937_v15 = vsub.f32 %v7244_v10, %v2867_v36 }
 0xdcf   :  { %v2963_v4 = vmul.f32 1.442695, %v2938_v20 }
 0xdd0   :  { %v2961_v44 = vmul.f32 1.442695, %v2937_v15  ;;  %v2876_v46 = vpop.xlane.xlu1 %2875 }
 0xdd1   :  { %5778 = vpow2.f32 %v2963_v4  ;;  %v2940_v51 = vsub.f32 %v7253_v33, %v2876_v46  ;;  %v2873_v47 = vpop.xlane.xlu0 %2872 }
 0xdd2   :  { %5780 = vpow2.f32 %v2961_v44  ;;  %v2939_v7 = vsub.f32 %v7258_v34, %v2873_v47 }
 0xdd3   :  { %v2967_v24 = vmul.f32 1.442695, %v2940_v51 }
 0xdd4   :  { %v2965_v56 = vmul.f32 1.442695, %v2939_v7  ;;  %v2882_v0 = vpop.xlane.xlu1 %2881 }
 0xdd5   :  { %5782 = vpow2.f32 %v2967_v24  ;;  %v2942_v61 = vsub.f32 %v7267_v29, %v2882_v0  ;;  %v2879_v5 = vpop.xlane.xlu0 %2878 }
 0xdd6   :  { %5784 = vpow2.f32 %v2965_v56  ;;  %v2941_v10 = vsub.f32 %v7272_v6, %v2879_v5 }
 0xdd7   :  { %v2971_v25 = vmul.f32 1.442695, %v2942_v61 }
 0xdd8   :  { %v2969_v30 = vmul.f32 1.442695, %v2941_v10  ;;  %v2888_v45 = vpop.xlane.xlu1 %2887 }
 0xdd9   :  { %5786 = vpow2.f32 %v2971_v25  ;;  %v2944_v33 = vsub.f32 %v7281_v37, %v2888_v45  ;;  %v2885_v59 = vpop.xlane.xlu0 %2884 }
 0xdda   :  { %5788 = vpow2.f32 %v2969_v30  ;;  %v2943_v34 = vsub.f32 %v7286_v62, %v2885_v59 }
 0xddb   :  { %v7412_v54 = vpop.eup %5778  ;;  %v2975_v40 = vmul.f32 1.442695, %v2944_v33 }
 0xddc   :  { %v7414_v26 = vpop.eup %5780  ;;  %v2973_v29 = vmul.f32 1.442695, %v2943_v34  ;;  %v2894_v2 = vpop.xlane.xlu1 %2893  ;;  %v3012_v6 = vsel %vm938_vm4, %v7412_v54, 0.0 }
 0xddd   :  { %5790 = vpow2.f32 %v2975_v40  ;;  %v2946_v20 = vsub.f32 %v7295_v58, %v2894_v2  ;;  %3013 = vadd.xlane.f32.xlu1 %v3012_v6  ;;  %v2891_v36 = vpop.xlane.xlu0 %2890  ;;  %v3009_v37 = vsel %vm938_vm4, %v7414_v26, 0.0 }
 0xdde   :  { %5792 = vpow2.f32 %v2973_v29  ;;  %v2945_v62 = vsub.f32 %v7300_v60, %v2891_v36  ;;  %3010 = vadd.xlane.f32.xlu0 %v3009_v37 }
 0xddf   :  { %v7422_v15 = vpop.eup %5782  ;;  %v2979_v4 = vmul.f32 1.442695, %v2946_v20 }
 0xde0   :  { %v7424_v44 = vpop.eup %5784  ;;  %v2977_v46 = vmul.f32 1.442695, %v2945_v62  ;;  %v2900_v51 = vpop.xlane.xlu1 %2899  ;;  %v3018_v47 = vsel %vm938_vm4, %v7422_v15, 0.0 }
 0xde1   :  { %5794 = vpow2.f32 %v2979_v4  ;;  %v2948_v58 = vsub.f32 %v7309_v49, %v2900_v51  ;;  %3019 = vadd.xlane.f32.xlu1 %v3018_v47  ;;  %v2897_v7 = vpop.xlane.xlu0 %2896  ;;  %v3015_v24 = vsel %vm938_vm4, %v7424_v44, 0.0 }
 0xde2   :  { %5796 = vpow2.f32 %v2977_v46  ;;  %v2947_v60 = vsub.f32 %v7314_v42, %v2897_v7  ;;  %3016 = vadd.xlane.f32.xlu0 %v3015_v24 }
 0xde3   :  { %v7432_v56 = vpop.eup %5786  ;;  %v2983_v0 = vmul.f32 1.442695, %v2948_v58 }
 0xde4   :  { %v7434_v61 = vpop.eup %5788  ;;  %v2981_v5 = vmul.f32 1.442695, %v2947_v60  ;;  %v2906_v10 = vpop.xlane.xlu1 %2905  ;;  %v3024_v25 = vsel %vm938_vm4, %v7432_v56, 0.0 }
 0xde5   :  { %5798 = vpow2.f32 %v2983_v0  ;;  %v2950_v49 = vsub.f32 %v7323_v52, %v2906_v10  ;;  %3025 = vadd.xlane.f32.xlu1 %v3024_v25  ;;  %v2903_v30 = vpop.xlane.xlu0 %2902  ;;  %v3021_v45 = vsel %vm938_vm4, %v7434_v61, 0.0 }
 0xde6   :  { %5800 = vpow2.f32 %v2981_v5  ;;  %v2949_v42 = vsub.f32 %v7328_v57, %v2903_v30  ;;  %3022 = vadd.xlane.f32.xlu0 %v3021_v45 }
 0xde7   :  { %v7442_v33 = vpop.eup %5790  ;;  %v2987_v59 = vmul.f32 1.442695, %v2950_v49 }
 0xde8   :  { %v7444_v34 = vpop.eup %5792  ;;  %v2985_v40 = vmul.f32 1.442695, %v2949_v42  ;;  %v2912_v29 = vpop.xlane.xlu1 %2911  ;;  %v3030_v2 = vsel %vm938_vm4, %v7442_v33, 0.0 }
 0xde9   :  { %5802 = vpow2.f32 %v2987_v59  ;;  %v2952_v52 = vsub.f32 %v7337_v35, %v2912_v29  ;;  %3031 = vadd.xlane.f32.xlu1 %v3030_v2  ;;  %v2909_v6 = vpop.xlane.xlu0 %2908  ;;  %v3027_v20 = vsel %vm938_vm4, %v7444_v34, 0.0 }
 0xdea   :  { %5804 = vpow2.f32 %v2985_v40  ;;  %v2951_v57 = vsub.f32 %v7342_v63, %v2909_v6  ;;  %3028 = vadd.xlane.f32.xlu0 %v3027_v20 }
 0xdeb   :  { %v7452_v36 = vpop.eup %5794  ;;  %v2991_v37 = vmul.f32 1.442695, %v2952_v52 }
 0xdec   :  { %v7454_v62 = vpop.eup %5796  ;;  %v2989_v4 = vmul.f32 1.442695, %v2951_v57  ;;  %v2918_v46 = vpop.xlane.xlu1 %2917  ;;  %v3036_v51 = vsel %vm938_vm4, %v7452_v36, 0.0 }
 0xded   :  { %5806 = vpow2.f32 %v2991_v37  ;;  %v2954_v35 = vsub.f32 %v7351_v28, %v2918_v46  ;;  %3037 = vadd.xlane.f32.xlu1 %v3036_v51  ;;  %v2915_v47 = vpop.xlane.xlu0 %2914  ;;  %v3033_v58 = vsel %vm938_vm4, %v7454_v62, 0.0 }
 0xdee   :  { %5808 = vpow2.f32 %v2989_v4  ;;  %v2953_v63 = vsub.f32 %v7356_v17, %v2915_v47  ;;  %3034 = vadd.xlane.f32.xlu0 %v3033_v58 }
 0xdef   :  { %v7462_v7 = vpop.eup %5798  ;;  %v2995_v24 = vmul.f32 1.442695, %v2954_v35 }
 0xdf0   :  { %v7464_v60 = vpop.eup %5800  ;;  %v2993_v0 = vmul.f32 1.442695, %v2953_v63  ;;  %v2924_v5 = vpop.xlane.xlu1 %2923  ;;  %v3042_v10 = vsel %vm938_vm4, %v7462_v7, 0.0 }
 0xdf1   :  { %5810 = vpow2.f32 %v2995_v24  ;;  %v2956_v28 = vsub.f32 %v7365_v19, %v2924_v5  ;;  %3043 = vadd.xlane.f32.xlu1 %v3042_v10  ;;  %v2921_v25 = vpop.xlane.xlu0 %2920  ;;  %v3039_v49 = vsel %vm938_vm4, %v7464_v60, 0.0 }
 0xdf2   :  { %5812 = vpow2.f32 %v2993_v0  ;;  %v2955_v17 = vsub.f32 %v7370_v23, %v2921_v25  ;;  %3040 = vadd.xlane.f32.xlu0 %v3039_v49 }
 0xdf3   :  { %v7472_v30 = vpop.eup %5802  ;;  %v2999_v45 = vmul.f32 1.442695, %v2956_v28 }
 0xdf4   :  { %v7474_v42 = vpop.eup %5804  ;;  %v2997_v59 = vmul.f32 1.442695, %v2955_v17  ;;  %v2930_v40 = vpop.xlane.xlu1 %2929  ;;  %v3048_v29 = vsel %vm938_vm4, %v7472_v30, 0.0 }
 0xdf5   :  { %5814 = vpow2.f32 %v2999_v45  ;;  %v2958_v19 = vsub.f32 %v7379_v50, %v2930_v40  ;;  %3049 = vadd.xlane.f32.xlu1 %v3048_v29  ;;  %v2927_v2 = vpop.xlane.xlu0 %2926  ;;  %v3045_v52 = vsel %vm938_vm4, %v7474_v42, 0.0 }
 0xdf6   :  { %5816 = vpow2.f32 %v2997_v59  ;;  %v2957_v23 = vsub.f32 %v7384_v48, %v2927_v2  ;;  %3046 = vadd.xlane.f32.xlu0 %v3045_v52  ;;  %v3428_v2 = vld [vmem:[%s7938_s3 + $0x160] sm:$0xff]  ;;  %v3429_v52 = vld [vmem:[%s7938_s3 + $0x168] sm:$0xff] }
 0xdf7   :  { %v7482_v6 = vpop.eup %5806  ;;  %v3003_v20 = vmul.f32 1.442695, %v2958_v19 }
 0xdf8   :  { %v7484_v57 = vpop.eup %5808  ;;  %v3001_v37 = vmul.f32 1.442695, %v2957_v23  ;;  %v2936_v4 = vpop.xlane.xlu1 %2935  ;;  %v3054_v46 = vsel %vm938_vm4, %v7482_v6, 0.0  ;;  %v5555_v23 = vpack.c.bf16 %v3429_v52, %v3428_v2 }
 0xdf9   :  { %5818 = vpow2.f32 %v3003_v20  ;;  %v2960_v50 = vsub.f32 %v7393_v16, %v2936_v4  ;;  %3055 = vadd.xlane.f32.xlu1 %v3054_v46  ;;  %v2933_v51 = vpop.xlane.xlu0 %2932  ;;  %v3051_v35 = vsel %vm938_vm4, %v7484_v57, 0.0 }
 0xdfa   :  { %5820 = vpow2.f32 %v3001_v37  ;;  %v2959_v48 = vsub.f32 %v7398_v22, %v2933_v51  ;;  %3052 = vadd.xlane.f32.xlu0 %v3051_v35  ;;  %5556 = vmatprep.subr.bf16.mxu0 %v5555_v23 }
 0xdfb   :  { %v7492_v47 = vpop.eup %5810  ;;  %v3007_v58 = vmul.f32 1.442695, %v2960_v50 }
 0xdfc   :  { %v7494_v63 = vpop.eup %5812  ;;  %v3005_v24 = vmul.f32 1.442695, %v2959_v48  ;;  %v3060_v0 = vsel %vm938_vm4, %v7492_v47, 0.0 }
 0xdfd   :  { %5822 = vpow2.f32 %v3007_v58  ;;  %3061 = vadd.xlane.f32.xlu1 %v3060_v0  ;;  %v3057_v16 = vsel %vm938_vm4, %v7494_v63, 0.0 }
 0xdfe   :  { %5824 = vpow2.f32 %v3005_v24  ;;  %3058 = vadd.xlane.f32.xlu0 %v3057_v16 }
 0xdff   :  { %v7500_v5 = vpop.eup %5814 }
 0xe00   :  { %v7502_v22 = vpop.eup %5816  ;;  %v3066_v10 = vsel %vm938_vm4, %v7500_v5, 0.0 }
 0xe01   :  { %3067 = vadd.xlane.f32.xlu1 %v3066_v10  ;;  %v3063_v28 = vsel %vm938_vm4, %v7502_v22, 0.0 }
 0xe02   :  { %3064 = vadd.xlane.f32.xlu0 %v3063_v28 }
 0xe03   :  { %v7508_v25 = vpop.eup %5818 }
 0xe04   :  { %v7510_v49 = vpop.eup %5820  ;;  %v3072_v17 = vsel %vm938_vm4, %v7508_v25, 0.0 }
 0xe05   :  { %3073 = vadd.xlane.f32.xlu1 %v3072_v17  ;;  %v3069_v45 = vsel %vm938_vm4, %v7510_v49, 0.0 }
 0xe06   :  { %3070 = vadd.xlane.f32.xlu0 %v3069_v45 }
 0xe07   :  { %v7516_v59 = vpop.eup %5822 }
 0xe08   :  { %v7518_v40 = vpop.eup %5824  ;;  %v3078_v29 = vsel %vm938_vm4, %v7516_v59, 0.0 }
 0xe09   :  { %3079 = vadd.xlane.f32.xlu1 %v3078_v29  ;;  %v3075_v19 = vsel %vm938_vm4, %v7518_v40, 0.0 }
 0xe0a   :  { %3076 = vadd.xlane.f32.xlu0 %v3075_v19 }
 0xe6a   :  { %v3014_v20 = vpop.xlane.xlu1 %3013 }
 0xe6b   :  { %5826 = vrcp.f32 %v3014_v20  ;;  %v3011_v37 = vpop.xlane.xlu0 %3010 }
 0xe6c   :  { %5828 = vrcp.f32 %v3011_v37 }
 0xe6e   :  { %v3020_v4 = vpop.xlane.xlu1 %3019 }
 0xe6f   :  { %5830 = vrcp.f32 %v3020_v4  ;;  %v3017_v46 = vpop.xlane.xlu0 %3016 }
 0xe70   :  { %5832 = vrcp.f32 %v3017_v46 }
 0xe72   :  { %v3026_v50 = vpop.xlane.xlu1 %3025 }
 0xe73   :  { %5834 = vrcp.f32 %v3026_v50  ;;  %v3023_v51 = vpop.xlane.xlu0 %3022 }
 0xe74   :  { %5836 = vrcp.f32 %v3023_v51 }
 0xe75   :  { %v5827_v35 = vpop.eup %5826 }
 0xe76   :  { %v5829_v48 = vpop.eup %5828  ;;  %v3032_v58 = vpop.xlane.xlu1 %3031  ;;  %v3106_v16 = vmul.f32 %v5827_v35, %v7412_v54 }
 0xe77   :  { %5838 = vrcp.f32 %v3032_v58  ;;  %v3029_v24 = vpop.xlane.xlu0 %3028  ;;  %v3105_v0 = vmul.f32 %v5829_v48, %v7414_v26 }
 0xe78   :  { %5840 = vrcp.f32 %v3029_v24 }
 0xe79   :  { %v5831_v10 = vpop.eup %5830  ;;  %5238 = vmatprep.mubr.msk.f32.mxu0 %vm938_vm4, %v3105_v0 }
 0xe7a   :  { %v5833_v28 = vpop.eup %5832  ;;  %v3038_v17 = vpop.xlane.xlu1 %3037  ;;  %5239 = vmatmul.mubr.msk.f32.vlgmr.msra.gmra.mrb[52].mxu0 %vm938_vm4, %v3106_v16  ;;  %v3108_v19 = vmul.f32 %v5831_v10, %v7422_v15 }
 0xe7b   :  { %5842 = vrcp.f32 %v3038_v17  ;;  %v3035_v45 = vpop.xlane.xlu0 %3034  ;;  %v3107_v29 = vmul.f32 %v5833_v28, %v7424_v44  ;;  %5558 = vmatpush3.bf16.msra.mxu0 %v5555_v23 }
 0xe7c   :  { %5844 = vrcp.f32 %v3035_v45 }
 0xe7d   :  { %v5835_v2 = vpop.eup %5834  ;;  %5241 = vmatprep.mubr.msk.f32.mxu0 %vm938_vm4, %v3107_v29 }
 0xe7e   :  { %v5837_v54 = vpop.eup %5836  ;;  %v3044_v26 = vpop.xlane.xlu1 %3043  ;;  %5242 = vmatmul.mubr.msk.f32.gmra.mrb[54].mxu0 %vm938_vm4, %v3108_v19  ;;  %v3110_v37 = vmul.f32 %v5835_v2, %v7432_v56 }
 0xe7f   :  { %5846 = vrcp.f32 %v3044_v26  ;;  %v3041_v52 = vpop.xlane.xlu0 %3040  ;;  %v3109_v20 = vmul.f32 %v5837_v54, %v7434_v61 }
 0xe80   :  { %5848 = vrcp.f32 %v3041_v52 }
 0xe81   :  { %v5839_v4 = vpop.eup %5838  ;;  %5244 = vmatprep.mubr.msk.f32.mxu0 %vm938_vm4, %v3109_v20 }
 0xe82   :  { %v5841_v44 = vpop.eup %5840  ;;  %v3050_v23 = vpop.xlane.xlu1 %3049  ;;  %5245 = vmatmul.mubr.msk.f32.gmra.mrb[56].mxu0 %vm938_vm4, %v3110_v37  ;;  %v3112_v50 = vmul.f32 %v5839_v4, %v7442_v33 }
 0xe83   :  { %5850 = vrcp.f32 %v3050_v23  ;;  %v3047_v15 = vpop.xlane.xlu0 %3046  ;;  %v3111_v46 = vmul.f32 %v5841_v44, %v7444_v34 }
 0xe84   :  { %5852 = vrcp.f32 %v3047_v15 }
 0xe85   :  { %v5843_v51 = vpop.eup %5842  ;;  %5247 = vmatprep.mubr.msk.f32.mxu0 %vm938_vm4, %v3111_v46 }
 0xe86   :  { %v5845_v61 = vpop.eup %5844  ;;  %v3056_v35 = vpop.xlane.xlu1 %3055  ;;  %5248 = vmatmul.mubr.msk.f32.gmra.mrb[58].mxu0 %vm938_vm4, %v3112_v50  ;;  %v3114_v58 = vmul.f32 %v5843_v51, %v7452_v36 }
 0xe87   :  { %5854 = vrcp.f32 %v3056_v35  ;;  %v3053_v56 = vpop.xlane.xlu0 %3052  ;;  %v3113_v48 = vmul.f32 %v5845_v61, %v7454_v62 }
 0xe88   :  { %5856 = vrcp.f32 %v3053_v56 }
 0xe89   :  { %v5847_v24 = vpop.eup %5846  ;;  %5250 = vmatprep.mubr.msk.f32.mxu0 %vm938_vm4, %v3113_v48 }
 0xe8a   :  { %v5849_v34 = vpop.eup %5848  ;;  %v3062_v0 = vpop.xlane.xlu1 %3061  ;;  %5251 = vmatmul.mubr.msk.f32.gmra.mrb[60].mxu0 %vm938_vm4, %v3114_v58  ;;  %v3116_v10 = vmul.f32 %v5847_v24, %v7462_v7 }
 0xe8b   :  { %5858 = vrcp.f32 %v3062_v0  ;;  %v3059_v33 = vpop.xlane.xlu0 %3058  ;;  %v3115_v16 = vmul.f32 %v5849_v34, %v7464_v60 }
 0xe8c   :  { %5860 = vrcp.f32 %v3059_v33 }
 0xe8d   :  { %v5851_v28 = vpop.eup %5850  ;;  %5253 = vmatprep.mubr.msk.f32.mxu0 %vm938_vm4, %v3115_v16 }
 0xe8e   :  { %v5853_v62 = vpop.eup %5852  ;;  %v3068_v17 = vpop.xlane.xlu1 %3067  ;;  %5254 = vmatmul.mubr.msk.f32.gmra.mrb[62].mxu0 %vm938_vm4, %v3116_v10  ;;  %v3118_v29 = vmul.f32 %v5851_v28, %v7472_v30 }
 0xe8f   :  { %5862 = vrcp.f32 %v3068_v17  ;;  %v3065_v36 = vpop.xlane.xlu0 %3064  ;;  %v3117_v45 = vmul.f32 %v5853_v62, %v7474_v42 }
 0xe90   :  { %5864 = vrcp.f32 %v3065_v36 }
 0xe91   :  { %v5855_v19 = vpop.eup %5854  ;;  %5256 = vmatprep.mubr.msk.f32.mxu0 %vm938_vm4, %v3117_v45 }
 0xe92   :  { %v5857_v60 = vpop.eup %5856  ;;  %v3074_v2 = vpop.xlane.xlu1 %3073  ;;  %5257 = vmatmul.mubr.msk.f32.gmra.mrb[64].mxu0 %vm938_vm4, %v3118_v29  ;;  %v3120_v26 = vmul.f32 %v5855_v19, %v7482_v6 }
 0xe93   :  { %5866 = vrcp.f32 %v3074_v2  ;;  %v3071_v7 = vpop.xlane.xlu0 %3070  ;;  %v3119_v54 = vmul.f32 %v5857_v60, %v7484_v57 }
 0xe94   :  { %5868 = vrcp.f32 %v3071_v7 }
 0xe95   :  { %v5859_v52 = vpop.eup %5858  ;;  %5259 = vmatprep.mubr.msk.f32.mxu0 %vm938_vm4, %v3119_v54 }
 0xe96   :  { %v5861_v42 = vpop.eup %5860  ;;  %v3080_v20 = vpop.xlane.xlu1 %3079  ;;  %5260 = vmatmul.mubr.msk.f32.gmra.mrb[66].mxu0 %vm938_vm4, %v3120_v26  ;;  %v3122_v4 = vmul.f32 %v5859_v52, %v7492_v47 }
 0xe97   :  { %5870 = vrcp.f32 %v3080_v20  ;;  %v3077_v30 = vpop.xlane.xlu0 %3076  ;;  %v3121_v37 = vmul.f32 %v5861_v42, %v7494_v63 }
 0xe98   :  { %5872 = vrcp.f32 %v3077_v30 }
 0xe99   :  { %v5863_v44 = vpop.eup %5862  ;;  %5262 = vmatprep.mubr.msk.f32.mxu0 %vm938_vm4, %v3121_v37 }
 0xe9a   :  { %v5865_v57 = vpop.eup %5864  ;;  %5263 = vmatmul.mubr.msk.f32.gmra.mrb[68].mxu0 %vm938_vm4, %v3122_v4  ;;  %v3124_v23 = vmul.f32 %v5863_v44, %v7500_v5 }
 0xe9b   :  { %v3123_v6 = vmul.f32 %v5865_v57, %v7502_v22 }
 0xe9d   :  { %v5867_v15 = vpop.eup %5866  ;;  %5265 = vmatprep.mubr.msk.f32.mxu0 %vm938_vm4, %v3123_v6 }
 0xe9e   :  { %v5869_v46 = vpop.eup %5868  ;;  %5266 = vmatmul.mubr.msk.f32.gmra.mrb[70].mxu0 %vm938_vm4, %v3124_v23  ;;  %v3126_v47 = vmul.f32 %v5867_v15, %v7508_v25  ;;  %v3431_v25 = vld [vmem:[%s7938_s3 + $0x178] sm:$0xff] }
 0xe9f   :  { %v3125_v63 = vmul.f32 %v5869_v46, %v7510_v49  ;;  %v3430_v49 = vld [vmem:[%s7938_s3 + $0x170] sm:$0xff] }
 0xea0   :  { %v5559_v61 = vpack.c.bf16 %v3431_v25, %v3430_v49 }
 0xea1   :  { %v5871_v50 = vpop.eup %5870  ;;  %5268 = vmatprep.mubr.msk.f32.mxu0 %vm938_vm4, %v3125_v63 }
 0xea2   :  { %v5873_v51 = vpop.eup %5872  ;;  %5269 = vmatmul.mubr.msk.f32.gmra.mrb[72].mxu0 %vm938_vm4, %v3126_v47  ;;  %v3128_v5 = vmul.f32 %v5871_v50, %v7516_v59  ;;  %5560 = vmatprep.subr.bf16.mxu0 %v5559_v61 }
 0xea3   :  { %v3127_v22 = vmul.f32 %v5873_v51, %v7518_v40  ;;  %5562 = vmatpush3.bf16.msra.mxu0 %v5559_v61 }
 0xea5   :  { %5271 = vmatprep.mubr.msk.f32.mxu0 %vm938_vm4, %v3127_v22 }
 0xea6   :  { %5272 = vmatmul.mubr.msk.f32.gmra.mrb[74].mxu0 %vm938_vm4, %v3128_v5 }
 0xf4d   :  { %v5240_v35 = vpop.f32.mrb[52].mxu0 }
 0xf4e   :  { %v3267_v56 = vpop.f32.mrb[53].mxu0  ;;  %v3387_v34 = vmul.f32 %v5240_v35, %v6721_v18 }
 0xf4f   :  { %v3386_v16 = vmul.f32 %v3267_v56, %v6721_v18 }
 0xf51   :  { %v5243_v40 = vpop.f32.mrb[54].mxu0 }
 0xf52   :  { %v3277_v48 = vpop.f32.mrb[55].mxu0  ;;  %v3389_v36 = vmul.f32 %v5243_v40, %v6721_v18 }
 0xf53   :  { %v3388_v19 = vmul.f32 %v3277_v48, %v6721_v18 }
 0xf55   :  { %v5246_v59 = vpop.f32.mrb[56].mxu0 }
 0xf56   :  { %v3287_v58 = vpop.f32.mrb[57].mxu0  ;;  %v3391_v26 = vmul.f32 %v5246_v59, %v6721_v18 }
 0xf57   :  { %v3390_v20 = vmul.f32 %v3287_v58, %v6721_v18 }
 0xf59   :  { %v5249_v24 = vpop.f32.mrb[58].mxu0 }
 0xf5a   :  { %v3393_v0 = vmul.f32 %v5249_v24, %v6724_v38  ;;  %v3297_v33 = vpop.f32.mrb[59].mxu0 }
 0xf5b   :  { %v3392_v10 = vmul.f32 %v3297_v33, %v6724_v38 }
 0xf5c   :  { %v3399_v28 = vadd.f32 %v3393_v0, %v3387_v34 }
 0xf5d   :  { %v3398_v62 = vadd.f32 %v3392_v10, %v3386_v16  ;;  %v5252_v17 = vpop.f32.mrb[60].mxu0 }
 0xf5e   :  { %v3395_v45 = vmul.f32 %v5252_v17, %v6724_v38  ;;  %v3307_v29 = vpop.f32.mrb[61].mxu0 }
 0xf5f   :  { %v3394_v60 = vmul.f32 %v3307_v29, %v6724_v38 }
 0xf60   :  { %v3401_v2 = vadd.f32 %v3395_v45, %v3389_v36 }
 0xf61   :  { %v3400_v7 = vadd.f32 %v3394_v60, %v3388_v19  ;;  %v5255_v54 = vpop.f32.mrb[62].mxu0  ;;  %v5976_v19 = vld [vmem:[%s7940_s5 + $0x8] sm:$0xff] }
 0xf62   :  { %v3397_v52 = vmul.f32 %v5255_v54, %v6724_v38  ;;  %v3317_v42 = vpop.f32.mrb[63].mxu0  ;;  %v3435_v60 = vrot.slane %v5976_v19, %v1725_v41 }
 0xf63   :  { %v3396_v30 = vmul.f32 %v3317_v42, %v6724_v38 }
 0xf64   :  { %v3403_v37 = vadd.f32 %v3397_v52, %v3391_v26 }
 0xf65   :  { %v3402_v4 = vadd.f32 %v3396_v30, %v3390_v20  ;;  %v5258_v44 = vpop.f32.mrb[64].mxu0 }
 0xf66   :  { %v3405_v57 = vmul.f32 %v5258_v44, %v6735_v53  ;;  %v3327_v6 = vpop.f32.mrb[65].mxu0 }
 0xf67   :  { %v3404_v23 = vmul.f32 %v3327_v6, %v6735_v53 }
 0xf68   :  { %v3411_v15 = vadd.f32 %v3405_v57, %v3399_v28 }
 0xf69   :  { %v3410_v46 = vadd.f32 %v3404_v23, %v3398_v62  ;;  %v5261_v63 = vpop.f32.mrb[66].mxu0 }
 0xf6a   :  { %v3407_v47 = vmul.f32 %v5261_v63, %v6735_v53  ;;  %v3337_v50 = vpop.f32.mrb[67].mxu0 }
 0xf6b   :  { %v3406_v51 = vmul.f32 %v3337_v50, %v6735_v53 }
 0xf6c   :  { %v3413_v22 = vadd.f32 %v3407_v47, %v3401_v2  ;;  %v3653_v47 = vld [vmem:[%s7939_s4 + $0x28] sm:$0xff] }
 0xf6d   :  { %v3412_v18 = vadd.f32 %v3406_v51, %v3400_v7  ;;  %v5264_v5 = vpop.f32.mrb[68].mxu0  ;;  %v3656_v51 = vld [vmem:[%s7939_s4 + $0x40] sm:$0xff] }
 0xf6e   :  { %v3409_v38 = vmul.f32 %v5264_v5, %v6735_v53  ;;  %v3347_v49 = vpop.f32.mrb[69].mxu0 }
 0xf6f   :  { %v3408_v25 = vmul.f32 %v3347_v49, %v6735_v53 }
 0xf70   :  { %v3415_v61 = vadd.f32 %v3409_v38, %v3403_v37 }
 0xf71   :  { %v3414_v35 = vadd.f32 %v3408_v25, %v3402_v4  ;;  %v5267_v56 = vpop.f32.mrb[70].mxu0 }
 0xf72   :  { %v3417_v40 = vmul.f32 %v5267_v56, %v6746_v55  ;;  %v3357_v48 = vpop.f32.mrb[71].mxu0 }
 0xf73   :  { %v3416_v59 = vmul.f32 %v3357_v48, %v6746_v55 }
 0xf74   :  { %v3423_v58 = vadd.f32 %v3417_v40, %v3411_v15 }
 0xf75   :  { %v3422_v24 = vadd.f32 %v3416_v59, %v3410_v46  ;;  %v5270_v34 = vpop.f32.mrb[72].mxu0 }
 0xf76   :  { %v3419_v0 = vmul.f32 %v5270_v34, %v6746_v55  ;;  %v3367_v33 = vpop.f32.mrb[73].mxu0 }
 0xf77   :  { %v3418_v16 = vmul.f32 %v3367_v33, %v6746_v55  ;;  %5282 = vmatprep.mubr.msk.f32.mxu0 %vm148_vm1, %v3422_v24 }
 0xf78   :  { %v3425_v10 = vadd.f32 %v3419_v0, %v3413_v22  ;;  %5283 = vmatmul.mubr.msk.f32.vlgmr.msra.gmra.mrb[76].mxu0 %vm148_vm1, %v3423_v58 }
 0xf79   :  { %v3424_v53 = vadd.f32 %v3418_v16, %v3412_v18  ;;  %v5273_v28 = vpop.f32.mrb[74].mxu0 }
 0xf7a   :  { %v3421_v62 = vmul.f32 %v5273_v28, %v6746_v55  ;;  %v3377_v17 = vpop.f32.mrb[75].mxu0 }
 0xf7b   :  { %v3420_v36 = vmul.f32 %v3377_v17, %v6746_v55  ;;  %5285 = vmatprep.mubr.msk.f32.mxu0 %vm148_vm1, %v3424_v53 }
 0xf7c   :  { %v3427_v45 = vadd.f32 %v3421_v62, %v3415_v61  ;;  %5286 = vmatmul.mubr.msk.f32.gmra.mrb[78].mxu0 %vm148_vm1, %v3425_v10 }
 0xf7d   :  { %v3426_v29 = vadd.f32 %v3420_v36, %v3414_v35 }
 0xf7f   :  { %5288 = vmatprep.mubr.msk.f32.mxu0 %vm148_vm1, %v3426_v29 }
 0xf80   :  { %5289 = vmatmul.mubr.msk.f32.gmra.mrb[80].mxu0 %vm148_vm1, %v3427_v45 }
0x104b   :  { %v5284_v2 = vpop.f32.mrb[76].mxu0 }
0x104c   :  { %v3526_v7 = vadd.f32 %v5284_v2, %v3435_v60  ;;  %v3520_v55 = vpop.f32.mrb[77].mxu0 }
0x104d   :  { %v3521_v54 = vadd.f32 %v3520_v55, %v3435_v60 }
0x104e   :  { %v7620_v26 = vadd.f32 %v3526_v7, %v6972_v27 }
0x104f   :  { %v7623_v52 = vadd.f32 %v3521_v54, %v6975_v21  ;;  %v5287_v42 = vpop.f32.mrb[78].mxu0 }
0x1050   :  { %v3536_v20 = vadd.f32 %v5287_v42, %v3435_v60  ;;  %v3530_v30 = vpop.f32.mrb[79].mxu0  ;;  %v3558_v37 = vsel %vm148_vm1, %v7620_v26, 0.0 }
0x1051   :  { %v3531_v4 = vadd.f32 %v3530_v30, %v3435_v60  ;;  %3559 = vadd.xlane.f32.xlu1 %v3558_v37  ;;  %v3555_v32 = vsel %vm148_vm1, %v7623_v52, 0.0 }
0x1052   :  { %v7630_v41 = vadd.f32 %v3536_v20, %v6982_v9  ;;  %3556 = vadd.xlane.f32.xlu0 %v3555_v32 }
0x1053   :  { %v7633_v27 = vadd.f32 %v3531_v4, %v6985_v14  ;;  %v5290_v21 = vpop.f32.mrb[80].mxu0 }
0x1054   :  { %v3546_v44 = vadd.f32 %v5290_v21, %v3435_v60  ;;  %v3540_v57 = vpop.f32.mrb[81].mxu0  ;;  %v3564_v6 = vsel %vm148_vm1, %v7630_v41, 0.0 }
0x1055   :  { %v3541_v23 = vadd.f32 %v3540_v57, %v3435_v60  ;;  %3565 = vadd.xlane.f32.xlu1 %v3564_v6  ;;  %v3561_v15 = vsel %vm148_vm1, %v7633_v27, 0.0 }
0x1056   :  { %v7640_v46 = vadd.f32 %v3546_v44, %v6992_v11  ;;  %3562 = vadd.xlane.f32.xlu0 %v3561_v15  ;;  %v3654_v11 = vld [vmem:[%s7939_s4 + $0x30] sm:$0xff] }
0x1057   :  { %v7643_v9 = vadd.f32 %v3541_v23, %v6995_v3  ;;  %v3655_v3 = vld [vmem:[%s7939_s4 + $0x38] sm:$0xff]  ;;  %v5563_v50 = vpack.c.bf16 %v3654_v11, %v3653_v47  ;;  %v7676_v11 = vld [vmem:[%s7940_s5 + $0x10] sm:$0x3f] }
0x1058   :  { %v3570_v14 = vsel %vm148_vm1, %v7640_v46, 0.0  ;;  %v5567_v22 = vpack.c.bf16 %v3656_v51, %v3655_v3  ;;  %v3636_v51 = vrot.slane %v7676_v11, %v6715_v13 }
0x1059   :  { %3571 = vadd.xlane.f32.xlu1 %v3570_v14  ;;  %v3567_v63 = vsel %vm148_vm1, %v7643_v9, 0.0  ;;  %5564 = vmatprep.subr.bf16.mxu1 %v5563_v50 }
0x105a   :  { %3568 = vadd.xlane.f32.xlu0 %v3567_v63  ;;  %5566 = vmatpush3.bf16.msra.mxu1 %v5563_v50 }
0x105b   :  { %5568 = vmatprep.subr.bf16.mxu1 %v5567_v22 }
0x105e   :  { %5570 = vmatpush3.bf16.msra.mxu1 %v5567_v22 }
0x10de   :  { %v3560_v18 = vpop.xlane.xlu1 %3559 }
0x10df   :  { %v3574_v5 = vmul.f32 0.03125, %v3560_v18  ;;  %v3557_v38 = vpop.xlane.xlu0 %3556 }
0x10e0   :  { %v3573_v49 = vmul.f32 0.03125, %v3557_v38  ;;  %v3646_v38 = vrot.slane %v7676_v11, %v6184_v39 }
0x10e1   :  { %v3580_v25 = vsub.f32 %v7620_v26, %v3574_v5 }
0x10e2   :  { %v3579_v61 = vsub.f32 %v7623_v52, %v3573_v49  ;;  %v3566_v35 = vpop.xlane.xlu1 %3565 }
0x10e3   :  { %v3576_v56 = vmul.f32 0.03125, %v3566_v35  ;;  %v3563_v40 = vpop.xlane.xlu0 %3562  ;;  %v3586_v48 = vmul.f32 %v3580_v25, %v3580_v25 }
0x10e4   :  { %v3575_v59 = vmul.f32 0.03125, %v3563_v40  ;;  %v3585_v58 = vmul.f32 %v3579_v61, %v3579_v61 }
0x10e5   :  { %v3582_v24 = vsub.f32 %v7630_v41, %v3576_v56  ;;  %v3594_v34 = vsel %vm148_vm1, %v3586_v48, 0.0 }
0x10e6   :  { %v3581_v0 = vsub.f32 %v7633_v27, %v3575_v59  ;;  %3595 = vadd.xlane.f32.xlu1 %v3594_v34  ;;  %v3572_v33 = vpop.xlane.xlu1 %3571  ;;  %v3591_v16 = vsel %vm148_vm1, %v3585_v58, 0.0 }
0x10e7   :  { %v3578_v10 = vmul.f32 0.03125, %v3572_v33  ;;  %3592 = vadd.xlane.f32.xlu0 %v3591_v16  ;;  %v3569_v53 = vpop.xlane.xlu0 %3568  ;;  %v3588_v28 = vmul.f32 %v3582_v24, %v3582_v24 }
0x10e8   :  { %v3577_v62 = vmul.f32 0.03125, %v3569_v53  ;;  %v3587_v17 = vmul.f32 %v3581_v0, %v3581_v0 }
0x10e9   :  { %v3584_v36 = vsub.f32 %v7640_v46, %v3578_v10  ;;  %v3600_v45 = vsel %vm148_vm1, %v3588_v28, 0.0 }
0x10ea   :  { %v3583_v29 = vsub.f32 %v7643_v9, %v3577_v62  ;;  %3601 = vadd.xlane.f32.xlu1 %v3600_v45  ;;  %v3597_v19 = vsel %vm148_vm1, %v3587_v17, 0.0 }
0x10eb   :  { %3598 = vadd.xlane.f32.xlu0 %v3597_v19  ;;  %v3590_v60 = vmul.f32 %v3584_v36, %v3584_v36  ;;  %v3930_v19 = vld [vmem:[%s7938_s3 + $0x180] sm:$0xff] }
0x10ec   :  { %v3589_v2 = vmul.f32 %v3583_v29, %v3583_v29 }
0x10ed   :  { %v3606_v7 = vsel %vm148_vm1, %v3590_v60, 0.0  ;;  %v3932_v60 = vld [vmem:[%s7938_s3 + $0x190] sm:$0xff] }
0x10ee   :  { %3607 = vadd.xlane.f32.xlu1 %v3606_v7  ;;  %v3603_v55 = vsel %vm148_vm1, %v3589_v2, 0.0  ;;  %v3933_v2 = vld [vmem:[%s7938_s3 + $0x198] sm:$0xff] }
0x10ef   :  { %3604 = vadd.xlane.f32.xlu0 %v3603_v55  ;;  %v5575_v7 = vpack.c.bf16 %v3933_v2, %v3932_v60  ;;  %v3934_v55 = vld [vmem:[%s7938_s3 + $0x1a0] sm:$0xff] }
0x1173   :  { %v3596_v54 = vpop.xlane.xlu1 %3595 }
0x1174   :  { %v3610_v42 = vmul.f32 0.03125, %v3596_v54  ;;  %v3593_v20 = vpop.xlane.xlu0 %3592  ;;  %v3935_v54 = vld [vmem:[%s7938_s3 + $0x1a8] sm:$0xff] }
0x1175   :  { %v3609_v30 = vmul.f32 0.03125, %v3593_v20  ;;  %v3936_v20 = vld [vmem:[%s7938_s3 + $0x1b0] sm:$0xff] }
0x1176   :  { %v3616_v37 = vadd.f32 1e-05, %v3610_v42  ;;  %v5579_v42 = vpack.c.bf16 %v3935_v54, %v3934_v55 }
0x1177   :  { %v3615_v4 = vadd.f32 1e-05, %v3609_v30  ;;  %v3602_v32 = vpop.xlane.xlu1 %3601  ;;  %v3937_v30 = vld [vmem:[%s7938_s3 + $0x1b8] sm:$0xff] }
0x1178   :  { %5874 = vrsqrt.f32 %v3616_v37  ;;  %v3612_v21 = vmul.f32 0.03125, %v3602_v32  ;;  %v3599_v44 = vpop.xlane.xlu0 %3598  ;;  %v5583_v37 = vpack.c.bf16 %v3937_v30, %v3936_v20  ;;  %v3939_v32 = vld [vmem:[%s7938_s3 + $0x1c8] sm:$0xff] }
0x1179   :  { %5876 = vrsqrt.f32 %v3615_v4  ;;  %v3611_v57 = vmul.f32 0.03125, %v3599_v44  ;;  %v3938_v4 = vld [vmem:[%s7938_s3 + $0x1c0] sm:$0xff]  ;;  %v3940_v44 = vld [vmem:[%s7938_s3 + $0x1d0] sm:$0xff] }
0x117a   :  { %v3618_v6 = vadd.f32 1e-05, %v3612_v21  ;;  %v5587_v21 = vpack.c.bf16 %v3939_v32, %v3938_v4 }
0x117b   :  { %v3617_v23 = vadd.f32 1e-05, %v3611_v57  ;;  %v3608_v15 = vpop.xlane.xlu1 %3607  ;;  %v3941_v57 = vld [vmem:[%s7938_s3 + $0x1d8] sm:$0xff] }
0x117c   :  { %5878 = vrsqrt.f32 %v3618_v6  ;;  %v3614_v14 = vmul.f32 0.03125, %v3608_v15  ;;  %v3605_v63 = vpop.xlane.xlu0 %3604  ;;  %v5591_v6 = vpack.c.bf16 %v3941_v57, %v3940_v44  ;;  %v3943_v15 = vld [vmem:[%s7938_s3 + $0x1e8] sm:$0xff] }
0x117d   :  { %5880 = vrsqrt.f32 %v3617_v23  ;;  %v3613_v47 = vmul.f32 0.03125, %v3605_v63  ;;  %v3942_v23 = vld [vmem:[%s7938_s3 + $0x1e0] sm:$0xff]  ;;  %v3944_v63 = vld [vmem:[%s7938_s3 + $0x1f0] sm:$0xff] }
0x117e   :  { %v3620_v3 = vadd.f32 1e-05, %v3614_v14  ;;  %v5595_v14 = vpack.c.bf16 %v3943_v15, %v3942_v23 }
0x117f   :  { %v3619_v50 = vadd.f32 1e-05, %v3613_v47  ;;  %v3945_v47 = vld [vmem:[%s7938_s3 + $0x1f8] sm:$0xff] }
0x1180   :  { %5882 = vrsqrt.f32 %v3620_v3  ;;  %v5599_v3 = vpack.c.bf16 %v3945_v47, %v3944_v63 }
0x1181   :  { %5884 = vrsqrt.f32 %v3619_v50  ;;  %v7739_v50 = vld [vmem:[%s7939_s4] sm:$0xff] }
0x1182   :  { %v5875_v22 = vpop.eup %5874 }
0x1183   :  { %v5877_v18 = vpop.eup %5876  ;;  %v3628_v5 = vmul.f32 %v5875_v22, %v3580_v25 }
0x1184   :  { %v3627_v49 = vmul.f32 %v5877_v18, %v3579_v61 }
0x1185   :  { %v3638_v35 = vmul.f32 %v3636_v51, %v3628_v5 }
0x1186   :  { %v5879_v56 = vpop.eup %5878  ;;  %v3637_v40 = vmul.f32 %v3636_v51, %v3627_v49 }
0x1187   :  { %v5881_v48 = vpop.eup %5880  ;;  %v3630_v59 = vmul.f32 %v5879_v56, %v3582_v24  ;;  %v3648_v33 = vadd.f32 %v3646_v38, %v3638_v35 }
0x1188   :  { %v3647_v58 = vadd.f32 %v3646_v38, %v3637_v40  ;;  %v3629_v34 = vmul.f32 %v5881_v48, %v3581_v0 }
0x1189   :  { %v3640_v16 = vmul.f32 %v3636_v51, %v3630_v59 }
0x118a   :  { %v5883_v10 = vpop.eup %5882  ;;  %5299 = vmatprep.mubr.msk.f32.mxu1 %vm148_vm1, %v3647_v58  ;;  %v3639_v13 = vmul.f32 %v3636_v51, %v3629_v34 }
0x118b   :  { %v5885_v53 = vpop.eup %5884  ;;  %5300 = vmatmul.mubr.msk.f32.vlgmr.msra.gmra.mrb[78].mxu1 %vm148_vm1, %v3648_v33  ;;  %v3632_v25 = vmul.f32 %v5883_v10, %v3584_v36  ;;  %v3650_v61 = vadd.f32 %v3646_v38, %v3640_v16  ;;  %v3931_v36 = vld [vmem:[%s7938_s3 + $0x188] sm:$0xff] }
0x118c   :  { %v3649_v28 = vadd.f32 %v3646_v38, %v3639_v13  ;;  %v3631_v62 = vmul.f32 %v5885_v53, %v3583_v29  ;;  %v5571_v29 = vpack.c.bf16 %v3931_v36, %v3930_v19 }
0x118d   :  { %v3642_v17 = vmul.f32 %v3636_v51, %v3632_v25 }
0x118e   :  { %5302 = vmatprep.mubr.msk.f32.mxu1 %vm148_vm1, %v3649_v28  ;;  %v3641_v45 = vmul.f32 %v3636_v51, %v3631_v62  ;;  %5572 = vmatprep.subr.bf16.mxu0 %v5571_v29  ;;  %v3660_v51 = vrot.slane %v7739_v50, %v6184_v39 }
0x118f   :  { %5303 = vmatmul.mubr.msk.f32.gmra.mrb[80].mxu1 %vm148_vm1, %v3650_v61  ;;  %v3652_v0 = vadd.f32 %v3646_v38, %v3642_v17  ;;  %5574 = vmatpush3.bf16.msra.mxu0 %v5571_v29 }
0x1190   :  { %v3651_v24 = vadd.f32 %v3646_v38, %v3641_v45  ;;  %5576 = vmatprep.subr.bf16.mxu0 %v5575_v7 }
0x1192   :  { %5305 = vmatprep.mubr.msk.f32.mxu1 %vm148_vm1, %v3651_v24 }
0x1193   :  { %5306 = vmatmul.mubr.msk.f32.gmra.mrb[82].mxu1 %vm148_vm1, %v3652_v0  ;;  %5578 = vmatpush3.bf16.msra.mxu0 %v5575_v7 }
0x1194   :  { %5580 = vmatprep.subr.bf16.mxu0 %v5579_v42 }
0x1197   :  { %5582 = vmatpush3.bf16.msra.mxu0 %v5579_v42 }
0x1198   :  { %5584 = vmatprep.subr.bf16.mxu0 %v5583_v37 }
0x119b   :  { %5586 = vmatpush3.bf16.msra.mxu0 %v5583_v37 }
0x119c   :  { %5588 = vmatprep.subr.bf16.mxu0 %v5587_v21 }
0x119f   :  { %5590 = vmatpush3.bf16.msra.mxu0 %v5587_v21 }
0x11a0   :  { %5592 = vmatprep.subr.bf16.mxu0 %v5591_v6 }
0x11a3   :  { %5594 = vmatpush3.bf16.msra.mxu0 %v5591_v6 }
0x11a4   :  { %5596 = vmatprep.subr.bf16.mxu0 %v5595_v14 }
0x11a7   :  { %5598 = vmatpush3.bf16.msra.mxu0 %v5595_v14 }
0x11a8   :  { %5600 = vmatprep.subr.bf16.mxu0 %v5599_v3 }
0x11ab   :  { %5602 = vmatpush3.bf16.msra.mxu0 %v5599_v3 }
0x125e   :  { %v5301_v22 = vpop.f32.mrb[78].mxu1 }
0x125f   :  { %v7743_v18 = vadd.f32 %v5301_v22, %v3660_v51  ;;  %v3745_v5 = vpop.f32.mrb[79].mxu1 }
0x1260   :  { %v7745_v38 = vadd.f32 %v3745_v5, %v3660_v51 }
0x1261   :  { %v7748_v49 = vmul.f32 0.70710677, %v7743_v18 }
0x1262   :  { %v7751_v35 = vmul.f32 0.70710677, %v7745_v38  ;;  %v5304_v56 = vpop.f32.mrb[80].mxu1 }
0x1263   :  { %v3799_v40 = vand.u32 2147483647, %v7748_v49  ;;  %v7754_v48 = vadd.f32 %v5304_v56, %v3660_v51  ;;  %v3755_v59 = vpop.f32.mrb[81].mxu1  ;;  %vm3787_vm11 = vcmp.ge.f32.partialorder %v7748_v49, 0.0  ;;  %v3775_v49 = vmul.f32 0.5, %v7743_v18 }
0x1264   :  { %v3798_v39 = vand.u32 2147483647, %v7751_v35  ;;  %v7757_v58 = vadd.f32 %v3755_v59, %v3660_v51  ;;  %vm3786_vm12 = vcmp.ge.f32.partialorder %v7751_v35, 0.0 }
0x1265   :  { %v3805_v34 = vmul.f32 0.3275911, %v3799_v40  ;;  %v7760_v16 = vmul.f32 0.70710677, %v7754_v48  ;;  %v3877_v29 = vsub.f32 0.0, %v3799_v40 }
0x1266   :  { %v3804_v33 = vmul.f32 0.3275911, %v3798_v39  ;;  %v7763_v13 = vmul.f32 0.70710677, %v7757_v58  ;;  %v5307_v53 = vpop.f32.mrb[82].mxu1  ;;  %v3876_v55 = vsub.f32 0.0, %v3798_v39 }
0x1267   :  { %v3811_v10 = vadd.f32 1.0, %v3805_v34  ;;  %v3801_v28 = vand.u32 2147483647, %v7760_v16  ;;  %v3765_v62 = vpop.f32.mrb[83].mxu1  ;;  %v7767_v45 = vadd.f32 %v5307_v53, %v3660_v51  ;;  %v3883_v20 = vmul.f32 %v3877_v29, %v3799_v40 }
0x1268   :  { %v3810_v25 = vadd.f32 1.0, %v3804_v33  ;;  %v3800_v17 = vand.u32 2147483647, %v7763_v13  ;;  %v7769_v0 = vadd.f32 %v3765_v62, %v3660_v51  ;;  %v3882_v57 = vmul.f32 %v3876_v55, %v3798_v39 }
0x1269   :  { %5886 = vrcp.f32 %v3811_v10  ;;  %v3807_v61 = vmul.f32 0.3275911, %v3801_v28  ;;  %v7772_v36 = vmul.f32 0.70710677, %v7767_v45  ;;  %v3879_v4 = vsub.f32 0.0, %v3801_v28 }
0x126a   :  { %5888 = vrcp.f32 %v3810_v25  ;;  %v3806_v19 = vmul.f32 0.3275911, %v3800_v17  ;;  %v7775_v60 = vmul.f32 0.70710677, %v7769_v0  ;;  %v3890_v14 = vmul.f32 1.442695, %v3883_v20 }
0x126b   :  { %v3813_v24 = vadd.f32 1.0, %v3807_v61  ;;  %v3803_v7 = vand.u32 2147483647, %v7772_v36  ;;  %v3885_v63 = vmul.f32 %v3879_v4, %v3801_v28  ;;  %v3878_v47 = vsub.f32 0.0, %v3800_v17 }
0x126c   :  { %v3812_v2 = vadd.f32 1.0, %v3806_v19  ;;  %v3802_v54 = vand.u32 2147483647, %v7775_v60  ;;  %v3888_v5 = vmul.f32 1.442695, %v3882_v57  ;;  %vm3789_vm13 = vcmp.ge.f32.partialorder %v7760_v16, 0.0 }
0x126d   :  { %5890 = vrcp.f32 %v3813_v24  ;;  %v3809_v42 = vmul.f32 0.3275911, %v3803_v7  ;;  %v3881_v56 = vsub.f32 0.0, %v3803_v7  ;;  %v3894_v33 = vmul.f32 1.442695, %v3885_v63 }
0x126e   :  { %5892 = vrcp.f32 %v3812_v2  ;;  %v3808_v30 = vmul.f32 0.3275911, %v3802_v54  ;;  %v3884_v10 = vmul.f32 %v3878_v47, %v3800_v17  ;;  %v3880_v28 = vsub.f32 0.0, %v3802_v54 }
0x126f   :  { %v3815_v32 = vadd.f32 1.0, %v3809_v42  ;;  %v3887_v24 = vmul.f32 %v3881_v56, %v3803_v7  ;;  %vm3788_vm14 = vcmp.ge.f32.partialorder %v7763_v13, 0.0  ;;  %vm3791_vm15 = vcmp.ge.f32.partialorder %v7772_v36, 0.0 }
0x1270   :  { %v3814_v6 = vadd.f32 1.0, %v3808_v30  ;;  %v3892_v20 = vmul.f32 1.442695, %v3884_v10  ;;  %vm3790_vm0 = vcmp.ge.f32.partialorder %v7775_v60, 0.0  ;;  %v3778_v60 = vmul.f32 0.5, %v7769_v0 }
0x1271   :  { %5894 = vrcp.f32 %v3815_v32  ;;  %v3898_v7 = vmul.f32 1.442695, %v3887_v24 }
0x1272   :  { %5896 = vrcp.f32 %v3814_v6 }
0x1273   :  { %v5887_v37 = vpop.eup %5886  ;;  %5898 = vpow2.f32 %v3890_v14 }
0x1274   :  { %v5889_v21 = vpop.eup %5888  ;;  %v3823_v44 = vmul.f32 1.0614054, %v5887_v37  ;;  %5900 = vpow2.f32 %v3888_v5 }
0x1275   :  { %v3822_v23 = vmul.f32 1.0614054, %v5889_v21  ;;  %5902 = vpow2.f32 %v3894_v33 }
0x1276   :  { %v3829_v15 = vadd.f32 -1.4531521, %v3823_v44  ;;  %v3886_v44 = vmul.f32 %v3880_v28, %v3802_v54  ;;  %5904 = vpow2.f32 %v3892_v20 }
0x1277   :  { %v3828_v3 = vadd.f32 -1.4531521, %v3822_v23  ;;  %v7779_v51 = vpop.eup %5890  ;;  %5906 = vpow2.f32 %v3898_v7 }
0x1278   :  { %v3835_v22 = vmul.f32 %v5887_v37, %v3829_v15  ;;  %v3825_v59 = vmul.f32 1.0614054, %v7779_v51  ;;  %v7782_v39 = vpop.eup %5892  ;;  %v3896_v54 = vmul.f32 1.442695, %v3886_v44 }
0x1279   :  { %v3834_v40 = vmul.f32 %v5889_v21, %v3828_v3  ;;  %v3824_v61 = vmul.f32 1.0614054, %v7782_v39 }
0x127a   :  { %v3841_v34 = vadd.f32 1.4214138, %v3835_v22  ;;  %v3831_v25 = vadd.f32 -1.4531521, %v3825_v59  ;;  %5908 = vpow2.f32 %v3896_v54 }
0x127b   :  { %v3840_v53 = vadd.f32 1.4214138, %v3834_v40  ;;  %v3830_v55 = vadd.f32 -1.4531521, %v3824_v61  ;;  %v7786_v42 = vpop.eup %5894 }
0x127c   :  { %v3847_v62 = vmul.f32 %v5887_v37, %v3841_v34  ;;  %v3837_v29 = vmul.f32 %v7779_v51, %v3831_v25  ;;  %v7788_v17 = vpop.eup %5896  ;;  %v3827_v6 = vmul.f32 1.0614054, %v7786_v42 }
0x127d   :  { %v3846_v19 = vmul.f32 %v5889_v21, %v3840_v53  ;;  %v3836_v57 = vmul.f32 %v7782_v39, %v3830_v55  ;;  %v3826_v14 = vmul.f32 1.0614054, %v7788_v17  ;;  %v5899_v40 = vpop.eup %5898 }
0x127e   :  { %v3853_v2 = vadd.f32 -0.28449672, %v3847_v62  ;;  %v3843_v4 = vadd.f32 1.4214138, %v3837_v29  ;;  %v3833_v3 = vadd.f32 -1.4531521, %v3827_v6  ;;  %v5901_v62 = vpop.eup %5900 }
0x127f   :  { %v3852_v30 = vadd.f32 -0.28449672, %v3846_v19  ;;  %v3842_v47 = vadd.f32 1.4214138, %v3836_v57  ;;  %v3832_v56 = vadd.f32 -1.4531521, %v3826_v14  ;;  %v5903_v20 = vpop.eup %5902 }
0x1280   :  { %v3859_v32 = vmul.f32 %v5887_v37, %v3853_v2  ;;  %v3849_v15 = vmul.f32 %v7779_v51, %v3843_v4  ;;  %v3839_v33 = vmul.f32 %v7786_v42, %v3833_v3  ;;  %v3792_v6 = vsel %vm3786_vm12, 1.0, %v6003_v8 }
0x1281   :  { %v3858_v23 = vmul.f32 %v5889_v21, %v3852_v30  ;;  %v3848_v34 = vmul.f32 %v7782_v39, %v3842_v47  ;;  %v3838_v25 = vmul.f32 %v7788_v17, %v3832_v56  ;;  %v3793_v30 = vsel %vm3787_vm11, 1.0, %v6003_v8 }
0x1282   :  { %v3865_v63 = vadd.f32 0.2548296, %v3859_v32  ;;  %v3855_v5 = vadd.f32 -0.28449672, %v3849_v15  ;;  %v3845_v24 = vadd.f32 1.4214138, %v3839_v33 }
0x1283   :  { %v3864_v22 = vadd.f32 0.2548296, %v3858_v23  ;;  %v3854_v61 = vadd.f32 -0.28449672, %v3848_v34  ;;  %v3844_v29 = vadd.f32 1.4214138, %v3838_v25 }
0x1284   :  { %v3871_v59 = vmul.f32 %v5887_v37, %v3865_v63  ;;  %v3861_v53 = vmul.f32 %v7779_v51, %v3855_v5  ;;  %v3774_v5 = vmul.f32 0.5, %v7745_v38  ;;  %v3794_v38 = vsel %vm3788_vm14, 1.0, %v6003_v8 }
0x1285   :  { %v3870_v10 = vmul.f32 %v5889_v21, %v3864_v22  ;;  %v3860_v55 = vmul.f32 %v7782_v39, %v3854_v61  ;;  %v3851_v21 = vmul.f32 %v7786_v42, %v3845_v24  ;;  %v3850_v44 = vmul.f32 %v7788_v17, %v3844_v29  ;;  %v5905_v22 = vpop.eup %5904 }
0x1286   :  { %v3901_v28 = vmul.f32 %v5899_v40, %v3871_v59  ;;  %v3867_v19 = vadd.f32 0.2548296, %v3861_v53  ;;  %v3795_v59 = vsel %vm3789_vm13, 1.0, %v6003_v8  ;;  %v5907_v25 = vpop.eup %5906 }
0x1287   :  { %v3900_v37 = vmul.f32 %v5901_v62, %v3870_v10  ;;  %v3866_v7 = vadd.f32 0.2548296, %v3860_v55  ;;  %v3857_v23 = vadd.f32 -0.28449672, %v3851_v21  ;;  %v3856_v63 = vadd.f32 -0.28449672, %v3850_v44 }
0x1288   :  { %v3907_v2 = vsub.f32 1.0, %v3901_v28  ;;  %v3873_v32 = vmul.f32 %v7779_v51, %v3867_v19  ;;  %v5909_v28 = vpop.eup %5908  ;;  %v3776_v19 = vmul.f32 0.5, %v7757_v58  ;;  %v3797_v55 = vsel %vm3791_vm15, 1.0, %v6003_v8 }
0x1289   :  { %v3906_v4 = vsub.f32 1.0, %v3900_v37  ;;  %v3872_v3 = vmul.f32 %v7782_v39, %v3866_v7  ;;  %v3863_v51 = vmul.f32 %v7786_v42, %v3857_v23  ;;  %v3862_v40 = vmul.f32 %v7788_v17, %v3856_v63 }
0x128a   :  { %v3913_v57 = vmul.f32 %v3907_v2, %v3793_v30  ;;  %v3903_v14 = vmul.f32 %v5903_v20, %v3873_v32  ;;  %v3777_v2 = vmul.f32 0.5, %v7754_v48  ;;  %v3779_v58 = vmul.f32 0.5, %v7767_v45 }
0x128b   :  { %v3912_v15 = vmul.f32 %v3906_v4, %v3792_v6  ;;  %v3902_v16 = vmul.f32 %v5905_v22, %v3872_v3  ;;  %v3869_v54 = vadd.f32 0.2548296, %v3863_v51  ;;  %v3868_v33 = vadd.f32 0.2548296, %v3862_v40 }
0x128c   :  { %v3919_v47 = vadd.f32 1.0, %v3913_v57  ;;  %v3909_v35 = vsub.f32 1.0, %v3903_v14  ;;  %v3949_v48 = vrot.slane %v7676_v11, %v6187_v43 }
0x128d   :  { %v3918_v56 = vadd.f32 1.0, %v3912_v15  ;;  %v3908_v39 = vsub.f32 1.0, %v3902_v16  ;;  %v3875_v53 = vmul.f32 %v7786_v42, %v3869_v54  ;;  %v3874_v62 = vmul.f32 %v7788_v17, %v3868_v33 }
0x128e   :  { %v3915_v18 = vmul.f32 %v3909_v35, %v3795_v59  ;;  %v3925_v10 = vmul.f32 %v3919_v47, %v3775_v49  ;;  %v3796_v17 = vsel %vm3790_vm0, 1.0, %v6003_v8 }
0x128f   :  { %v3924_v34 = vmul.f32 %v3918_v56, %v3774_v5  ;;  %v3914_v13 = vmul.f32 %v3908_v39, %v3794_v38  ;;  %v3905_v61 = vmul.f32 %v5907_v25, %v3875_v53  ;;  %v3904_v37 = vmul.f32 %v5909_v28, %v3874_v62 }
0x1290   :  { %v3921_v24 = vadd.f32 1.0, %v3915_v18 }
0x1291   :  { %5340 = vmatprep.mubr.f32.mxu0 %v3924_v34  ;;  %v3920_v29 = vadd.f32 1.0, %v3914_v13  ;;  %v3911_v42 = vsub.f32 1.0, %v3905_v61  ;;  %v3910_v21 = vsub.f32 1.0, %v3904_v37 }
0x1292   :  { %5341 = vmatmul.mubr.f32.vlgmr.msra.gmra.mrb[82].mxu0 %v3925_v10  ;;  %v3927_v30 = vmul.f32 %v3921_v24, %v3777_v2 }
0x1293   :  { %v3926_v20 = vmul.f32 %v3920_v29, %v3776_v19  ;;  %v3917_v36 = vmul.f32 %v3911_v42, %v3797_v55  ;;  %v3916_v4 = vmul.f32 %v3910_v21, %v3796_v17 }
0x1295   :  { %5343 = vmatprep.mubr.f32.mxu0 %v3926_v20  ;;  %v3923_v32 = vadd.f32 1.0, %v3917_v36  ;;  %v3922_v44 = vadd.f32 1.0, %v3916_v4 }
0x1296   :  { %5344 = vmatmul.mubr.f32.gmra.mrb[84].mxu0 %v3927_v30 }
0x1297   :  { %v3928_v57 = vmul.f32 %v3922_v44, %v3778_v60  ;;  %v3929_v6 = vmul.f32 %v3923_v32, %v3779_v58  ;;  %v4149_v58 = vld [vmem:[%s7938_s3 + $0x200] sm:$0xff] }
0x1299   :  { %5346 = vmatprep.mubr.f32.mxu0 %v3928_v57  ;;  %v4150_v57 = vld [vmem:[%s7938_s3 + $0x208] sm:$0xff] }
0x129a   :  { %5347 = vmatmul.mubr.f32.gmra.mrb[86].mxu0 %v3929_v6  ;;  %v5603_v6 = vpack.c.bf16 %v4150_v57, %v4149_v58 }
0x129c   :  { %5604 = vmatprep.subr.bf16.mxu1 %v5603_v6 }
0x129d   :  { %5606 = vmatpush3.bf16.msra.mxu1 %v5603_v6 }
0x1365   :  { %v5342_v8 = vpop.f32.mrb[82].mxu0 }
0x1366   :  { %v4022_v7 = vadd.f32 %v5342_v8, %v3949_v48  ;;  %v4016_v23 = vpop.f32.mrb[83].mxu0  ;;  %v4152_v8 = vld [vmem:[%s7938_s3 + $0x218] sm:$0xff] }
0x1367   :  { %v4017_v15 = vadd.f32 %v4016_v23, %v3949_v48  ;;  %v4270_v23 = vld [vmem:[%s7939_s4 + $0x48] sm:$0xff] }
0x1368   :  { %v4046_v14 = vadd.f32 %v4022_v7, %v7620_v26 }
0x1369   :  { %v4045_v63 = vadd.f32 %v4017_v15, %v7623_v52  ;;  %v5345_v49 = vpop.f32.mrb[84].mxu0  ;;  %v4271_v15 = vld [vmem:[%s7939_s4 + $0x50] sm:$0xff] }
0x136a   :  { %v4054_v0 = vsel %vm148_vm1, %v4046_v14, 0.0  ;;  %v4032_v47 = vadd.f32 %v5345_v49, %v3949_v48  ;;  %v4026_v3 = vpop.f32.mrb[85].mxu0 }
0x136b   :  { %4055 = vadd.xlane.f32.xlu1 %v4054_v0  ;;  %v4051_v45 = vsel %vm148_vm1, %v4045_v63, 0.0  ;;  %v4027_v51 = vadd.f32 %v4026_v3, %v3949_v48 }
0x136c   :  { %4052 = vadd.xlane.f32.xlu0 %v4051_v45  ;;  %v4048_v22 = vadd.f32 %v4032_v47, %v7630_v41 }
0x136d   :  { %v4047_v5 = vadd.f32 %v4027_v51, %v7633_v27  ;;  %v5348_v56 = vpop.f32.mrb[86].mxu0 }
0x136e   :  { %v4060_v35 = vsel %vm148_vm1, %v4048_v22, 0.0  ;;  %v4042_v26 = vadd.f32 %v5348_v56, %v3949_v48  ;;  %v4036_v40 = vpop.f32.mrb[87].mxu0 }
0x136f   :  { %4061 = vadd.xlane.f32.xlu1 %v4060_v35  ;;  %v4057_v52 = vsel %vm148_vm1, %v4047_v5, 0.0  ;;  %v4037_v59 = vadd.f32 %v4036_v40, %v3949_v48  ;;  %v4151_v48 = vld [vmem:[%s7938_s3 + $0x210] sm:$0xff] }
0x1370   :  { %4058 = vadd.xlane.f32.xlu0 %v4057_v52  ;;  %v4050_v16 = vadd.f32 %v4042_v26, %v7640_v46  ;;  %v5607_v7 = vpack.c.bf16 %v4152_v8, %v4151_v48 }
0x1371   :  { %v4049_v54 = vadd.f32 %v4037_v59, %v7643_v9 }
0x1372   :  { %v4066_v34 = vsel %vm148_vm1, %v4050_v16, 0.0  ;;  %5608 = vmatprep.subr.bf16.mxu1 %v5607_v7 }
0x1373   :  { %4067 = vadd.xlane.f32.xlu1 %v4066_v34  ;;  %v4063_v41 = vsel %vm148_vm1, %v4049_v54, 0.0  ;;  %5610 = vmatpush3.bf16.msra.mxu1 %v5607_v7 }
0x1374   :  { %4064 = vadd.xlane.f32.xlu0 %v4063_v41 }
0x13f8   :  { %v4056_v27 = vpop.xlane.xlu1 %4055 }
0x13f9   :  { %v4070_v18 = vmul.f32 0.03125, %v4056_v27  ;;  %v4053_v33 = vpop.xlane.xlu0 %4052 }
0x13fa   :  { %v4069_v10 = vmul.f32 0.03125, %v4053_v33 }
0x13fb   :  { %v7843_v39 = vsub.f32 %v4046_v14, %v4070_v18  ;;  %v5611_v14 = vpack.c.bf16 %v4271_v15, %v4270_v23 }
0x13fc   :  { %v7845_v53 = vsub.f32 %v4045_v63, %v4069_v10  ;;  %v4062_v9 = vpop.xlane.xlu1 %4061  ;;  %v4142_v10 = vrot.slane %v7676_v11, %v6243_v31 }
0x13fd   :  { %v4082_v25 = vmul.f32 %v7843_v39, %v7843_v39  ;;  %v4072_v62 = vmul.f32 0.03125, %v4062_v9  ;;  %v4059_v28 = vpop.xlane.xlu0 %4058  ;;  %5612 = vmatprep.subr.bf16.mxu1 %v5611_v14 }
0x13fe   :  { %v4081_v46 = vmul.f32 %v7845_v53, %v7845_v53  ;;  %v4071_v61 = vmul.f32 0.03125, %v4059_v28 }
0x13ff   :  { %v4090_v38 = vsel %vm148_vm1, %v4082_v25, 0.0  ;;  %v7853_v24 = vsub.f32 %v4048_v22, %v4072_v62 }
0x1400   :  { %4091 = vadd.xlane.f32.xlu1 %v4090_v38  ;;  %v4087_v13 = vsel %vm148_vm1, %v4081_v46, 0.0  ;;  %v7855_v37 = vsub.f32 %v4047_v5, %v4071_v61  ;;  %v4068_v19 = vpop.xlane.xlu1 %4067  ;;  %v4273_v38 = vld [vmem:[%s7939_s4 + $0x60] sm:$0xff] }
0x1401   :  { %4088 = vadd.xlane.f32.xlu0 %v4087_v13  ;;  %v4084_v29 = vmul.f32 %v7853_v24, %v7853_v24  ;;  %v4074_v42 = vmul.f32 0.03125, %v4068_v19  ;;  %v4065_v2 = vpop.xlane.xlu0 %4064 }
0x1402   :  { %v4083_v55 = vmul.f32 %v7855_v37, %v7855_v37  ;;  %v4073_v21 = vmul.f32 0.03125, %v4065_v2 }
0x1403   :  { %v4096_v17 = vsel %vm148_vm1, %v4084_v29, 0.0  ;;  %v7862_v20 = vsub.f32 %v4050_v16, %v4074_v42  ;;  %v4132_v16 = vrot.slane %v7676_v11, %v6227_v12  ;;  %v4272_v12 = vld [vmem:[%s7939_s4 + $0x58] sm:$0xff]  ;;  %s6004_s4 = smov [#allocation3]  }
0x1404   :  { %4097 = vadd.xlane.f32.xlu1 %v4096_v17  ;;  %v4093_v36 = vsel %vm148_vm1, %v4083_v55, 0.0  ;;  %v7865_v30 = vsub.f32 %v4049_v54, %v4073_v21  ;;  %v5615_v13 = vpack.c.bf16 %v4273_v38, %v4272_v12  ;;  %s4395_s17 = sshll.u32 %s6004_s4, 4  ;;  %s4396_s17 = int_to_ptr.vmem [resolvable:$true] %s4395_s17 }
0x1405   :  { %4094 = vadd.xlane.f32.xlu0 %v4093_v36  ;;  %v4086_v4 = vmul.f32 %v7862_v20, %v7862_v20  ;;  %s5978_s18 = scalar_lea.vmem %s4396_s17, 32  ;;  %p5983_p1 = scmp.lt.s32.totalorder %s4396_s17, %s4396_s17 }
0x1406   :  { %v4085_v32 = vmul.f32 %v7865_v30, %v7865_v30  ;;  %p5979_p0 = scmp.ne.s32.totalorder %s4396_s17, %s5978_s18  ;;  %p5984_p2 = scmp.lt.s32.totalorder %s5978_s18, %s5978_s18 }
0x1407   :  { %v4102_v60 = vsel %vm148_vm1, %v4086_v4, 0.0 }
0x1408   :  { %4103 = vadd.xlane.f32.xlu1 %v4102_v60  ;;  %v4099_v44 = vsel %vm148_vm1, %v4085_v32, 0.0  ;;  %v4156_v60 = vrot.slane %v7676_v11, %v6224_v1  ;;  %p5985_p3 = por %p5984_p2, %p5983_p1 }
0x1409   :  { %4100 = vadd.xlane.f32.xlu0 %v4099_v44 }
0x140a   :  { %p5986_p4 = pnand %p5985_p3, %p5979_p0 }
0x148d   :  { %v4092_v63 = vpop.xlane.xlu1 %4091 }
0x148e   :  { %v4106_v0 = vmul.f32 0.03125, %v4092_v63  ;;  %v4089_v45 = vpop.xlane.xlu0 %4088  ;;  %v4277_v63 = vrot.slane %v7739_v50, %v6187_v43 }
0x148f   :  { %v4105_v49 = vmul.f32 0.03125, %v4089_v45 }
0x1490   :  { %v4112_v47 = vadd.f32 1e-05, %v4106_v0 }
0x1491   :  { %v4111_v3 = vadd.f32 1e-05, %v4105_v49  ;;  %v4098_v51 = vpop.xlane.xlu1 %4097 }
0x1492   :  { %5910 = vrsqrt.f32 %v4112_v47  ;;  %v4108_v22 = vmul.f32 0.03125, %v4098_v51  ;;  %v4095_v5 = vpop.xlane.xlu0 %4094 }
0x1493   :  { %5912 = vrsqrt.f32 %v4111_v3  ;;  %v4107_v56 = vmul.f32 0.03125, %v4095_v5 }
0x1494   :  { %v4114_v35 = vadd.f32 1e-05, %v4108_v22 }
0x1495   :  { %v4113_v26 = vadd.f32 1e-05, %v4107_v56  ;;  %v4104_v40 = vpop.xlane.xlu1 %4103 }
0x1496   :  { %5914 = vrsqrt.f32 %v4114_v35  ;;  %v4110_v52 = vmul.f32 0.03125, %v4104_v40  ;;  %v4101_v59 = vpop.xlane.xlu0 %4100 }
0x1497   :  { %5916 = vrsqrt.f32 %v4113_v26  ;;  %v4109_v54 = vmul.f32 0.03125, %v4101_v59 }
0x1498   :  { %v4116_v41 = vadd.f32 1e-05, %v4110_v52 }
0x1499   :  { %v4115_v33 = vadd.f32 1e-05, %v4109_v54 }
0x149a   :  { %5918 = vrsqrt.f32 %v4116_v41 }
0x149b   :  { %5920 = vrsqrt.f32 %v4115_v33 }
0x149c   :  { %v5911_v34 = vpop.eup %5910 }
0x149d   :  { %v5913_v27 = vpop.eup %5912  ;;  %v4124_v18 = vmul.f32 %v5911_v34, %v7843_v39 }
0x149e   :  { %v4123_v25 = vmul.f32 %v5913_v27, %v7845_v53 }
0x149f   :  { %v4134_v46 = vmul.f32 %v4132_v16, %v4124_v18 }
0x14a0   :  { %v4133_v9 = vmul.f32 %v4132_v16, %v4123_v25  ;;  %v5915_v39 = vpop.eup %5914 }
0x14a1   :  { %v4144_v28 = vadd.f32 %v4142_v10, %v4134_v46  ;;  %v5917_v61 = vpop.eup %5916  ;;  %v4126_v31 = vmul.f32 %v5915_v39, %v7853_v24 }
0x14a2   :  { %v4143_v62 = vadd.f32 %v4142_v10, %v4133_v9  ;;  %v4125_v53 = vmul.f32 %v5917_v61, %v7855_v37 }
0x14a3   :  { %v4136_v19 = vmul.f32 %v4132_v16, %v4126_v31 }
0x14a4   :  { %5357 = vmatprep.mubr.msk.f32.mxu1 %vm148_vm1, %v4143_v62  ;;  %v4135_v29 = vmul.f32 %v4132_v16, %v4125_v53  ;;  %v5919_v42 = vpop.eup %5918 }
0x14a5   :  { %5358 = vmatmul.mubr.msk.f32.vlgmr.msra.gmra.mrb[84].mxu1 %vm148_vm1, %v4144_v28  ;;  %v5921_v2 = vpop.eup %5920  ;;  %v4128_v21 = vmul.f32 %v5919_v42, %v7862_v20  ;;  %v4146_v17 = vadd.f32 %v4142_v10, %v4136_v19 }
0x14a6   :  { %5614 = vmatpush3.bf16.msra.mxu1 %v5611_v14  ;;  %v4145_v55 = vadd.f32 %v4142_v10, %v4135_v29  ;;  %v4127_v36 = vmul.f32 %v5921_v2, %v7865_v30 }
0x14a7   :  { %5616 = vmatprep.subr.bf16.mxu1 %v5615_v13  ;;  %v4138_v24 = vmul.f32 %v4132_v16, %v4128_v21 }
0x14a8   :  { %5360 = vmatprep.mubr.msk.f32.mxu1 %vm148_vm1, %v4145_v55  ;;  %v4137_v4 = vmul.f32 %v4132_v16, %v4127_v36 }
0x14a9   :  { %5361 = vmatmul.mubr.msk.f32.gmra.mrb[86].mxu1 %vm148_vm1, %v4146_v17  ;;  %v4148_v32 = vadd.f32 %v4142_v10, %v4138_v24 }
0x14aa   :  { %5618 = vmatpush3.bf16.msra.mxu1 %v5615_v13  ;;  %v4147_v37 = vadd.f32 %v4142_v10, %v4137_v4 }
0x14ac   :  { %5363 = vmatprep.mubr.msk.f32.mxu1 %vm148_vm1, %v4147_v37 }
0x14ad   :  { %5364 = vmatmul.mubr.msk.f32.gmra.mrb[88].mxu1 %vm148_vm1, %v4148_v32 }
0x1578   :  { %v5359_v20 = vpop.f32.mrb[84].mxu1 }
0x1579   :  { %v4241_v44 = vpop.f32.mrb[85].mxu1  ;;  %v4247_v30 = vadd.f32 %v5359_v20, %v4156_v60 }
0x157a   :  { %v4242_v58 = vadd.f32 %v4241_v44, %v4156_v60 }
0x157c   :  { %5374 = vmatprep.mubr.msk.f32.mxu1 %vm148_vm1, %v4242_v58  ;;  %v5362_v57 = vpop.f32.mrb[86].mxu1 }
0x157d   :  { %5375 = vmatmul.mubr.msk.f32.vlgmr.msra.gmra.mrb[90].mxu1 %vm148_vm1, %v4247_v30  ;;  %v4251_v6 = vpop.f32.mrb[87].mxu1  ;;  %v4257_v8 = vadd.f32 %v5362_v57, %v4156_v60 }
0x157e   :  { %v4252_v48 = vadd.f32 %v4251_v6, %v4156_v60 }
0x1580   :  { %5377 = vmatprep.mubr.msk.f32.mxu1 %vm148_vm1, %v4252_v48  ;;  %v5365_v7 = vpop.f32.mrb[88].mxu1 }
0x1581   :  { %5378 = vmatmul.mubr.msk.f32.gmra.mrb[92].mxu1 %vm148_vm1, %v4257_v8  ;;  %v4261_v23 = vpop.f32.mrb[89].mxu1  ;;  %v4267_v1 = vadd.f32 %v5365_v7, %v4156_v60 }
0x1582   :  { %v4262_v15 = vadd.f32 %v4261_v23, %v4156_v60 }
0x1584   :  { %5380 = vmatprep.mubr.msk.f32.mxu1 %vm148_vm1, %v4262_v15 }
0x1585   :  { %5381 = vmatmul.mubr.msk.f32.gmra.mrb[94].mxu1 %vm148_vm1, %v4267_v1 }
0x1650   :  { %v5376_v11 = vpop.f32.mrb[90].mxu1 }
0x1651   :  { %v4362_v14 = vpop.f32.mrb[91].mxu1 }
0x1654   :  { %v5379_v0 = vpop.f32.mrb[92].mxu1 }
0x1655   :  { %v4370_v45 = vpop.f32.mrb[93].mxu1 }
0x1656   :  { %v4371_v49 = vadd.f32 %v4370_v45, %v4277_v63 }
0x1658   :  { %4387 = vst [vmem:[#allocation3] sm:$0x1] %v4371_v49  ;;  %v5382_v47 = vpop.f32.mrb[94].mxu1 }
0x1659   :  { %v4384_v3 = vadd.f32 %v5382_v47, %v4277_v63  ;;  %v4379_v51 = vpop.f32.mrb[95].mxu1 }
0x165b   :  { %4388 = vst [vmem:[#allocation3 + $0x1] sm:$0x1] %v4384_v3 }
0x165c   :  { %5989 = shalt.err (!%p5986_p4)
}
0x165d   :  { %s5990_s21 = scalar_lea.hbm %s7943_s8, 32 }
0x165e   :  { %p5991_p5 = scmp.ne.s32.totalorder %s7943_s8, %s5990_s21  ;;  %p5994_p6 = scmp.lt.u32.totalorder %s5990_s21, %s7943_s8 }
0x1660   :  { %p5996_p7 = pnand %p5994_p6, %p5991_p5 }
0x1662   :  { %5999 = shalt.err (!%p5996_p7)
}
0x1663   :  { %4398 = dma.vmem_to_hbm [thread:$0]  %s4396_s17, 32, %s7943_s8, [#allocation4]  }
0x1664   :  { %6000 = dma.done.wait [#allocation4], 32  }
0x1665   :  { %6001 = vsyncadd [#allocation4], 4294967264 }
0x1666   :  { %4402 = vsyncpa [#allocation4], 1 }

</bundles_post_ra>
